<compile_context>
chip_gen: v7x
topology: tpu7x:2x2x1
jax: 0.10.0
libtpu: 0.0.40
codegen_flags: <defaults>
</compile_context>

<pallas_src>
import jax
import jax.numpy as jnp
from jax.experimental import pallas as pl
from jax.experimental.pallas import tpu as pltpu

_BN_EPS = 1e-5
_LANE = 128


def _round_up(x, m):
    return (x + m - 1) // m * m


def _pick_tile(dim, candidates):
    for c in candidates:
        if dim % c == 0:
            return c
    return dim  # dim is always a multiple of 128 here, so we never reach this


# ----------------------------------------------------------------------------
# Pallas kernel: tiled matmul + BN scale/bias (+ residual) (+ ReLU) epilogue
# ----------------------------------------------------------------------------
def _make_matmul_bn_act_kernel(relu, has_res):
    def kernel(x_ref, w_ref, scale_ref, bias_ref, *rest):
        if has_res:
            res_ref, o_ref, acc_ref = rest
        else:
            o_ref, acc_ref = rest
            res_ref = None
        k = pl.program_id(2)

        @pl.when(k == 0)
        def _():
            acc_ref[...] = jnp.zeros_like(acc_ref)

        acc_ref[...] += jnp.dot(x_ref[...], w_ref[...],
                                preferred_element_type=jnp.float32)

        # Epilogue exactly once per output tile (keeps VPU work off the K loop).
        @pl.when(k == pl.num_programs(2) - 1)
        def _():
            y = acc_ref[...] * scale_ref[...] + bias_ref[...]
            if res_ref is not None:
                y = y + res_ref[...]
            if relu:
                y = jnp.maximum(y, 0.0)
            o_ref[...] = y.astype(o_ref.dtype)

    return kernel


def matmul_bn_act(x, w, scale, bias, relu, residual=None):
    """(x @ w) * scale + bias [+ residual] [ReLU].

    x: (M, K), w: (K, N). Feeds are cast to bf16 (MXU) with f32 accumulation.
    Returns f32 (M, N_pad) with N padded to a lane-dense multiple of 128;
    padded output channels are exactly zero (zero weight cols, zero scale/bias).
    """
    M, K = x.shape
    K2, N = w.shape
    assert K == K2
    M_pad = _round_up(M, _LANE)
    K_pad = _round_up(K, _LANE)
    N_pad = _round_up(N, _LANE)

    xp = jnp.pad(x.astype(jnp.bfloat16), ((0, M_pad - M), (0, K_pad - K)))
    wp = jnp.pad(w.astype(jnp.bfloat16), ((0, K_pad - K), (0, N_pad - N)))
    scale_p = jnp.pad(scale.astype(jnp.float32), (0, N_pad - N)).reshape(1, N_pad)
    bias_p = jnp.pad(bias.astype(jnp.float32), (0, N_pad - N)).reshape(1, N_pad)

    tm = _pick_tile(M_pad, (512, 256, 128))
    tk = _pick_tile(K_pad, (512, 256, 128))
    tn = _pick_tile(N_pad, (256, 128))
    grid = (M_pad // tm, N_pad // tn, K_pad // tk)

    in_specs = [
        pl.BlockSpec((tm, tk), lambda i, j, k: (i, k)),
        pl.BlockSpec((tk, tn), lambda i, j, k: (k, j)),
        pl.BlockSpec((1, tn), lambda i, j, k: (0, j)),
        pl.BlockSpec((1, tn), lambda i, j, k: (0, j)),
    ]
    inputs = [xp, wp, scale_p, bias_p]

    if residual is not None:
        rM, rN = residual.shape
        assert rM == M and rN <= N_pad
        res_p = jnp.pad(residual.astype(jnp.float32),
                        ((0, M_pad - rM), (0, N_pad - rN)))
        in_specs.append(pl.BlockSpec((tm, tn), lambda i, j, k: (i, j)))
        inputs.append(res_p)

    gm, gn, gk = grid
    cost = pl.CostEstimate(
        flops=2 * M_pad * N_pad * K_pad,
        transcendentals=0,
        bytes_accessed=int(M_pad * K_pad * 2 * gn + K_pad * N_pad * 2 * gm
                           + M_pad * N_pad * 4 * (2 if residual is not None else 1)
                           + 2 * N_pad * 4),
    )

    out = pl.pallas_call(
        _make_matmul_bn_act_kernel(relu, residual is not None),
        out_shape=jax.ShapeDtypeStruct((M_pad, N_pad), jnp.float32),
        grid=grid,
        in_specs=in_specs,
        out_specs=pl.BlockSpec((tm, tn), lambda i, j, k: (i, j)),
        scratch_shapes=[pltpu.VMEM((tm, tn), jnp.float32)],
        compiler_params=pltpu.CompilerParams(
            dimension_semantics=("parallel", "parallel", "arbitrary")),
        cost_estimate=cost,
    )(*inputs)
    return out[:M]


# ----------------------------------------------------------------------------
# Glue: BN folding, im2col, conv wrappers (plain JAX around the Pallas matmul)
# ----------------------------------------------------------------------------
def fold_bn(bn):
    gamma, beta, mean, var = bn["gamma"], bn["beta"], bn["mean"], bn["var"]
    scale = gamma / jnp.sqrt(var + _BN_EPS)
    bias = beta - mean * scale
    return scale, bias


def conv1x1_bn_act(x_nhwc, w_oihw, bn, stride, relu, residual=None):
    # TODO(synk): for down_sample=True, express the ::stride subsample via the
    # LHS index_map instead of an XLA strided slice (saves one HBM round trip).
    xs = x_nhwc[:, ::stride, ::stride, :]
    B, Ho, Wo, Cin_pad = xs.shape
    Cout, Cin = w_oihw.shape[0], w_oihw.shape[1]
    xm = xs.reshape(B * Ho * Wo, Cin_pad)
    wm = jnp.transpose(w_oihw[:, :, 0, 0], (1, 0))          # (Cin, Cout)
    wm = jnp.pad(wm, ((0, Cin_pad - Cin), (0, 0)))           # match padded input channels
    scale, bias = fold_bn(bn)
    ym = matmul_bn_act(xm, wm, scale, bias, relu, residual)
    return ym.reshape(B, Ho, Wo, ym.shape[-1])


def _im2col_3x3(x_nhwc, stride):
    # padding = kernel_size // 2 = 1, matches the PyTorch Conv default.
    B, H, W, C = x_nhwc.shape
    xp = jnp.pad(x_nhwc, ((0, 0), (1, 1), (1, 1), (0, 0)))
    Ho = (H + 2 - 3) // stride + 1
    Wo = (W + 2 - 3) // stride + 1
    patches = []
    for dh in range(3):
        for dw in range(3):
            patches.append(
                xp[:, dh:dh + (Ho - 1) * stride + 1:stride,
                      dw:dw + (Wo - 1) * stride + 1:stride, :])
    cols = jnp.concatenate(patches, axis=-1)  # (B, Ho, Wo, 9*C), order (dh, dw, c)
    return cols, Ho, Wo


def conv3x3_bn_act(x_nhwc, w_oihw, bn, stride, relu):
    # TODO(synk): fuse im2col into the matmul kernel (accumulate 9 shifted taps
    # in-kernel) to avoid materializing the 9x-expanded cols tensor in HBM.
    B = x_nhwc.shape[0]
    Cout, Cin = w_oihw.shape[0], w_oihw.shape[1]
    Cin_pad = x_nhwc.shape[-1]
    cols, Ho, Wo = _im2col_3x3(x_nhwc.astype(jnp.bfloat16), stride)  # bf16 halves HBM bytes
    xm = cols.reshape(B * Ho * Wo, 9 * Cin_pad)
    wm = jnp.transpose(w_oihw, (2, 3, 1, 0))                 # (3, 3, Cin, Cout)
    wm = jnp.pad(wm, ((0, 0), (0, 0), (0, Cin_pad - Cin), (0, 0)))
    wm = wm.reshape(9 * Cin_pad, Cout)                        # matches (dh, dw, c) patch order
    scale, bias = fold_bn(bn)
    ym = matmul_bn_act(xm, wm, scale, bias, relu)
    return ym.reshape(B, Ho, Wo, ym.shape[-1])


# ----------------------------------------------------------------------------
# Bottleneck forward (quantize=False)
# ----------------------------------------------------------------------------
def bottleneck_forward(x_nchw, params, in_channels, out_channels, down_sample=False):
    stride = 2 if down_sample else 1
    x = jnp.transpose(x_nchw, (0, 2, 3, 1)).astype(jnp.float32)      # NCHW -> NHWC
    Cin_pad = _round_up(in_channels, _LANE)
    x = jnp.pad(x, ((0, 0), (0, 0), (0, 0), (0, Cin_pad - in_channels)))

    # main branch: 1x1 (relu) -> 3x3 stride (relu) -> 1x1 (+residual, relu fused)
    h = conv1x1_bn_act(x, params["conv1"]["w"], params["conv1"]["bn"], 1, relu=True)
    h = conv3x3_bn_act(h, params["conv2"]["w"], params["conv2"]["bn"], stride, relu=True)

    # shortcut branch (channel-padded to round_up(out_channels, 128))
    if in_channels != out_channels:
        s = conv1x1_bn_act(x, params["shortcut"]["w"], params["shortcut"]["bn"],
                           stride, relu=False)
    else:
        assert stride == 1, "identity shortcut requires stride == 1"
        s = x  # already zero-padded; Cin_pad == Cout_pad since in == out

    res_flat = s.reshape(-1, s.shape[-1])
    # conv3 with residual add + final ReLU fused into the matmul epilogue
    y = conv1x1_bn_act(h, params["conv3"]["w"], params["conv3"]["bn"], 1,
                       relu=True, residual=res_flat)
    y = y[..., :out_channels]
    return jnp.transpose(y, (0, 3, 1, 2))                            # back to NCHW


# ----------------------------------------------------------------------------
# Pure-JAX reference (lax.conv, bf16 feeds like the kernel) for correctness
# ----------------------------------------------------------------------------
def _ref_conv_bn_act(x_nhwc, w_oihw, bn, stride, relu):
    k = w_oihw.shape[2]
    pad = k // 2
    w_hwio = jnp.transpose(w_oihw, (2, 3, 1, 0)).astype(jnp.bfloat16)
    y = jax.lax.conv_general_dilated(
        x_nhwc.astype(jnp.bfloat16), w_hwio, (stride, stride),
        [(pad, pad), (pad, pad)],
        dimension_numbers=("NHWC", "HWIO", "NHWC"),
        preferred_element_type=jnp.float32)
    scale, bias = fold_bn(bn)
    y = y * scale + bias
    return jnp.maximum(y, 0.0) if relu else y


def bottleneck_reference(x_nchw, params, in_channels, out_channels, down_sample=False):
    stride = 2 if down_sample else 1
    x = jnp.transpose(x_nchw, (0, 2, 3, 1)).astype(jnp.float32)
    h = _ref_conv_bn_act(x, params["conv1"]["w"], params["conv1"]["bn"], 1, True)
    h = _ref_conv_bn_act(h, params["conv2"]["w"], params["conv2"]["bn"], stride, True)
    h = _ref_conv_bn_act(h, params["conv3"]["w"], params["conv3"]["bn"], 1, False)
    if in_channels != out_channels:
        s = _ref_conv_bn_act(x, params["shortcut"]["w"], params["shortcut"]["bn"],
                             stride, False)
    else:
        s = x
    y = jnp.maximum(h + s, 0.0)
    return jnp.transpose(y, (0, 3, 1, 2))


# ----------------------------------------------------------------------------
# Deterministic parameter init
# ----------------------------------------------------------------------------
def _init_conv_bn(key, c_in, c_out, k):
    kw, kg, kb, km, kv = jax.random.split(key, 5)
    return {
        "w": 0.1 * jax.random.normal(kw, (c_out, c_in, k, k), jnp.float32),
        "bn": {
            "gamma": 1.0 + 0.1 * jax.random.normal(kg, (c_out,), jnp.float32),
            "beta": 0.1 * jax.random.normal(kb, (c_out,), jnp.float32),
            "mean": 0.1 * jax.random.normal(km, (c_out,), jnp.float32),
            "var": jax.random.uniform(kv, (c_out,), jnp.float32, 0.5, 1.5),
        },
    }


def init_bottleneck_params(key, in_channels, out_channels):
    mid = out_channels // 4
    k1, k2, k3, k4 = jax.random.split(key, 4)
    params = {
        "conv1": _init_conv_bn(k1, in_channels, mid, 1),
        "conv2": _init_conv_bn(k2, mid, mid, 3),
        "conv3": _init_conv_bn(k3, mid, out_channels, 1),
    }
    if in_channels != out_channels:
        params["shortcut"] = _init_conv_bn(k4, in_channels, out_channels, 1)
    return params


# ----------------------------------------------------------------------------
if __name__ == "__main__":
    key = jax.random.PRNGKey(0)
    kx, kp = jax.random.split(key)

    B, C_IN, C_OUT, H, W = 2, 4, 8, 16, 16
    DOWN_SAMPLE = False  # stride = 1

    x = jax.random.normal(kx, (B, C_IN, H, W), jnp.float32)  # NCHW like PyTorch
    params = init_bottleneck_params(kp, C_IN, C_OUT)

    fwd = jax.jit(bottleneck_forward, static_argnums=(2, 3, 4))
    out = jax.block_until_ready(fwd(x, params, C_IN, C_OUT, DOWN_SAMPLE))

    ref = jax.block_until_ready(
        bottleneck_reference(x, params, C_IN, C_OUT, DOWN_SAMPLE))

    assert out.shape == (B, C_OUT, H, W), out.shape
    assert jnp.allclose(out, ref, rtol=2e-2, atol=2e-2), \
        float(jnp.max(jnp.abs(out - ref)))

    print("KERNEL_OK")
</pallas_src>

<mosaic_0001>
module attributes {stable_mosaic.version = 11 : i64} {
  func.func @kernel(%arg0: i32, %arg1: i32, %arg2: i32, %arg3: memref<512x128xbf16, #tpu.memory_space<vmem>>, %arg4: memref<128x128xbf16, #tpu.memory_space<vmem>>, %arg5: memref<1x128xf32, #tpu.memory_space<vmem>>, %arg6: memref<1x128xf32, #tpu.memory_space<vmem>>, %arg7: memref<512x128xf32, #tpu.memory_space<vmem>>, %arg8: memref<512x128xf32, #tpu.memory_space<vmem>>) attributes {dimension_semantics = [#tpu.dimension_semantics<parallel>, #tpu.dimension_semantics<parallel>, #tpu.dimension_semantics<arbitrary>], iteration_bounds = array<i64: 1, 1, 1>, scalar_prefetch = 0 : i64, scratch_operands = 1 : i64, tpu.core_type = #tpu.core_type<tc>, window_params = [{transform_indices = @transform_0, window_bounds = array<i64: 512, 128>}, {transform_indices = @transform_1, window_bounds = array<i64: 128, 128>}, {transform_indices = @transform_2, window_bounds = array<i64: 1, 128>}, {transform_indices = @transform_3, window_bounds = array<i64: 1, 128>}, {transform_indices = @transform_4, window_bounds = array<i64: 512, 128>}]} {
    %c0_i32 = arith.constant 0 : i32
    %0 = arith.cmpi eq, %arg2, %c0_i32 : i32
    %1 = arith.extui %0 : i1 to i32
    %c0_i32_0 = arith.constant 0 : i32
    %2 = arith.cmpi ne, %1, %c0_i32_0 : i32
    scf.if %2 {
      %cst_10 = arith.constant 0.000000e+00 : f32
      %12 = vector.broadcast %cst_10 : f32 to vector<512x128xf32>
      %c0_11 = arith.constant 0 : index
      %c0_12 = arith.constant 0 : index
      %13 = vector.load %arg8[%c0_11, %c0_12] : memref<512x128xf32, #tpu.memory_space<vmem>>, vector<512x128xf32>
      tpu.vector_store %arg8[%c0_11, %c0_12], %12 {strides = array<i32>} : memref<512x128xf32, #tpu.memory_space<vmem>>, vector<512x128xf32>,
    } else {
    }
    %c0 = arith.constant 0 : index
    %c0_1 = arith.constant 0 : index
    %3 = vector.load %arg8[%c0, %c0_1] : memref<512x128xf32, #tpu.memory_space<vmem>>, vector<512x128xf32>
    %c0_2 = arith.constant 0 : index
    %c0_3 = arith.constant 0 : index
    %4 = vector.load %arg3[%c0_2, %c0_3] : memref<512x128xbf16, #tpu.memory_space<vmem>>, vector<512x128xbf16>
    %c0_4 = arith.constant 0 : index
    %c0_5 = arith.constant 0 : index
    %5 = vector.load %arg4[%c0_4, %c0_5] : memref<128x128xbf16, #tpu.memory_space<vmem>>, vector<128x128xbf16>
    %cst = arith.constant dense<0.000000e+00> : vector<512x128xf32>
    %6 = tpu.matmul %4, %5, %cst {dimension_numbers = #tpu.dot_dimension_numbers<[1], [0], [0], [1], [0, 0, 1, 1], [], []>} : vector<512x128xbf16>, vector<128x128xbf16>, vector<512x128xf32> -> vector<512x128xf32>
    %7 = arith.addf %3, %6 : vector<512x128xf32>
    %c0_6 = arith.constant 0 : index
    %c0_7 = arith.constant 0 : index
    %8 = vector.load %arg8[%c0_6, %c0_7] : memref<512x128xf32, #tpu.memory_space<vmem>>, vector<512x128xf32>
    tpu.vector_store %arg8[%c0_6, %c0_7], %7 {strides = array<i32>} : memref<512x128xf32, #tpu.memory_space<vmem>>, vector<512x128xf32>,
    %c0_i32_8 = arith.constant 0 : i32
    %9 = arith.cmpi eq, %arg2, %c0_i32_8 : i32
    %10 = arith.extui %9 : i1 to i32
    %c0_i32_9 = arith.constant 0 : i32
    %11 = arith.cmpi ne, %10, %c0_i32_9 : i32
    scf.if %11 {
      %c0_10 = arith.constant 0 : index
      %c0_11 = arith.constant 0 : index
      %12 = vector.load %arg8[%c0_10, %c0_11] : memref<512x128xf32, #tpu.memory_space<vmem>>, vector<512x128xf32>
      %c0_12 = arith.constant 0 : index
      %c0_13 = arith.constant 0 : index
      %13 = vector.load %arg5[%c0_12, %c0_13] : memref<1x128xf32, #tpu.memory_space<vmem>>, vector<1x128xf32>
      %14 = vector.broadcast %13 : vector<1x128xf32> to vector<512x128xf32>
      %15 = arith.mulf %12, %14 : vector<512x128xf32>
      %c0_14 = arith.constant 0 : index
      %c0_15 = arith.constant 0 : index
      %16 = vector.load %arg6[%c0_14, %c0_15] : memref<1x128xf32, #tpu.memory_space<vmem>>, vector<1x128xf32>
      %17 = vector.broadcast %16 : vector<1x128xf32> to vector<512x128xf32>
      %18 = arith.addf %15, %17 : vector<512x128xf32>
      %cst_16 = arith.constant 0.000000e+00 : f32
      %19 = vector.broadcast %cst_16 : f32 to vector<512x128xf32>
      %20 = arith.maximumf %18, %19 : vector<512x128xf32>
      %c0_17 = arith.constant 0 : index
      %c0_18 = arith.constant 0 : index
      %21 = vector.load %arg7[%c0_17, %c0_18] : memref<512x128xf32, #tpu.memory_space<vmem>>, vector<512x128xf32>
      tpu.vector_store %arg7[%c0_17, %c0_18], %20 {strides = array<i32>} : memref<512x128xf32, #tpu.memory_space<vmem>>, vector<512x128xf32>,
    } else {
    }
    return
  }
  func.func @transform_0(%arg0: i32, %arg1: i32, %arg2: i32) -> (i32, i32) {
    %c0_i32 = arith.constant 0 : i32
    return %arg0, %arg2 : i32, i32
  }
  func.func @transform_1(%arg0: i32, %arg1: i32, %arg2: i32) -> (i32, i32) {
    %c0_i32 = arith.constant 0 : i32
    return %arg2, %arg1 : i32, i32
  }
  func.func @transform_2(%arg0: i32, %arg1: i32, %arg2: i32) -> (i32, i32) {
    %c0_i32 = arith.constant 0 : i32
    %c0_i32_0 = arith.constant 0 : i32
    return %c0_i32, %arg1 : i32, i32
  }
  func.func @transform_3(%arg0: i32, %arg1: i32, %arg2: i32) -> (i32, i32) {
    %c0_i32 = arith.constant 0 : i32
    %c0_i32_0 = arith.constant 0 : i32
    return %c0_i32, %arg1 : i32, i32
  }
  func.func @transform_4(%arg0: i32, %arg1: i32, %arg2: i32) -> (i32, i32) {
    %c0_i32 = arith.constant 0 : i32
    return %arg0, %arg1 : i32, i32
  }
}

module attributes {stable_mosaic.version = 11 : i64} {
  func.func @kernel(%arg0: i32, %arg1: i32, %arg2: i32, %arg3: memref<512x128xbf16, #tpu.memory_space<vmem>>, %arg4: memref<128x128xbf16, #tpu.memory_space<vmem>>, %arg5: memref<1x128xf32, #tpu.memory_space<vmem>>, %arg6: memref<1x128xf32, #tpu.memory_space<vmem>>, %arg7: memref<512x128xf32, #tpu.memory_space<vmem>>, %arg8: memref<512x128xf32, #tpu.memory_space<vmem>>) attributes {dimension_semantics = [#tpu.dimension_semantics<parallel>, #tpu.dimension_semantics<parallel>, #tpu.dimension_semantics<arbitrary>], iteration_bounds = array<i64: 1, 1, 9>, scalar_prefetch = 0 : i64, scratch_operands = 1 : i64, tpu.core_type = #tpu.core_type<tc>, window_params = [{transform_indices = @transform_0, window_bounds = array<i64: 512, 128>}, {transform_indices = @transform_1, window_bounds = array<i64: 128, 128>}, {transform_indices = @transform_2, window_bounds = array<i64: 1, 128>}, {transform_indices = @transform_3, window_bounds = array<i64: 1, 128>}, {transform_indices = @transform_4, window_bounds = array<i64: 512, 128>}]} {
    %c0_i32 = arith.constant 0 : i32
    %0 = arith.cmpi eq, %arg2, %c0_i32 : i32
    %1 = arith.extui %0 : i1 to i32
    %c0_i32_0 = arith.constant 0 : i32
    %2 = arith.cmpi ne, %1, %c0_i32_0 : i32
    scf.if %2 {
      %cst_9 = arith.constant 0.000000e+00 : f32
      %12 = vector.broadcast %cst_9 : f32 to vector<512x128xf32>
      %c0_10 = arith.constant 0 : index
      %c0_11 = arith.constant 0 : index
      %13 = vector.load %arg8[%c0_10, %c0_11] : memref<512x128xf32, #tpu.memory_space<vmem>>, vector<512x128xf32>
      tpu.vector_store %arg8[%c0_10, %c0_11], %12 {strides = array<i32>} : memref<512x128xf32, #tpu.memory_space<vmem>>, vector<512x128xf32>,
    } else {
    }
    %c0 = arith.constant 0 : index
    %c0_1 = arith.constant 0 : index
    %3 = vector.load %arg8[%c0, %c0_1] : memref<512x128xf32, #tpu.memory_space<vmem>>, vector<512x128xf32>
    %c0_2 = arith.constant 0 : index
    %c0_3 = arith.constant 0 : index
    %4 = vector.load %arg3[%c0_2, %c0_3] : memref<512x128xbf16, #tpu.memory_space<vmem>>, vector<512x128xbf16>
    %c0_4 = arith.constant 0 : index
    %c0_5 = arith.constant 0 : index
    %5 = vector.load %arg4[%c0_4, %c0_5] : memref<128x128xbf16, #tpu.memory_space<vmem>>, vector<128x128xbf16>
    %cst = arith.constant dense<0.000000e+00> : vector<512x128xf32>
    %6 = tpu.matmul %4, %5, %cst {dimension_numbers = #tpu.dot_dimension_numbers<[1], [0], [0], [1], [0, 0, 1, 1], [], []>} : vector<512x128xbf16>, vector<128x128xbf16>, vector<512x128xf32> -> vector<512x128xf32>
    %7 = arith.addf %3, %6 : vector<512x128xf32>
    %c0_6 = arith.constant 0 : index
    %c0_7 = arith.constant 0 : index
    %8 = vector.load %arg8[%c0_6, %c0_7] : memref<512x128xf32, #tpu.memory_space<vmem>>, vector<512x128xf32>
    tpu.vector_store %arg8[%c0_6, %c0_7], %7 {strides = array<i32>} : memref<512x128xf32, #tpu.memory_space<vmem>>, vector<512x128xf32>,
    %c8_i32 = arith.constant 8 : i32
    %9 = arith.cmpi eq, %arg2, %c8_i32 : i32
    %10 = arith.extui %9 : i1 to i32
    %c0_i32_8 = arith.constant 0 : i32
    %11 = arith.cmpi ne, %10, %c0_i32_8 : i32
    scf.if %11 {
      %c0_9 = arith.constant 0 : index
      %c0_10 = arith.constant 0 : index
      %12 = vector.load %arg8[%c0_9, %c0_10] : memref<512x128xf32, #tpu.memory_space<vmem>>, vector<512x128xf32>
      %c0_11 = arith.constant 0 : index
      %c0_12 = arith.constant 0 : index
      %13 = vector.load %arg5[%c0_11, %c0_12] : memref<1x128xf32, #tpu.memory_space<vmem>>, vector<1x128xf32>
      %14 = vector.broadcast %13 : vector<1x128xf32> to vector<512x128xf32>
      %15 = arith.mulf %12, %14 : vector<512x128xf32>
      %c0_13 = arith.constant 0 : index
      %c0_14 = arith.constant 0 : index
      %16 = vector.load %arg6[%c0_13, %c0_14] : memref<1x128xf32, #tpu.memory_space<vmem>>, vector<1x128xf32>
      %17 = vector.broadcast %16 : vector<1x128xf32> to vector<512x128xf32>
      %18 = arith.addf %15, %17 : vector<512x128xf32>
      %cst_15 = arith.constant 0.000000e+00 : f32
      %19 = vector.broadcast %cst_15 : f32 to vector<512x128xf32>
      %20 = arith.maximumf %18, %19 : vector<512x128xf32>
      %c0_16 = arith.constant 0 : index
      %c0_17 = arith.constant 0 : index
      %21 = vector.load %arg7[%c0_16, %c0_17] : memref<512x128xf32, #tpu.memory_space<vmem>>, vector<512x128xf32>
      tpu.vector_store %arg7[%c0_16, %c0_17], %20 {strides = array<i32>} : memref<512x128xf32, #tpu.memory_space<vmem>>, vector<512x128xf32>,
    } else {
    }
    return
  }
  func.func @transform_0(%arg0: i32, %arg1: i32, %arg2: i32) -> (i32, i32) {
    %c0_i32 = arith.constant 0 : i32
    return %arg0, %arg2 : i32, i32
  }
  func.func @transform_1(%arg0: i32, %arg1: i32, %arg2: i32) -> (i32, i32) {
    %c0_i32 = arith.constant 0 : i32
    return %arg2, %arg1 : i32, i32
  }
  func.func @transform_2(%arg0: i32, %arg1: i32, %arg2: i32) -> (i32, i32) {
    %c0_i32 = arith.constant 0 : i32
    %c0_i32_0 = arith.constant 0 : i32
    return %c0_i32, %arg1 : i32, i32
  }
  func.func @transform_3(%arg0: i32, %arg1: i32, %arg2: i32) -> (i32, i32) {
    %c0_i32 = arith.constant 0 : i32
    %c0_i32_0 = arith.constant 0 : i32
    return %c0_i32, %arg1 : i32, i32
  }
  func.func @transform_4(%arg0: i32, %arg1: i32, %arg2: i32) -> (i32, i32) {
    %c0_i32 = arith.constant 0 : i32
    return %arg0, %arg1 : i32, i32
  }
}

module attributes {stable_mosaic.version = 11 : i64} {
  func.func @kernel(%arg0: i32, %arg1: i32, %arg2: i32, %arg3: memref<512x128xbf16, #tpu.memory_space<vmem>>, %arg4: memref<128x128xbf16, #tpu.memory_space<vmem>>, %arg5: memref<1x128xf32, #tpu.memory_space<vmem>>, %arg6: memref<1x128xf32, #tpu.memory_space<vmem>>, %arg7: memref<512x128xf32, #tpu.memory_space<vmem>>, %arg8: memref<512x128xf32, #tpu.memory_space<vmem>>) attributes {dimension_semantics = [#tpu.dimension_semantics<parallel>, #tpu.dimension_semantics<parallel>, #tpu.dimension_semantics<arbitrary>], iteration_bounds = array<i64: 1, 1, 1>, scalar_prefetch = 0 : i64, scratch_operands = 1 : i64, tpu.core_type = #tpu.core_type<tc>, window_params = [{transform_indices = @transform_0, window_bounds = array<i64: 512, 128>}, {transform_indices = @transform_1, window_bounds = array<i64: 128, 128>}, {transform_indices = @transform_2, window_bounds = array<i64: 1, 128>}, {transform_indices = @transform_3, window_bounds = array<i64: 1, 128>}, {transform_indices = @transform_4, window_bounds = array<i64: 512, 128>}]} {
    %c0_i32 = arith.constant 0 : i32
    %0 = arith.cmpi eq, %arg2, %c0_i32 : i32
    %1 = arith.extui %0 : i1 to i32
    %c0_i32_0 = arith.constant 0 : i32
    %2 = arith.cmpi ne, %1, %c0_i32_0 : i32
    scf.if %2 {
      %cst_10 = arith.constant 0.000000e+00 : f32
      %12 = vector.broadcast %cst_10 : f32 to vector<512x128xf32>
      %c0_11 = arith.constant 0 : index
      %c0_12 = arith.constant 0 : index
      %13 = vector.load %arg8[%c0_11, %c0_12] : memref<512x128xf32, #tpu.memory_space<vmem>>, vector<512x128xf32>
      tpu.vector_store %arg8[%c0_11, %c0_12], %12 {strides = array<i32>} : memref<512x128xf32, #tpu.memory_space<vmem>>, vector<512x128xf32>,
    } else {
    }
    %c0 = arith.constant 0 : index
    %c0_1 = arith.constant 0 : index
    %3 = vector.load %arg8[%c0, %c0_1] : memref<512x128xf32, #tpu.memory_space<vmem>>, vector<512x128xf32>
    %c0_2 = arith.constant 0 : index
    %c0_3 = arith.constant 0 : index
    %4 = vector.load %arg3[%c0_2, %c0_3] : memref<512x128xbf16, #tpu.memory_space<vmem>>, vector<512x128xbf16>
    %c0_4 = arith.constant 0 : index
    %c0_5 = arith.constant 0 : index
    %5 = vector.load %arg4[%c0_4, %c0_5] : memref<128x128xbf16, #tpu.memory_space<vmem>>, vector<128x128xbf16>
    %cst = arith.constant dense<0.000000e+00> : vector<512x128xf32>
    %6 = tpu.matmul %4, %5, %cst {dimension_numbers = #tpu.dot_dimension_numbers<[1], [0], [0], [1], [0, 0, 1, 1], [], []>} : vector<512x128xbf16>, vector<128x128xbf16>, vector<512x128xf32> -> vector<512x128xf32>
    %7 = arith.addf %3, %6 : vector<512x128xf32>
    %c0_6 = arith.constant 0 : index
    %c0_7 = arith.constant 0 : index
    %8 = vector.load %arg8[%c0_6, %c0_7] : memref<512x128xf32, #tpu.memory_space<vmem>>, vector<512x128xf32>
    tpu.vector_store %arg8[%c0_6, %c0_7], %7 {strides = array<i32>} : memref<512x128xf32, #tpu.memory_space<vmem>>, vector<512x128xf32>,
    %c0_i32_8 = arith.constant 0 : i32
    %9 = arith.cmpi eq, %arg2, %c0_i32_8 : i32
    %10 = arith.extui %9 : i1 to i32
    %c0_i32_9 = arith.constant 0 : i32
    %11 = arith.cmpi ne, %10, %c0_i32_9 : i32
    scf.if %11 {
      %c0_10 = arith.constant 0 : index
      %c0_11 = arith.constant 0 : index
      %12 = vector.load %arg8[%c0_10, %c0_11] : memref<512x128xf32, #tpu.memory_space<vmem>>, vector<512x128xf32>
      %c0_12 = arith.constant 0 : index
      %c0_13 = arith.constant 0 : index
      %13 = vector.load %arg5[%c0_12, %c0_13] : memref<1x128xf32, #tpu.memory_space<vmem>>, vector<1x128xf32>
      %14 = vector.broadcast %13 : vector<1x128xf32> to vector<512x128xf32>
      %15 = arith.mulf %12, %14 : vector<512x128xf32>
      %c0_14 = arith.constant 0 : index
      %c0_15 = arith.constant 0 : index
      %16 = vector.load %arg6[%c0_14, %c0_15] : memref<1x128xf32, #tpu.memory_space<vmem>>, vector<1x128xf32>
      %17 = vector.broadcast %16 : vector<1x128xf32> to vector<512x128xf32>
      %18 = arith.addf %15, %17 : vector<512x128xf32>
      %c0_16 = arith.constant 0 : index
      %c0_17 = arith.constant 0 : index
      %19 = vector.load %arg7[%c0_16, %c0_17] : memref<512x128xf32, #tpu.memory_space<vmem>>, vector<512x128xf32>
      tpu.vector_store %arg7[%c0_16, %c0_17], %18 {strides = array<i32>} : memref<512x128xf32, #tpu.memory_space<vmem>>, vector<512x128xf32>,
    } else {
    }
    return
  }
  func.func @transform_0(%arg0: i32, %arg1: i32, %arg2: i32) -> (i32, i32) {
    %c0_i32 = arith.constant 0 : i32
    return %arg0, %arg2 : i32, i32
  }
  func.func @transform_1(%arg0: i32, %arg1: i32, %arg2: i32) -> (i32, i32) {
    %c0_i32 = arith.constant 0 : i32
    return %arg2, %arg1 : i32, i32
  }
  func.func @transform_2(%arg0: i32, %arg1: i32, %arg2: i32) -> (i32, i32) {
    %c0_i32 = arith.constant 0 : i32
    %c0_i32_0 = arith.constant 0 : i32
    return %c0_i32, %arg1 : i32, i32
  }
  func.func @transform_3(%arg0: i32, %arg1: i32, %arg2: i32) -> (i32, i32) {
    %c0_i32 = arith.constant 0 : i32
    %c0_i32_0 = arith.constant 0 : i32
    return %c0_i32, %arg1 : i32, i32
  }
  func.func @transform_4(%arg0: i32, %arg1: i32, %arg2: i32) -> (i32, i32) {
    %c0_i32 = arith.constant 0 : i32
    return %arg0, %arg1 : i32, i32
  }
}

module attributes {stable_mosaic.version = 11 : i64} {
  func.func @kernel(%arg0: i32, %arg1: i32, %arg2: i32, %arg3: memref<512x128xbf16, #tpu.memory_space<vmem>>, %arg4: memref<128x128xbf16, #tpu.memory_space<vmem>>, %arg5: memref<1x128xf32, #tpu.memory_space<vmem>>, %arg6: memref<1x128xf32, #tpu.memory_space<vmem>>, %arg7: memref<512x128xf32, #tpu.memory_space<vmem>>, %arg8: memref<512x128xf32, #tpu.memory_space<vmem>>, %arg9: memref<512x128xf32, #tpu.memory_space<vmem>>) attributes {dimension_semantics = [#tpu.dimension_semantics<parallel>, #tpu.dimension_semantics<parallel>, #tpu.dimension_semantics<arbitrary>], iteration_bounds = array<i64: 1, 1, 1>, scalar_prefetch = 0 : i64, scratch_operands = 1 : i64, tpu.core_type = #tpu.core_type<tc>, window_params = [{transform_indices = @transform_0, window_bounds = array<i64: 512, 128>}, {transform_indices = @transform_1, window_bounds = array<i64: 128, 128>}, {transform_indices = @transform_2, window_bounds = array<i64: 1, 128>}, {transform_indices = @transform_3, window_bounds = array<i64: 1, 128>}, {transform_indices = @transform_4, window_bounds = array<i64: 512, 128>}, {transform_indices = @transform_5, window_bounds = array<i64: 512, 128>}]} {
    %c0_i32 = arith.constant 0 : i32
    %0 = arith.cmpi eq, %arg2, %c0_i32 : i32
    %1 = arith.extui %0 : i1 to i32
    %c0_i32_0 = arith.constant 0 : i32
    %2 = arith.cmpi ne, %1, %c0_i32_0 : i32
    scf.if %2 {
      %cst_10 = arith.constant 0.000000e+00 : f32
      %12 = vector.broadcast %cst_10 : f32 to vector<512x128xf32>
      %c0_11 = arith.constant 0 : index
      %c0_12 = arith.constant 0 : index
      %13 = vector.load %arg9[%c0_11, %c0_12] : memref<512x128xf32, #tpu.memory_space<vmem>>, vector<512x128xf32>
      tpu.vector_store %arg9[%c0_11, %c0_12], %12 {strides = array<i32>} : memref<512x128xf32, #tpu.memory_space<vmem>>, vector<512x128xf32>,
    } else {
    }
    %c0 = arith.constant 0 : index
    %c0_1 = arith.constant 0 : index
    %3 = vector.load %arg9[%c0, %c0_1] : memref<512x128xf32, #tpu.memory_space<vmem>>, vector<512x128xf32>
    %c0_2 = arith.constant 0 : index
    %c0_3 = arith.constant 0 : index
    %4 = vector.load %arg3[%c0_2, %c0_3] : memref<512x128xbf16, #tpu.memory_space<vmem>>, vector<512x128xbf16>
    %c0_4 = arith.constant 0 : index
    %c0_5 = arith.constant 0 : index
    %5 = vector.load %arg4[%c0_4, %c0_5] : memref<128x128xbf16, #tpu.memory_space<vmem>>, vector<128x128xbf16>
    %cst = arith.constant dense<0.000000e+00> : vector<512x128xf32>
    %6 = tpu.matmul %4, %5, %cst {dimension_numbers = #tpu.dot_dimension_numbers<[1], [0], [0], [1], [0, 0, 1, 1], [], []>} : vector<512x128xbf16>, vector<128x128xbf16>, vector<512x128xf32> -> vector<512x128xf32>
    %7 = arith.addf %3, %6 : vector<512x128xf32>
    %c0_6 = arith.constant 0 : index
    %c0_7 = arith.constant 0 : index
    %8 = vector.load %arg9[%c0_6, %c0_7] : memref<512x128xf32, #tpu.memory_space<vmem>>, vector<512x128xf32>
    tpu.vector_store %arg9[%c0_6, %c0_7], %7 {strides = array<i32>} : memref<512x128xf32, #tpu.memory_space<vmem>>, vector<512x128xf32>,
    %c0_i32_8 = arith.constant 0 : i32
    %9 = arith.cmpi eq, %arg2, %c0_i32_8 : i32
    %10 = arith.extui %9 : i1 to i32
    %c0_i32_9 = arith.constant 0 : i32
    %11 = arith.cmpi ne, %10, %c0_i32_9 : i32
    scf.if %11 {
      %c0_10 = arith.constant 0 : index
      %c0_11 = arith.constant 0 : index
      %12 = vector.load %arg9[%c0_10, %c0_11] : memref<512x128xf32, #tpu.memory_space<vmem>>, vector<512x128xf32>
      %c0_12 = arith.constant 0 : index
      %c0_13 = arith.constant 0 : index
      %13 = vector.load %arg5[%c0_12, %c0_13] : memref<1x128xf32, #tpu.memory_space<vmem>>, vector<1x128xf32>
      %14 = vector.broadcast %13 : vector<1x128xf32> to vector<512x128xf32>
      %15 = arith.mulf %12, %14 : vector<512x128xf32>
      %c0_14 = arith.constant 0 : index
      %c0_15 = arith.constant 0 : index
      %16 = vector.load %arg6[%c0_14, %c0_15] : memref<1x128xf32, #tpu.memory_space<vmem>>, vector<1x128xf32>
      %17 = vector.broadcast %16 : vector<1x128xf32> to vector<512x128xf32>
      %18 = arith.addf %15, %17 : vector<512x128xf32>
      %c0_16 = arith.constant 0 : index
      %c0_17 = arith.constant 0 : index
      %19 = vector.load %arg7[%c0_16, %c0_17] : memref<512x128xf32, #tpu.memory_space<vmem>>, vector<512x128xf32>
      %20 = arith.addf %18, %19 : vector<512x128xf32>
      %cst_18 = arith.constant 0.000000e+00 : f32
      %21 = vector.broadcast %cst_18 : f32 to vector<512x128xf32>
      %22 = arith.maximumf %20, %21 : vector<512x128xf32>
      %c0_19 = arith.constant 0 : index
      %c0_20 = arith.constant 0 : index
      %23 = vector.load %arg8[%c0_19, %c0_20] : memref<512x128xf32, #tpu.memory_space<vmem>>, vector<512x128xf32>
      tpu.vector_store %arg8[%c0_19, %c0_20], %22 {strides = array<i32>} : memref<512x128xf32, #tpu.memory_space<vmem>>, vector<512x128xf32>,
    } else {
    }
    return
  }
  func.func @transform_0(%arg0: i32, %arg1: i32, %arg2: i32) -> (i32, i32) {
    %c0_i32 = arith.constant 0 : i32
    return %arg0, %arg2 : i32, i32
  }
  func.func @transform_1(%arg0: i32, %arg1: i32, %arg2: i32) -> (i32, i32) {
    %c0_i32 = arith.constant 0 : i32
    return %arg2, %arg1 : i32, i32
  }
  func.func @transform_2(%arg0: i32, %arg1: i32, %arg2: i32) -> (i32, i32) {
    %c0_i32 = arith.constant 0 : i32
    %c0_i32_0 = arith.constant 0 : i32
    return %c0_i32, %arg1 : i32, i32
  }
  func.func @transform_3(%arg0: i32, %arg1: i32, %arg2: i32) -> (i32, i32) {
    %c0_i32 = arith.constant 0 : i32
    %c0_i32_0 = arith.constant 0 : i32
    return %c0_i32, %arg1 : i32, i32
  }
  func.func @transform_4(%arg0: i32, %arg1: i32, %arg2: i32) -> (i32, i32) {
    %c0_i32 = arith.constant 0 : i32
    return %arg0, %arg1 : i32, i32
  }
  func.func @transform_5(%arg0: i32, %arg1: i32, %arg2: i32) -> (i32, i32) {
    %c0_i32 = arith.constant 0 : i32
    return %arg0, %arg1 : i32, i32
  }
}

</mosaic_0001>

<bundles_post_ra>
// kernel: bottleneck_forward.4
= control target key start
LH: loop header
LB: loop body
LE: loop exit
PB: predicated region body
PF: predicated region fallthrough
CT: control target
= control target key end

     0   :  { %s1921_s1 = inlined_call_operand.vmem [shape: bf16[128,128], index: 1, kind: input, shape index: {}]   ;;  %s1922_s0 = inlined_call_operand.vmem [shape: bf16[512,128], index: 0, kind: input, shape index: {}]   ;;  %s1923_s2 = inlined_call_operand.vmem [shape: f32[1,128], index: 2, kind: input, shape index: {}]   ;;  %s1924_s3 = inlined_call_operand.vmem [shape: f32[1,128], index: 3, kind: input, shape index: {}]   ;;  %s1925_s4 = inlined_call_operand.vmem [shape: f32[512,128], index: 4, kind: output, shape index: {}]  }
   0x1   :  { %v1406_v0 = vld [vmem:[%s1921_s1] sm:$0xff]   ;;  %v1407_v1 = vld [vmem:[%s1921_s1 + $0x8] sm:$0xff]   ;;  %v1408_v2 = vld [vmem:[%s1921_s1 + $0x10] sm:$0xff]  }
   0x2   :  { %1310 = vmatprep.subr.bf16.mxu0 %v1406_v0  ;;  %1390 = vmatprep.subr.bf16.mxu1 %v1406_v0  ;;  %v1409_v3 = vld [vmem:[%s1921_s1 + $0x18] sm:$0xff]   ;;  %v1414_v4 = vld [vmem:[%s1922_s0] sm:$0xff]   ;;  %v1411_v7 = vld [vmem:[%s1921_s1 + $0x28] sm:$0xff]  }
   0x3   :  { %1311 = vmatpush3.bf16.msra.mxu0 %v1406_v0  ;;  %1398 = vmatpush3.bf16.msra.mxu1 %v1406_v0  ;;  %v1415_v5 = vld [vmem:[%s1922_s0 + $0x80] sm:$0xff]   ;;  %v1412_v8 = vld [vmem:[%s1921_s1 + $0x30] sm:$0xff]   ;;  %v1413_v9 = vld [vmem:[%s1921_s1 + $0x38] sm:$0xff]  }
   0x4   :  { %1312 = vmatprep.subr.bf16.mxu0 %v1407_v1  ;;  %1391 = vmatprep.subr.bf16.mxu1 %v1407_v1  ;;  %v1410_v6 = vld [vmem:[%s1921_s1 + $0x20] sm:$0xff]   ;;  %v1416_v10 = vld [vmem:[%s1922_s0 + $0x8] sm:$0xff]   ;;  %v1418_v12 = vld [vmem:[%s1922_s0 + $0x10] sm:$0xff]  }
   0x5   :  { %1326 = vmatprep.mubr.bf16.mxu0 %v1414_v4  ;;  %1358 = vmatprep.mubr.bf16.mxu1 %v1415_v5  ;;  %v1417_v11 = vld [vmem:[%s1922_s0 + $0x88] sm:$0xff]   ;;  %v1419_v13 = vld [vmem:[%s1922_s0 + $0x90] sm:$0xff]   ;;  %v1420_v14 = vld [vmem:[%s1922_s0 + $0x18] sm:$0xff]  }
   0x6   :  { %v1421_v15 = vld [vmem:[%s1922_s0 + $0x98] sm:$0xff]   ;;  %v1422_v16 = vld [vmem:[%s1922_s0 + $0x20] sm:$0xff]   ;;  %v1424_v18 = vld [vmem:[%s1922_s0 + $0x28] sm:$0xff]  }
   0x7   :  { %1313 = vmatpush3.bf16.msra.mxu0 %v1407_v1  ;;  %1399 = vmatpush3.bf16.msra.mxu1 %v1407_v1  ;;  %v1423_v17 = vld [vmem:[%s1922_s0 + $0xa0] sm:$0xff]   ;;  %v1425_v19 = vld [vmem:[%s1922_s0 + $0xa8] sm:$0xff]   ;;  %v1426_v20 = vld [vmem:[%s1922_s0 + $0x30] sm:$0xff]  }
   0x8   :  { %1314 = vmatprep.subr.bf16.mxu0 %v1408_v2  ;;  %1392 = vmatprep.subr.bf16.mxu1 %v1408_v2  ;;  %v1427_v21 = vld [vmem:[%s1922_s0 + $0xb0] sm:$0xff]   ;;  %v1428_v22 = vld [vmem:[%s1922_s0 + $0x38] sm:$0xff]   ;;  %v1430_v24 = vld [vmem:[%s1922_s0 + $0x40] sm:$0xff]  }
   0x9   :  { %v1429_v23 = vld [vmem:[%s1922_s0 + $0xb8] sm:$0xff]   ;;  %v1431_v25 = vld [vmem:[%s1922_s0 + $0xc0] sm:$0xff]   ;;  %v1432_v26 = vld [vmem:[%s1922_s0 + $0x48] sm:$0xff]  }
   0xa   :  { %v1433_v27 = vld [vmem:[%s1922_s0 + $0xc8] sm:$0xff]   ;;  %v1434_v28 = vld [vmem:[%s1922_s0 + $0x50] sm:$0xff]   ;;  %v1436_v30 = vld [vmem:[%s1922_s0 + $0x58] sm:$0xff]  }
   0xb   :  { %1315 = vmatpush3.bf16.msra.mxu0 %v1408_v2  ;;  %1400 = vmatpush3.bf16.msra.mxu1 %v1408_v2  ;;  %v1435_v29 = vld [vmem:[%s1922_s0 + $0xd0] sm:$0xff]   ;;  %v1437_v31 = vld [vmem:[%s1922_s0 + $0xd8] sm:$0xff]   ;;  %v1438_v32 = vld [vmem:[%s1922_s0 + $0x60] sm:$0xff]  }
   0xc   :  { %1316 = vmatprep.subr.bf16.mxu0 %v1409_v3  ;;  %1393 = vmatprep.subr.bf16.mxu1 %v1409_v3  ;;  %v1439_v33 = vld [vmem:[%s1922_s0 + $0xe0] sm:$0xff]   ;;  %v1440_v34 = vld [vmem:[%s1922_s0 + $0x68] sm:$0xff]   ;;  %v1442_v36 = vld [vmem:[%s1922_s0 + $0x70] sm:$0xff]  }
   0xd   :  { %v1441_v35 = vld [vmem:[%s1922_s0 + $0xe8] sm:$0xff]   ;;  %v1443_v37 = vld [vmem:[%s1922_s0 + $0xf0] sm:$0xff]   ;;  %v1444_v38 = vld [vmem:[%s1922_s0 + $0x78] sm:$0xff]  }
   0xe   :  { %v1445_v39 = vld [vmem:[%s1922_s0 + $0xf8] sm:$0xff]   ;;  %v1594_v40 = vld [vmem:[%s1923_s2] ss:$0 sm:$0xff] }
   0xf   :  { %1317 = vmatpush3.bf16.msra.mxu0 %v1409_v3  ;;  %1401 = vmatpush3.bf16.msra.mxu1 %v1409_v3  ;;  %v1599_v42 = vld [vmem:[%s1924_s3] ss:$0 sm:$0xff] }
  0x10   :  { %1318 = vmatprep.subr.bf16.mxu0 %v1410_v6  ;;  %1394 = vmatprep.subr.bf16.mxu1 %v1410_v6 }
  0x13   :  { %1319 = vmatpush3.bf16.msra.mxu0 %v1410_v6  ;;  %1402 = vmatpush3.bf16.msra.mxu1 %v1410_v6 }
  0x14   :  { %1320 = vmatprep.subr.bf16.mxu0 %v1411_v7  ;;  %1395 = vmatprep.subr.bf16.mxu1 %v1411_v7 }
  0x17   :  { %1321 = vmatpush3.bf16.msra.mxu0 %v1411_v7  ;;  %1403 = vmatpush3.bf16.msra.mxu1 %v1411_v7 }
  0x18   :  { %1322 = vmatprep.subr.bf16.mxu0 %v1412_v8  ;;  %1396 = vmatprep.subr.bf16.mxu1 %v1412_v8 }
  0x1b   :  { %1323 = vmatpush3.bf16.msra.mxu0 %v1412_v8  ;;  %1404 = vmatpush3.bf16.msra.mxu1 %v1412_v8 }
  0x1c   :  { %1324 = vmatprep.subr.bf16.mxu0 %v1413_v9  ;;  %1397 = vmatprep.subr.bf16.mxu1 %v1413_v9 }
  0x1f   :  { %1325 = vmatpush3.bf16.msra.mxu0 %v1413_v9  ;;  %1405 = vmatpush3.bf16.msra.mxu1 %v1413_v9 }
  0x22   :  { %1327 = vmatmul.mubr.bf16.vlgmr.msra.gmra.mrb[0].mxu0 %v1416_v10  ;;  %1359 = vmatmul.mubr.bf16.vlgmr.msra.gmra.mrb[0].mxu1 %v1417_v11 }
  0x23   :  { %1330 = vmatprep.mubr.bf16.mxu0 %v1418_v12  ;;  %1362 = vmatprep.mubr.bf16.mxu1 %v1419_v13 }
  0x2a   :  { %1331 = vmatmul.mubr.bf16.gmra.mrb[4].mxu0 %v1420_v14  ;;  %1363 = vmatmul.mubr.bf16.gmra.mrb[4].mxu1 %v1421_v15 }
  0x2b   :  { %1334 = vmatprep.mubr.bf16.mxu0 %v1422_v16  ;;  %1366 = vmatprep.mubr.bf16.mxu1 %v1423_v17 }
  0x32   :  { %1335 = vmatmul.mubr.bf16.gmra.mrb[8].mxu0 %v1424_v18  ;;  %1367 = vmatmul.mubr.bf16.gmra.mrb[8].mxu1 %v1425_v19 }
  0x33   :  { %1338 = vmatprep.mubr.bf16.mxu0 %v1426_v20  ;;  %1370 = vmatprep.mubr.bf16.mxu1 %v1427_v21 }
  0x3a   :  { %1339 = vmatmul.mubr.bf16.gmra.mrb[12].mxu0 %v1428_v22  ;;  %1371 = vmatmul.mubr.bf16.gmra.mrb[12].mxu1 %v1429_v23 }
  0x3b   :  { %1342 = vmatprep.mubr.bf16.mxu0 %v1430_v24  ;;  %1374 = vmatprep.mubr.bf16.mxu1 %v1431_v25 }
  0x42   :  { %1343 = vmatmul.mubr.bf16.gmra.mrb[16].mxu0 %v1432_v26  ;;  %1375 = vmatmul.mubr.bf16.gmra.mrb[16].mxu1 %v1433_v27 }
  0x43   :  { %1346 = vmatprep.mubr.bf16.mxu0 %v1434_v28  ;;  %1378 = vmatprep.mubr.bf16.mxu1 %v1435_v29 }
  0x4a   :  { %1347 = vmatmul.mubr.bf16.gmra.mrb[20].mxu0 %v1436_v30  ;;  %1379 = vmatmul.mubr.bf16.gmra.mrb[20].mxu1 %v1437_v31 }
  0x4b   :  { %1350 = vmatprep.mubr.bf16.mxu0 %v1438_v32  ;;  %1382 = vmatprep.mubr.bf16.mxu1 %v1439_v33 }
  0x52   :  { %1351 = vmatmul.mubr.bf16.gmra.mrb[24].mxu0 %v1440_v34  ;;  %1383 = vmatmul.mubr.bf16.gmra.mrb[24].mxu1 %v1441_v35 }
  0x53   :  { %1354 = vmatprep.mubr.bf16.mxu0 %v1442_v36  ;;  %1386 = vmatprep.mubr.bf16.mxu1 %v1443_v37 }
  0x5a   :  { %1355 = vmatmul.mubr.bf16.gmra.mrb[28].mxu0 %v1444_v38  ;;  %1387 = vmatmul.mubr.bf16.gmra.mrb[28].mxu1 %v1445_v39 }
  0xf5   :  { %v1328_v41 = vpop.f32.mrb[0].mxu0  ;;  %v1360_v43 = vpop.f32.mrb[0].mxu1 }
  0xf6   :  { %v963_v44 = vmul.f32 %v1328_v41, %v1594_v40  ;;  %v995_v45 = vmul.f32 %v1360_v43, %v1594_v40  ;;  %v504_v46 = vpop.f32.mrb[1].mxu0  ;;  %v632_v47 = vpop.f32.mrb[1].mxu1 }
  0xf7   :  { %v961_v48 = vmul.f32 %v1594_v40, %v504_v46  ;;  %v993_v49 = vmul.f32 %v1594_v40, %v632_v47  ;;  %v1329_v50 = vpop.f32.mrb[2].mxu0  ;;  %v1361_v51 = vpop.f32.mrb[2].mxu1 }
  0xf8   :  { %v1034_v52 = vadd.f32 %v1599_v42, %v963_v44  ;;  %v1066_v53 = vadd.f32 %v1599_v42, %v995_v45  ;;  %v964_v54 = vmul.f32 %v1329_v50, %v1594_v40  ;;  %v996_v55 = vmul.f32 %v1361_v51, %v1594_v40  ;;  %v507_v56 = vpop.f32.mrb[3].mxu0  ;;  %v635_v57 = vpop.f32.mrb[3].mxu1 }
  0xf9   :  { %v1032_v58 = vadd.f32 %v1599_v42, %v961_v48  ;;  %v1064_v59 = vadd.f32 %v1599_v42, %v993_v49  ;;  %v962_v60 = vmul.f32 %v1594_v40, %v507_v56  ;;  %v994_v61 = vmul.f32 %v1594_v40, %v635_v57 }
  0xfa   :  { %v1098_v62 = vmax.f32 %v1034_v52, 0.0  ;;  %v1130_v63 = vmax.f32 %v1066_v53, 0.0  ;;  %v1035_v0 = vadd.f32 %v1599_v42, %v964_v54  ;;  %v1067_v1 = vadd.f32 %v1599_v42, %v996_v55 }
  0xfb   :  { %v1096_v2 = vmax.f32 %v1032_v58, 0.0  ;;  %v1128_v3 = vmax.f32 %v1064_v59, 0.0  ;;  %v1033_v4 = vadd.f32 %v1599_v42, %v962_v60  ;;  %v1065_v5 = vadd.f32 %v1599_v42, %v994_v61 }
  0xfc   :  { %1162 = vst [vmem:[%s1925_s4 + $0x10] sm:$0xff] %v1098_v62  ;;  %1194 = vst [vmem:[%s1925_s4 + $0x110] sm:$0xff] %v1130_v63  ;;  %v1099_v6 = vmax.f32 %v1035_v0, 0.0  ;;  %v1131_v7 = vmax.f32 %v1067_v1, 0.0 }
  0xfd   :  { %1160 = vst [vmem:[%s1925_s4] sm:$0xff] %v1096_v2  ;;  %1192 = vst [vmem:[%s1925_s4 + $0x100] sm:$0xff] %v1128_v3  ;;  %v1097_v8 = vmax.f32 %v1033_v4, 0.0  ;;  %v1129_v9 = vmax.f32 %v1065_v5, 0.0  ;;  %v1332_v10 = vpop.f32.mrb[4].mxu0  ;;  %v1364_v11 = vpop.f32.mrb[4].mxu1 }
  0xfe   :  { %1163 = vst [vmem:[%s1925_s4 + $0x18] sm:$0xff] %v1099_v6  ;;  %1195 = vst [vmem:[%s1925_s4 + $0x118] sm:$0xff] %v1131_v7  ;;  %v967_v12 = vmul.f32 %v1332_v10, %v1594_v40  ;;  %v999_v13 = vmul.f32 %v1364_v11, %v1594_v40  ;;  %v520_v14 = vpop.f32.mrb[5].mxu0  ;;  %v648_v15 = vpop.f32.mrb[5].mxu1 }
  0xff   :  { %1161 = vst [vmem:[%s1925_s4 + $0x8] sm:$0xff] %v1097_v8  ;;  %1193 = vst [vmem:[%s1925_s4 + $0x108] sm:$0xff] %v1129_v9  ;;  %v965_v16 = vmul.f32 %v1594_v40, %v520_v14  ;;  %v997_v17 = vmul.f32 %v1594_v40, %v648_v15  ;;  %v1333_v18 = vpop.f32.mrb[6].mxu0  ;;  %v1365_v19 = vpop.f32.mrb[6].mxu1 }
 0x100   :  { %v1038_v20 = vadd.f32 %v1599_v42, %v967_v12  ;;  %v1070_v21 = vadd.f32 %v1599_v42, %v999_v13  ;;  %v968_v22 = vmul.f32 %v1333_v18, %v1594_v40  ;;  %v1000_v23 = vmul.f32 %v1365_v19, %v1594_v40  ;;  %v523_v24 = vpop.f32.mrb[7].mxu0  ;;  %v651_v25 = vpop.f32.mrb[7].mxu1 }
 0x101   :  { %v1036_v26 = vadd.f32 %v1599_v42, %v965_v16  ;;  %v1068_v27 = vadd.f32 %v1599_v42, %v997_v17  ;;  %v966_v28 = vmul.f32 %v1594_v40, %v523_v24  ;;  %v998_v29 = vmul.f32 %v1594_v40, %v651_v25 }
 0x102   :  { %v1102_v30 = vmax.f32 %v1038_v20, 0.0  ;;  %v1134_v31 = vmax.f32 %v1070_v21, 0.0  ;;  %v1039_v32 = vadd.f32 %v1599_v42, %v968_v22  ;;  %v1071_v33 = vadd.f32 %v1599_v42, %v1000_v23 }
 0x103   :  { %v1100_v34 = vmax.f32 %v1036_v26, 0.0  ;;  %v1132_v35 = vmax.f32 %v1068_v27, 0.0  ;;  %v1037_v36 = vadd.f32 %v1599_v42, %v966_v28  ;;  %v1069_v37 = vadd.f32 %v1599_v42, %v998_v29 }
 0x104   :  { %1166 = vst [vmem:[%s1925_s4 + $0x30] sm:$0xff] %v1102_v30  ;;  %1198 = vst [vmem:[%s1925_s4 + $0x130] sm:$0xff] %v1134_v31  ;;  %v1103_v38 = vmax.f32 %v1039_v32, 0.0  ;;  %v1135_v39 = vmax.f32 %v1071_v33, 0.0 }
 0x105   :  { %1164 = vst [vmem:[%s1925_s4 + $0x20] sm:$0xff] %v1100_v34  ;;  %1196 = vst [vmem:[%s1925_s4 + $0x120] sm:$0xff] %v1132_v35  ;;  %v1101_v41 = vmax.f32 %v1037_v36, 0.0  ;;  %v1133_v43 = vmax.f32 %v1069_v37, 0.0  ;;  %v1336_v44 = vpop.f32.mrb[8].mxu0  ;;  %v1368_v45 = vpop.f32.mrb[8].mxu1 }
 0x106   :  { %1167 = vst [vmem:[%s1925_s4 + $0x38] sm:$0xff] %v1103_v38  ;;  %1199 = vst [vmem:[%s1925_s4 + $0x138] sm:$0xff] %v1135_v39  ;;  %v971_v46 = vmul.f32 %v1336_v44, %v1594_v40  ;;  %v1003_v47 = vmul.f32 %v1368_v45, %v1594_v40  ;;  %v536_v48 = vpop.f32.mrb[9].mxu0  ;;  %v664_v49 = vpop.f32.mrb[9].mxu1 }
 0x107   :  { %1165 = vst [vmem:[%s1925_s4 + $0x28] sm:$0xff] %v1101_v41  ;;  %1197 = vst [vmem:[%s1925_s4 + $0x128] sm:$0xff] %v1133_v43  ;;  %v969_v50 = vmul.f32 %v1594_v40, %v536_v48  ;;  %v1001_v51 = vmul.f32 %v1594_v40, %v664_v49  ;;  %v1337_v52 = vpop.f32.mrb[10].mxu0  ;;  %v1369_v53 = vpop.f32.mrb[10].mxu1 }
 0x108   :  { %v1042_v54 = vadd.f32 %v1599_v42, %v971_v46  ;;  %v1074_v55 = vadd.f32 %v1599_v42, %v1003_v47  ;;  %v972_v56 = vmul.f32 %v1337_v52, %v1594_v40  ;;  %v1004_v57 = vmul.f32 %v1369_v53, %v1594_v40  ;;  %v539_v58 = vpop.f32.mrb[11].mxu0  ;;  %v667_v59 = vpop.f32.mrb[11].mxu1 }
 0x109   :  { %v1040_v60 = vadd.f32 %v1599_v42, %v969_v50  ;;  %v1072_v61 = vadd.f32 %v1599_v42, %v1001_v51  ;;  %v970_v62 = vmul.f32 %v1594_v40, %v539_v58  ;;  %v1002_v63 = vmul.f32 %v1594_v40, %v667_v59 }
 0x10a   :  { %v1106_v0 = vmax.f32 %v1042_v54, 0.0  ;;  %v1138_v1 = vmax.f32 %v1074_v55, 0.0  ;;  %v1043_v2 = vadd.f32 %v1599_v42, %v972_v56  ;;  %v1075_v3 = vadd.f32 %v1599_v42, %v1004_v57 }
 0x10b   :  { %v1104_v4 = vmax.f32 %v1040_v60, 0.0  ;;  %v1136_v5 = vmax.f32 %v1072_v61, 0.0  ;;  %v1041_v6 = vadd.f32 %v1599_v42, %v970_v62  ;;  %v1073_v7 = vadd.f32 %v1599_v42, %v1002_v63 }
 0x10c   :  { %1170 = vst [vmem:[%s1925_s4 + $0x50] sm:$0xff] %v1106_v0  ;;  %1202 = vst [vmem:[%s1925_s4 + $0x150] sm:$0xff] %v1138_v1  ;;  %v1107_v8 = vmax.f32 %v1043_v2, 0.0  ;;  %v1139_v9 = vmax.f32 %v1075_v3, 0.0 }
 0x10d   :  { %1168 = vst [vmem:[%s1925_s4 + $0x40] sm:$0xff] %v1104_v4  ;;  %1200 = vst [vmem:[%s1925_s4 + $0x140] sm:$0xff] %v1136_v5  ;;  %v1105_v10 = vmax.f32 %v1041_v6, 0.0  ;;  %v1137_v11 = vmax.f32 %v1073_v7, 0.0  ;;  %v1340_v12 = vpop.f32.mrb[12].mxu0  ;;  %v1372_v13 = vpop.f32.mrb[12].mxu1 }
 0x10e   :  { %1171 = vst [vmem:[%s1925_s4 + $0x58] sm:$0xff] %v1107_v8  ;;  %1203 = vst [vmem:[%s1925_s4 + $0x158] sm:$0xff] %v1139_v9  ;;  %v975_v14 = vmul.f32 %v1340_v12, %v1594_v40  ;;  %v1007_v15 = vmul.f32 %v1372_v13, %v1594_v40  ;;  %v552_v16 = vpop.f32.mrb[13].mxu0  ;;  %v680_v17 = vpop.f32.mrb[13].mxu1 }
 0x10f   :  { %1169 = vst [vmem:[%s1925_s4 + $0x48] sm:$0xff] %v1105_v10  ;;  %1201 = vst [vmem:[%s1925_s4 + $0x148] sm:$0xff] %v1137_v11  ;;  %v973_v18 = vmul.f32 %v1594_v40, %v552_v16  ;;  %v1005_v19 = vmul.f32 %v1594_v40, %v680_v17  ;;  %v1341_v20 = vpop.f32.mrb[14].mxu0  ;;  %v1373_v21 = vpop.f32.mrb[14].mxu1 }
 0x110   :  { %v1046_v22 = vadd.f32 %v1599_v42, %v975_v14  ;;  %v1078_v23 = vadd.f32 %v1599_v42, %v1007_v15  ;;  %v976_v24 = vmul.f32 %v1341_v20, %v1594_v40  ;;  %v1008_v25 = vmul.f32 %v1373_v21, %v1594_v40  ;;  %v555_v26 = vpop.f32.mrb[15].mxu0  ;;  %v683_v27 = vpop.f32.mrb[15].mxu1 }
 0x111   :  { %v1044_v28 = vadd.f32 %v1599_v42, %v973_v18  ;;  %v1076_v29 = vadd.f32 %v1599_v42, %v1005_v19  ;;  %v974_v30 = vmul.f32 %v1594_v40, %v555_v26  ;;  %v1006_v31 = vmul.f32 %v1594_v40, %v683_v27 }
 0x112   :  { %v1110_v32 = vmax.f32 %v1046_v22, 0.0  ;;  %v1142_v33 = vmax.f32 %v1078_v23, 0.0  ;;  %v1047_v34 = vadd.f32 %v1599_v42, %v976_v24  ;;  %v1079_v35 = vadd.f32 %v1599_v42, %v1008_v25 }
 0x113   :  { %v1108_v36 = vmax.f32 %v1044_v28, 0.0  ;;  %v1140_v37 = vmax.f32 %v1076_v29, 0.0  ;;  %v1045_v38 = vadd.f32 %v1599_v42, %v974_v30  ;;  %v1077_v39 = vadd.f32 %v1599_v42, %v1006_v31 }
 0x114   :  { %1174 = vst [vmem:[%s1925_s4 + $0x70] sm:$0xff] %v1110_v32  ;;  %1206 = vst [vmem:[%s1925_s4 + $0x170] sm:$0xff] %v1142_v33  ;;  %v1111_v41 = vmax.f32 %v1047_v34, 0.0  ;;  %v1143_v43 = vmax.f32 %v1079_v35, 0.0 }
 0x115   :  { %1172 = vst [vmem:[%s1925_s4 + $0x60] sm:$0xff] %v1108_v36  ;;  %1204 = vst [vmem:[%s1925_s4 + $0x160] sm:$0xff] %v1140_v37  ;;  %v1109_v44 = vmax.f32 %v1045_v38, 0.0  ;;  %v1141_v45 = vmax.f32 %v1077_v39, 0.0  ;;  %v1344_v46 = vpop.f32.mrb[16].mxu0  ;;  %v1376_v47 = vpop.f32.mrb[16].mxu1 }
 0x116   :  { %1175 = vst [vmem:[%s1925_s4 + $0x78] sm:$0xff] %v1111_v41  ;;  %1207 = vst [vmem:[%s1925_s4 + $0x178] sm:$0xff] %v1143_v43  ;;  %v979_v48 = vmul.f32 %v1344_v46, %v1594_v40  ;;  %v1011_v49 = vmul.f32 %v1376_v47, %v1594_v40  ;;  %v568_v50 = vpop.f32.mrb[17].mxu0  ;;  %v696_v51 = vpop.f32.mrb[17].mxu1 }
 0x117   :  { %1173 = vst [vmem:[%s1925_s4 + $0x68] sm:$0xff] %v1109_v44  ;;  %1205 = vst [vmem:[%s1925_s4 + $0x168] sm:$0xff] %v1141_v45  ;;  %v977_v52 = vmul.f32 %v1594_v40, %v568_v50  ;;  %v1009_v53 = vmul.f32 %v1594_v40, %v696_v51  ;;  %v1345_v54 = vpop.f32.mrb[18].mxu0  ;;  %v1377_v55 = vpop.f32.mrb[18].mxu1 }
 0x118   :  { %v1050_v56 = vadd.f32 %v1599_v42, %v979_v48  ;;  %v1082_v57 = vadd.f32 %v1599_v42, %v1011_v49  ;;  %v980_v58 = vmul.f32 %v1345_v54, %v1594_v40  ;;  %v1012_v59 = vmul.f32 %v1377_v55, %v1594_v40  ;;  %v571_v60 = vpop.f32.mrb[19].mxu0  ;;  %v699_v61 = vpop.f32.mrb[19].mxu1 }
 0x119   :  { %v1048_v62 = vadd.f32 %v1599_v42, %v977_v52  ;;  %v1080_v63 = vadd.f32 %v1599_v42, %v1009_v53  ;;  %v978_v0 = vmul.f32 %v1594_v40, %v571_v60  ;;  %v1010_v1 = vmul.f32 %v1594_v40, %v699_v61 }
 0x11a   :  { %v1114_v2 = vmax.f32 %v1050_v56, 0.0  ;;  %v1146_v3 = vmax.f32 %v1082_v57, 0.0  ;;  %v1051_v4 = vadd.f32 %v1599_v42, %v980_v58  ;;  %v1083_v5 = vadd.f32 %v1599_v42, %v1012_v59 }
 0x11b   :  { %v1112_v6 = vmax.f32 %v1048_v62, 0.0  ;;  %v1144_v7 = vmax.f32 %v1080_v63, 0.0  ;;  %v1049_v8 = vadd.f32 %v1599_v42, %v978_v0  ;;  %v1081_v9 = vadd.f32 %v1599_v42, %v1010_v1 }
 0x11c   :  { %1178 = vst [vmem:[%s1925_s4 + $0x90] sm:$0xff] %v1114_v2  ;;  %1210 = vst [vmem:[%s1925_s4 + $0x190] sm:$0xff] %v1146_v3  ;;  %v1115_v10 = vmax.f32 %v1051_v4, 0.0  ;;  %v1147_v11 = vmax.f32 %v1083_v5, 0.0 }
 0x11d   :  { %1176 = vst [vmem:[%s1925_s4 + $0x80] sm:$0xff] %v1112_v6  ;;  %1208 = vst [vmem:[%s1925_s4 + $0x180] sm:$0xff] %v1144_v7  ;;  %v1113_v12 = vmax.f32 %v1049_v8, 0.0  ;;  %v1145_v13 = vmax.f32 %v1081_v9, 0.0  ;;  %v1348_v14 = vpop.f32.mrb[20].mxu0  ;;  %v1380_v15 = vpop.f32.mrb[20].mxu1 }
 0x11e   :  { %1179 = vst [vmem:[%s1925_s4 + $0x98] sm:$0xff] %v1115_v10  ;;  %1211 = vst [vmem:[%s1925_s4 + $0x198] sm:$0xff] %v1147_v11  ;;  %v983_v16 = vmul.f32 %v1348_v14, %v1594_v40  ;;  %v1015_v17 = vmul.f32 %v1380_v15, %v1594_v40  ;;  %v584_v18 = vpop.f32.mrb[21].mxu0  ;;  %v712_v19 = vpop.f32.mrb[21].mxu1 }
 0x11f   :  { %1177 = vst [vmem:[%s1925_s4 + $0x88] sm:$0xff] %v1113_v12  ;;  %1209 = vst [vmem:[%s1925_s4 + $0x188] sm:$0xff] %v1145_v13  ;;  %v981_v20 = vmul.f32 %v1594_v40, %v584_v18  ;;  %v1013_v21 = vmul.f32 %v1594_v40, %v712_v19  ;;  %v1349_v22 = vpop.f32.mrb[22].mxu0  ;;  %v1381_v23 = vpop.f32.mrb[22].mxu1 }
 0x120   :  { %v1054_v24 = vadd.f32 %v1599_v42, %v983_v16  ;;  %v1086_v25 = vadd.f32 %v1599_v42, %v1015_v17  ;;  %v984_v26 = vmul.f32 %v1349_v22, %v1594_v40  ;;  %v1016_v27 = vmul.f32 %v1381_v23, %v1594_v40  ;;  %v587_v28 = vpop.f32.mrb[23].mxu0  ;;  %v715_v29 = vpop.f32.mrb[23].mxu1 }
 0x121   :  { %v1052_v30 = vadd.f32 %v1599_v42, %v981_v20  ;;  %v1084_v31 = vadd.f32 %v1599_v42, %v1013_v21  ;;  %v982_v32 = vmul.f32 %v1594_v40, %v587_v28  ;;  %v1014_v33 = vmul.f32 %v1594_v40, %v715_v29 }
 0x122   :  { %v1118_v34 = vmax.f32 %v1054_v24, 0.0  ;;  %v1150_v35 = vmax.f32 %v1086_v25, 0.0  ;;  %v1055_v36 = vadd.f32 %v1599_v42, %v984_v26  ;;  %v1087_v37 = vadd.f32 %v1599_v42, %v1016_v27 }
 0x123   :  { %v1116_v38 = vmax.f32 %v1052_v30, 0.0  ;;  %v1148_v39 = vmax.f32 %v1084_v31, 0.0  ;;  %v1053_v41 = vadd.f32 %v1599_v42, %v982_v32  ;;  %v1085_v43 = vadd.f32 %v1599_v42, %v1014_v33 }
 0x124   :  { %1182 = vst [vmem:[%s1925_s4 + $0xb0] sm:$0xff] %v1118_v34  ;;  %1214 = vst [vmem:[%s1925_s4 + $0x1b0] sm:$0xff] %v1150_v35  ;;  %v1119_v44 = vmax.f32 %v1055_v36, 0.0  ;;  %v1151_v45 = vmax.f32 %v1087_v37, 0.0 }
 0x125   :  { %1180 = vst [vmem:[%s1925_s4 + $0xa0] sm:$0xff] %v1116_v38  ;;  %1212 = vst [vmem:[%s1925_s4 + $0x1a0] sm:$0xff] %v1148_v39  ;;  %v1117_v46 = vmax.f32 %v1053_v41, 0.0  ;;  %v1149_v47 = vmax.f32 %v1085_v43, 0.0  ;;  %v1352_v48 = vpop.f32.mrb[24].mxu0  ;;  %v1384_v49 = vpop.f32.mrb[24].mxu1 }
 0x126   :  { %1183 = vst [vmem:[%s1925_s4 + $0xb8] sm:$0xff] %v1119_v44  ;;  %1215 = vst [vmem:[%s1925_s4 + $0x1b8] sm:$0xff] %v1151_v45  ;;  %v987_v50 = vmul.f32 %v1352_v48, %v1594_v40  ;;  %v1019_v51 = vmul.f32 %v1384_v49, %v1594_v40  ;;  %v600_v52 = vpop.f32.mrb[25].mxu0  ;;  %v728_v53 = vpop.f32.mrb[25].mxu1 }
 0x127   :  { %1181 = vst [vmem:[%s1925_s4 + $0xa8] sm:$0xff] %v1117_v46  ;;  %1213 = vst [vmem:[%s1925_s4 + $0x1a8] sm:$0xff] %v1149_v47  ;;  %v985_v54 = vmul.f32 %v1594_v40, %v600_v52  ;;  %v1017_v55 = vmul.f32 %v1594_v40, %v728_v53  ;;  %v1353_v56 = vpop.f32.mrb[26].mxu0  ;;  %v1385_v57 = vpop.f32.mrb[26].mxu1 }
 0x128   :  { %v1058_v58 = vadd.f32 %v1599_v42, %v987_v50  ;;  %v1090_v59 = vadd.f32 %v1599_v42, %v1019_v51  ;;  %v988_v60 = vmul.f32 %v1353_v56, %v1594_v40  ;;  %v1020_v61 = vmul.f32 %v1385_v57, %v1594_v40  ;;  %v603_v62 = vpop.f32.mrb[27].mxu0  ;;  %v731_v63 = vpop.f32.mrb[27].mxu1 }
 0x129   :  { %v1056_v0 = vadd.f32 %v1599_v42, %v985_v54  ;;  %v1088_v1 = vadd.f32 %v1599_v42, %v1017_v55  ;;  %v986_v2 = vmul.f32 %v1594_v40, %v603_v62  ;;  %v1018_v3 = vmul.f32 %v1594_v40, %v731_v63 }
 0x12a   :  { %v1122_v4 = vmax.f32 %v1058_v58, 0.0  ;;  %v1154_v5 = vmax.f32 %v1090_v59, 0.0  ;;  %v1059_v6 = vadd.f32 %v1599_v42, %v988_v60  ;;  %v1091_v7 = vadd.f32 %v1599_v42, %v1020_v61 }
 0x12b   :  { %v1120_v8 = vmax.f32 %v1056_v0, 0.0  ;;  %v1152_v9 = vmax.f32 %v1088_v1, 0.0  ;;  %v1057_v10 = vadd.f32 %v1599_v42, %v986_v2  ;;  %v1089_v11 = vadd.f32 %v1599_v42, %v1018_v3 }
 0x12c   :  { %1186 = vst [vmem:[%s1925_s4 + $0xd0] sm:$0xff] %v1122_v4  ;;  %1218 = vst [vmem:[%s1925_s4 + $0x1d0] sm:$0xff] %v1154_v5  ;;  %v1123_v12 = vmax.f32 %v1059_v6, 0.0  ;;  %v1155_v13 = vmax.f32 %v1091_v7, 0.0 }
 0x12d   :  { %1184 = vst [vmem:[%s1925_s4 + $0xc0] sm:$0xff] %v1120_v8  ;;  %1216 = vst [vmem:[%s1925_s4 + $0x1c0] sm:$0xff] %v1152_v9  ;;  %v1121_v14 = vmax.f32 %v1057_v10, 0.0  ;;  %v1153_v15 = vmax.f32 %v1089_v11, 0.0  ;;  %v1356_v16 = vpop.f32.mrb[28].mxu0  ;;  %v1388_v17 = vpop.f32.mrb[28].mxu1 }
 0x12e   :  { %1187 = vst [vmem:[%s1925_s4 + $0xd8] sm:$0xff] %v1123_v12  ;;  %1219 = vst [vmem:[%s1925_s4 + $0x1d8] sm:$0xff] %v1155_v13  ;;  %v991_v18 = vmul.f32 %v1356_v16, %v1594_v40  ;;  %v1023_v19 = vmul.f32 %v1388_v17, %v1594_v40  ;;  %v616_v20 = vpop.f32.mrb[29].mxu0  ;;  %v744_v21 = vpop.f32.mrb[29].mxu1 }
 0x12f   :  { %1185 = vst [vmem:[%s1925_s4 + $0xc8] sm:$0xff] %v1121_v14  ;;  %1217 = vst [vmem:[%s1925_s4 + $0x1c8] sm:$0xff] %v1153_v15  ;;  %v989_v22 = vmul.f32 %v1594_v40, %v616_v20  ;;  %v1021_v23 = vmul.f32 %v1594_v40, %v744_v21  ;;  %v1357_v24 = vpop.f32.mrb[30].mxu0  ;;  %v1389_v25 = vpop.f32.mrb[30].mxu1 }
 0x130   :  { %v1062_v26 = vadd.f32 %v1599_v42, %v991_v18  ;;  %v1094_v27 = vadd.f32 %v1599_v42, %v1023_v19  ;;  %v992_v28 = vmul.f32 %v1357_v24, %v1594_v40  ;;  %v1024_v29 = vmul.f32 %v1389_v25, %v1594_v40  ;;  %v619_v30 = vpop.f32.mrb[31].mxu0  ;;  %v747_v31 = vpop.f32.mrb[31].mxu1 }
 0x131   :  { %v1060_v32 = vadd.f32 %v1599_v42, %v989_v22  ;;  %v1092_v33 = vadd.f32 %v1599_v42, %v1021_v23  ;;  %v990_v34 = vmul.f32 %v1594_v40, %v619_v30  ;;  %v1022_v35 = vmul.f32 %v1594_v40, %v747_v31 }
 0x132   :  { %v1126_v36 = vmax.f32 %v1062_v26, 0.0  ;;  %v1158_v37 = vmax.f32 %v1094_v27, 0.0  ;;  %v1063_v38 = vadd.f32 %v1599_v42, %v992_v28  ;;  %v1095_v39 = vadd.f32 %v1599_v42, %v1024_v29 }
 0x133   :  { %v1124_v41 = vmax.f32 %v1060_v32, 0.0  ;;  %v1156_v43 = vmax.f32 %v1092_v33, 0.0  ;;  %v1061_v44 = vadd.f32 %v1599_v42, %v990_v34  ;;  %v1093_v45 = vadd.f32 %v1599_v42, %v1022_v35 }
 0x134   :  { %1190 = vst [vmem:[%s1925_s4 + $0xf0] sm:$0xff] %v1126_v36  ;;  %1222 = vst [vmem:[%s1925_s4 + $0x1f0] sm:$0xff] %v1158_v37  ;;  %v1127_v40 = vmax.f32 %v1063_v38, 0.0  ;;  %v1159_v46 = vmax.f32 %v1095_v39, 0.0 }
 0x135   :  { %1188 = vst [vmem:[%s1925_s4 + $0xe0] sm:$0xff] %v1124_v41  ;;  %1220 = vst [vmem:[%s1925_s4 + $0x1e0] sm:$0xff] %v1156_v43  ;;  %v1125_v47 = vmax.f32 %v1061_v44, 0.0  ;;  %v1157_v42 = vmax.f32 %v1093_v45, 0.0 }
 0x136   :  { %1191 = vst [vmem:[%s1925_s4 + $0xf8] sm:$0xff] %v1127_v40  ;;  %1223 = vst [vmem:[%s1925_s4 + $0x1f8] sm:$0xff] %v1159_v46 }
 0x137   :  { %1189 = vst [vmem:[%s1925_s4 + $0xe8] sm:$0xff] %v1125_v47  ;;  %1221 = vst [vmem:[%s1925_s4 + $0x1e8] sm:$0xff] %v1157_v42 }

// kernel: bottleneck_forward.6
= control target key start
LH: loop header
LB: loop body
LE: loop exit
PB: predicated region body
PF: predicated region fallthrough
CT: control target
= control target key end

     0   :  { %s1857_s1 = inlined_call_operand.vmem [shape: bf16[128,128], index: 1, kind: input, shape index: {}]   ;;  %s1858_s0 = inlined_call_operand.vmem [shape: bf16[512,128], index: 0, kind: input, shape index: {}]   ;;  %s1859_s2 = inlined_call_operand.vmem [shape: f32[1,128], index: 2, kind: input, shape index: {}]   ;;  %s1860_s3 = inlined_call_operand.vmem [shape: f32[1,128], index: 3, kind: input, shape index: {}]   ;;  %s1861_s4 = inlined_call_operand.vmem [shape: f32[512,128], index: 4, kind: output, shape index: {}]  }
   0x1   :  { %v1342_v0 = vld [vmem:[%s1857_s1] sm:$0xff]   ;;  %v1343_v1 = vld [vmem:[%s1857_s1 + $0x8] sm:$0xff]   ;;  %v1344_v2 = vld [vmem:[%s1857_s1 + $0x10] sm:$0xff]  }
   0x2   :  { %1246 = vmatprep.subr.bf16.mxu0 %v1342_v0  ;;  %1326 = vmatprep.subr.bf16.mxu1 %v1342_v0  ;;  %v1345_v3 = vld [vmem:[%s1857_s1 + $0x18] sm:$0xff]   ;;  %v1350_v4 = vld [vmem:[%s1858_s0] sm:$0xff]   ;;  %v1347_v7 = vld [vmem:[%s1857_s1 + $0x28] sm:$0xff]  }
   0x3   :  { %1247 = vmatpush3.bf16.msra.mxu0 %v1342_v0  ;;  %1334 = vmatpush3.bf16.msra.mxu1 %v1342_v0  ;;  %v1351_v5 = vld [vmem:[%s1858_s0 + $0x80] sm:$0xff]   ;;  %v1348_v8 = vld [vmem:[%s1857_s1 + $0x30] sm:$0xff]   ;;  %v1349_v9 = vld [vmem:[%s1857_s1 + $0x38] sm:$0xff]  }
   0x4   :  { %1248 = vmatprep.subr.bf16.mxu0 %v1343_v1  ;;  %1327 = vmatprep.subr.bf16.mxu1 %v1343_v1  ;;  %v1346_v6 = vld [vmem:[%s1857_s1 + $0x20] sm:$0xff]   ;;  %v1352_v10 = vld [vmem:[%s1858_s0 + $0x8] sm:$0xff]   ;;  %v1354_v12 = vld [vmem:[%s1858_s0 + $0x10] sm:$0xff]  }
   0x5   :  { %1262 = vmatprep.mubr.bf16.mxu0 %v1350_v4  ;;  %1294 = vmatprep.mubr.bf16.mxu1 %v1351_v5  ;;  %v1353_v11 = vld [vmem:[%s1858_s0 + $0x88] sm:$0xff]   ;;  %v1355_v13 = vld [vmem:[%s1858_s0 + $0x90] sm:$0xff]   ;;  %v1356_v14 = vld [vmem:[%s1858_s0 + $0x18] sm:$0xff]  }
   0x6   :  { %v1357_v15 = vld [vmem:[%s1858_s0 + $0x98] sm:$0xff]   ;;  %v1358_v16 = vld [vmem:[%s1858_s0 + $0x20] sm:$0xff]   ;;  %v1360_v18 = vld [vmem:[%s1858_s0 + $0x28] sm:$0xff]  }
   0x7   :  { %1249 = vmatpush3.bf16.msra.mxu0 %v1343_v1  ;;  %1335 = vmatpush3.bf16.msra.mxu1 %v1343_v1  ;;  %v1359_v17 = vld [vmem:[%s1858_s0 + $0xa0] sm:$0xff]   ;;  %v1361_v19 = vld [vmem:[%s1858_s0 + $0xa8] sm:$0xff]   ;;  %v1362_v20 = vld [vmem:[%s1858_s0 + $0x30] sm:$0xff]  }
   0x8   :  { %1250 = vmatprep.subr.bf16.mxu0 %v1344_v2  ;;  %1328 = vmatprep.subr.bf16.mxu1 %v1344_v2  ;;  %v1363_v21 = vld [vmem:[%s1858_s0 + $0xb0] sm:$0xff]   ;;  %v1364_v22 = vld [vmem:[%s1858_s0 + $0x38] sm:$0xff]   ;;  %v1366_v24 = vld [vmem:[%s1858_s0 + $0x40] sm:$0xff]  }
   0x9   :  { %v1365_v23 = vld [vmem:[%s1858_s0 + $0xb8] sm:$0xff]   ;;  %v1367_v25 = vld [vmem:[%s1858_s0 + $0xc0] sm:$0xff]   ;;  %v1368_v26 = vld [vmem:[%s1858_s0 + $0x48] sm:$0xff]  }
   0xa   :  { %v1369_v27 = vld [vmem:[%s1858_s0 + $0xc8] sm:$0xff]   ;;  %v1370_v28 = vld [vmem:[%s1858_s0 + $0x50] sm:$0xff]   ;;  %v1372_v30 = vld [vmem:[%s1858_s0 + $0x58] sm:$0xff]  }
   0xb   :  { %1251 = vmatpush3.bf16.msra.mxu0 %v1344_v2  ;;  %1336 = vmatpush3.bf16.msra.mxu1 %v1344_v2  ;;  %v1371_v29 = vld [vmem:[%s1858_s0 + $0xd0] sm:$0xff]   ;;  %v1373_v31 = vld [vmem:[%s1858_s0 + $0xd8] sm:$0xff]   ;;  %v1374_v32 = vld [vmem:[%s1858_s0 + $0x60] sm:$0xff]  }
   0xc   :  { %1252 = vmatprep.subr.bf16.mxu0 %v1345_v3  ;;  %1329 = vmatprep.subr.bf16.mxu1 %v1345_v3  ;;  %v1375_v33 = vld [vmem:[%s1858_s0 + $0xe0] sm:$0xff]   ;;  %v1376_v34 = vld [vmem:[%s1858_s0 + $0x68] sm:$0xff]   ;;  %v1378_v36 = vld [vmem:[%s1858_s0 + $0x70] sm:$0xff]  }
   0xd   :  { %v1377_v35 = vld [vmem:[%s1858_s0 + $0xe8] sm:$0xff]   ;;  %v1379_v37 = vld [vmem:[%s1858_s0 + $0xf0] sm:$0xff]   ;;  %v1380_v38 = vld [vmem:[%s1858_s0 + $0x78] sm:$0xff]  }
   0xe   :  { %v1381_v39 = vld [vmem:[%s1858_s0 + $0xf8] sm:$0xff]   ;;  %v1530_v40 = vld [vmem:[%s1859_s2] ss:$0 sm:$0xff] }
   0xf   :  { %1253 = vmatpush3.bf16.msra.mxu0 %v1345_v3  ;;  %1337 = vmatpush3.bf16.msra.mxu1 %v1345_v3  ;;  %v1535_v42 = vld [vmem:[%s1860_s3] ss:$0 sm:$0xff] }
  0x10   :  { %1254 = vmatprep.subr.bf16.mxu0 %v1346_v6  ;;  %1330 = vmatprep.subr.bf16.mxu1 %v1346_v6 }
  0x13   :  { %1255 = vmatpush3.bf16.msra.mxu0 %v1346_v6  ;;  %1338 = vmatpush3.bf16.msra.mxu1 %v1346_v6 }
  0x14   :  { %1256 = vmatprep.subr.bf16.mxu0 %v1347_v7  ;;  %1331 = vmatprep.subr.bf16.mxu1 %v1347_v7 }
  0x17   :  { %1257 = vmatpush3.bf16.msra.mxu0 %v1347_v7  ;;  %1339 = vmatpush3.bf16.msra.mxu1 %v1347_v7 }
  0x18   :  { %1258 = vmatprep.subr.bf16.mxu0 %v1348_v8  ;;  %1332 = vmatprep.subr.bf16.mxu1 %v1348_v8 }
  0x1b   :  { %1259 = vmatpush3.bf16.msra.mxu0 %v1348_v8  ;;  %1340 = vmatpush3.bf16.msra.mxu1 %v1348_v8 }
  0x1c   :  { %1260 = vmatprep.subr.bf16.mxu0 %v1349_v9  ;;  %1333 = vmatprep.subr.bf16.mxu1 %v1349_v9 }
  0x1f   :  { %1261 = vmatpush3.bf16.msra.mxu0 %v1349_v9  ;;  %1341 = vmatpush3.bf16.msra.mxu1 %v1349_v9 }
  0x22   :  { %1263 = vmatmul.mubr.bf16.vlgmr.msra.gmra.mrb[0].mxu0 %v1352_v10  ;;  %1295 = vmatmul.mubr.bf16.vlgmr.msra.gmra.mrb[0].mxu1 %v1353_v11 }
  0x23   :  { %1266 = vmatprep.mubr.bf16.mxu0 %v1354_v12  ;;  %1298 = vmatprep.mubr.bf16.mxu1 %v1355_v13 }
  0x2a   :  { %1267 = vmatmul.mubr.bf16.gmra.mrb[4].mxu0 %v1356_v14  ;;  %1299 = vmatmul.mubr.bf16.gmra.mrb[4].mxu1 %v1357_v15 }
  0x2b   :  { %1270 = vmatprep.mubr.bf16.mxu0 %v1358_v16  ;;  %1302 = vmatprep.mubr.bf16.mxu1 %v1359_v17 }
  0x32   :  { %1271 = vmatmul.mubr.bf16.gmra.mrb[8].mxu0 %v1360_v18  ;;  %1303 = vmatmul.mubr.bf16.gmra.mrb[8].mxu1 %v1361_v19 }
  0x33   :  { %1274 = vmatprep.mubr.bf16.mxu0 %v1362_v20  ;;  %1306 = vmatprep.mubr.bf16.mxu1 %v1363_v21 }
  0x3a   :  { %1275 = vmatmul.mubr.bf16.gmra.mrb[12].mxu0 %v1364_v22  ;;  %1307 = vmatmul.mubr.bf16.gmra.mrb[12].mxu1 %v1365_v23 }
  0x3b   :  { %1278 = vmatprep.mubr.bf16.mxu0 %v1366_v24  ;;  %1310 = vmatprep.mubr.bf16.mxu1 %v1367_v25 }
  0x42   :  { %1279 = vmatmul.mubr.bf16.gmra.mrb[16].mxu0 %v1368_v26  ;;  %1311 = vmatmul.mubr.bf16.gmra.mrb[16].mxu1 %v1369_v27 }
  0x43   :  { %1282 = vmatprep.mubr.bf16.mxu0 %v1370_v28  ;;  %1314 = vmatprep.mubr.bf16.mxu1 %v1371_v29 }
  0x4a   :  { %1283 = vmatmul.mubr.bf16.gmra.mrb[20].mxu0 %v1372_v30  ;;  %1315 = vmatmul.mubr.bf16.gmra.mrb[20].mxu1 %v1373_v31 }
  0x4b   :  { %1286 = vmatprep.mubr.bf16.mxu0 %v1374_v32  ;;  %1318 = vmatprep.mubr.bf16.mxu1 %v1375_v33 }
  0x52   :  { %1287 = vmatmul.mubr.bf16.gmra.mrb[24].mxu0 %v1376_v34  ;;  %1319 = vmatmul.mubr.bf16.gmra.mrb[24].mxu1 %v1377_v35 }
  0x53   :  { %1290 = vmatprep.mubr.bf16.mxu0 %v1378_v36  ;;  %1322 = vmatprep.mubr.bf16.mxu1 %v1379_v37 }
  0x5a   :  { %1291 = vmatmul.mubr.bf16.gmra.mrb[28].mxu0 %v1380_v38  ;;  %1323 = vmatmul.mubr.bf16.gmra.mrb[28].mxu1 %v1381_v39 }
  0xf5   :  { %v1264_v41 = vpop.f32.mrb[0].mxu0  ;;  %v1296_v43 = vpop.f32.mrb[0].mxu1 }
  0xf6   :  { %v963_v44 = vmul.f32 %v1264_v41, %v1530_v40  ;;  %v995_v45 = vmul.f32 %v1296_v43, %v1530_v40  ;;  %v504_v46 = vpop.f32.mrb[1].mxu0  ;;  %v632_v47 = vpop.f32.mrb[1].mxu1 }
  0xf7   :  { %v961_v48 = vmul.f32 %v1530_v40, %v504_v46  ;;  %v993_v49 = vmul.f32 %v1530_v40, %v632_v47  ;;  %v1265_v50 = vpop.f32.mrb[2].mxu0  ;;  %v1297_v51 = vpop.f32.mrb[2].mxu1 }
  0xf8   :  { %v1034_v52 = vadd.f32 %v1535_v42, %v963_v44  ;;  %v1066_v53 = vadd.f32 %v1535_v42, %v995_v45  ;;  %v964_v54 = vmul.f32 %v1265_v50, %v1530_v40  ;;  %v996_v55 = vmul.f32 %v1297_v51, %v1530_v40  ;;  %v507_v56 = vpop.f32.mrb[3].mxu0  ;;  %v635_v57 = vpop.f32.mrb[3].mxu1 }
  0xf9   :  { %v1032_v58 = vadd.f32 %v1535_v42, %v961_v48  ;;  %v1064_v59 = vadd.f32 %v1535_v42, %v993_v49  ;;  %v962_v60 = vmul.f32 %v1530_v40, %v507_v56  ;;  %v994_v61 = vmul.f32 %v1530_v40, %v635_v57 }
  0xfa   :  { %1098 = vst [vmem:[%s1861_s4 + $0x10] sm:$0xff] %v1034_v52  ;;  %1130 = vst [vmem:[%s1861_s4 + $0x110] sm:$0xff] %v1066_v53  ;;  %v1035_v62 = vadd.f32 %v1535_v42, %v964_v54  ;;  %v1067_v63 = vadd.f32 %v1535_v42, %v996_v55 }
  0xfb   :  { %1096 = vst [vmem:[%s1861_s4] sm:$0xff] %v1032_v58  ;;  %1128 = vst [vmem:[%s1861_s4 + $0x100] sm:$0xff] %v1064_v59  ;;  %v1033_v0 = vadd.f32 %v1535_v42, %v962_v60  ;;  %v1065_v1 = vadd.f32 %v1535_v42, %v994_v61 }
  0xfc   :  { %1099 = vst [vmem:[%s1861_s4 + $0x18] sm:$0xff] %v1035_v62  ;;  %1131 = vst [vmem:[%s1861_s4 + $0x118] sm:$0xff] %v1067_v63 }
  0xfd   :  { %1097 = vst [vmem:[%s1861_s4 + $0x8] sm:$0xff] %v1033_v0  ;;  %1129 = vst [vmem:[%s1861_s4 + $0x108] sm:$0xff] %v1065_v1  ;;  %v1268_v2 = vpop.f32.mrb[4].mxu0  ;;  %v1300_v3 = vpop.f32.mrb[4].mxu1 }
  0xfe   :  { %v967_v4 = vmul.f32 %v1268_v2, %v1530_v40  ;;  %v999_v5 = vmul.f32 %v1300_v3, %v1530_v40  ;;  %v520_v6 = vpop.f32.mrb[5].mxu0  ;;  %v648_v7 = vpop.f32.mrb[5].mxu1 }
  0xff   :  { %v965_v8 = vmul.f32 %v1530_v40, %v520_v6  ;;  %v997_v9 = vmul.f32 %v1530_v40, %v648_v7  ;;  %v1269_v10 = vpop.f32.mrb[6].mxu0  ;;  %v1301_v11 = vpop.f32.mrb[6].mxu1 }
 0x100   :  { %v1038_v12 = vadd.f32 %v1535_v42, %v967_v4  ;;  %v1070_v13 = vadd.f32 %v1535_v42, %v999_v5  ;;  %v968_v14 = vmul.f32 %v1269_v10, %v1530_v40  ;;  %v1000_v15 = vmul.f32 %v1301_v11, %v1530_v40  ;;  %v523_v16 = vpop.f32.mrb[7].mxu0  ;;  %v651_v17 = vpop.f32.mrb[7].mxu1 }
 0x101   :  { %v1036_v18 = vadd.f32 %v1535_v42, %v965_v8  ;;  %v1068_v19 = vadd.f32 %v1535_v42, %v997_v9  ;;  %v966_v20 = vmul.f32 %v1530_v40, %v523_v16  ;;  %v998_v21 = vmul.f32 %v1530_v40, %v651_v17 }
 0x102   :  { %1102 = vst [vmem:[%s1861_s4 + $0x30] sm:$0xff] %v1038_v12  ;;  %1134 = vst [vmem:[%s1861_s4 + $0x130] sm:$0xff] %v1070_v13  ;;  %v1039_v22 = vadd.f32 %v1535_v42, %v968_v14  ;;  %v1071_v23 = vadd.f32 %v1535_v42, %v1000_v15 }
 0x103   :  { %1100 = vst [vmem:[%s1861_s4 + $0x20] sm:$0xff] %v1036_v18  ;;  %1132 = vst [vmem:[%s1861_s4 + $0x120] sm:$0xff] %v1068_v19  ;;  %v1037_v24 = vadd.f32 %v1535_v42, %v966_v20  ;;  %v1069_v25 = vadd.f32 %v1535_v42, %v998_v21 }
 0x104   :  { %1103 = vst [vmem:[%s1861_s4 + $0x38] sm:$0xff] %v1039_v22  ;;  %1135 = vst [vmem:[%s1861_s4 + $0x138] sm:$0xff] %v1071_v23 }
 0x105   :  { %1101 = vst [vmem:[%s1861_s4 + $0x28] sm:$0xff] %v1037_v24  ;;  %1133 = vst [vmem:[%s1861_s4 + $0x128] sm:$0xff] %v1069_v25  ;;  %v1272_v26 = vpop.f32.mrb[8].mxu0  ;;  %v1304_v27 = vpop.f32.mrb[8].mxu1 }
 0x106   :  { %v971_v28 = vmul.f32 %v1272_v26, %v1530_v40  ;;  %v1003_v29 = vmul.f32 %v1304_v27, %v1530_v40  ;;  %v536_v30 = vpop.f32.mrb[9].mxu0  ;;  %v664_v31 = vpop.f32.mrb[9].mxu1 }
 0x107   :  { %v969_v32 = vmul.f32 %v1530_v40, %v536_v30  ;;  %v1001_v33 = vmul.f32 %v1530_v40, %v664_v31  ;;  %v1273_v34 = vpop.f32.mrb[10].mxu0  ;;  %v1305_v35 = vpop.f32.mrb[10].mxu1 }
 0x108   :  { %v1042_v36 = vadd.f32 %v1535_v42, %v971_v28  ;;  %v1074_v37 = vadd.f32 %v1535_v42, %v1003_v29  ;;  %v972_v38 = vmul.f32 %v1273_v34, %v1530_v40  ;;  %v1004_v39 = vmul.f32 %v1305_v35, %v1530_v40  ;;  %v539_v41 = vpop.f32.mrb[11].mxu0  ;;  %v667_v43 = vpop.f32.mrb[11].mxu1 }
 0x109   :  { %v1040_v44 = vadd.f32 %v1535_v42, %v969_v32  ;;  %v1072_v45 = vadd.f32 %v1535_v42, %v1001_v33  ;;  %v970_v46 = vmul.f32 %v1530_v40, %v539_v41  ;;  %v1002_v47 = vmul.f32 %v1530_v40, %v667_v43 }
 0x10a   :  { %1106 = vst [vmem:[%s1861_s4 + $0x50] sm:$0xff] %v1042_v36  ;;  %1138 = vst [vmem:[%s1861_s4 + $0x150] sm:$0xff] %v1074_v37  ;;  %v1043_v48 = vadd.f32 %v1535_v42, %v972_v38  ;;  %v1075_v49 = vadd.f32 %v1535_v42, %v1004_v39 }
 0x10b   :  { %1104 = vst [vmem:[%s1861_s4 + $0x40] sm:$0xff] %v1040_v44  ;;  %1136 = vst [vmem:[%s1861_s4 + $0x140] sm:$0xff] %v1072_v45  ;;  %v1041_v50 = vadd.f32 %v1535_v42, %v970_v46  ;;  %v1073_v51 = vadd.f32 %v1535_v42, %v1002_v47 }
 0x10c   :  { %1107 = vst [vmem:[%s1861_s4 + $0x58] sm:$0xff] %v1043_v48  ;;  %1139 = vst [vmem:[%s1861_s4 + $0x158] sm:$0xff] %v1075_v49 }
 0x10d   :  { %1105 = vst [vmem:[%s1861_s4 + $0x48] sm:$0xff] %v1041_v50  ;;  %1137 = vst [vmem:[%s1861_s4 + $0x148] sm:$0xff] %v1073_v51  ;;  %v1276_v52 = vpop.f32.mrb[12].mxu0  ;;  %v1308_v53 = vpop.f32.mrb[12].mxu1 }
 0x10e   :  { %v975_v54 = vmul.f32 %v1276_v52, %v1530_v40  ;;  %v1007_v55 = vmul.f32 %v1308_v53, %v1530_v40  ;;  %v552_v56 = vpop.f32.mrb[13].mxu0  ;;  %v680_v57 = vpop.f32.mrb[13].mxu1 }
 0x10f   :  { %v973_v58 = vmul.f32 %v1530_v40, %v552_v56  ;;  %v1005_v59 = vmul.f32 %v1530_v40, %v680_v57  ;;  %v1277_v60 = vpop.f32.mrb[14].mxu0  ;;  %v1309_v61 = vpop.f32.mrb[14].mxu1 }
 0x110   :  { %v1046_v62 = vadd.f32 %v1535_v42, %v975_v54  ;;  %v1078_v63 = vadd.f32 %v1535_v42, %v1007_v55  ;;  %v976_v0 = vmul.f32 %v1277_v60, %v1530_v40  ;;  %v1008_v1 = vmul.f32 %v1309_v61, %v1530_v40  ;;  %v555_v2 = vpop.f32.mrb[15].mxu0  ;;  %v683_v3 = vpop.f32.mrb[15].mxu1 }
 0x111   :  { %v1044_v4 = vadd.f32 %v1535_v42, %v973_v58  ;;  %v1076_v5 = vadd.f32 %v1535_v42, %v1005_v59  ;;  %v974_v6 = vmul.f32 %v1530_v40, %v555_v2  ;;  %v1006_v7 = vmul.f32 %v1530_v40, %v683_v3 }
 0x112   :  { %1110 = vst [vmem:[%s1861_s4 + $0x70] sm:$0xff] %v1046_v62  ;;  %1142 = vst [vmem:[%s1861_s4 + $0x170] sm:$0xff] %v1078_v63  ;;  %v1047_v8 = vadd.f32 %v1535_v42, %v976_v0  ;;  %v1079_v9 = vadd.f32 %v1535_v42, %v1008_v1 }
 0x113   :  { %1108 = vst [vmem:[%s1861_s4 + $0x60] sm:$0xff] %v1044_v4  ;;  %1140 = vst [vmem:[%s1861_s4 + $0x160] sm:$0xff] %v1076_v5  ;;  %v1045_v10 = vadd.f32 %v1535_v42, %v974_v6  ;;  %v1077_v11 = vadd.f32 %v1535_v42, %v1006_v7 }
 0x114   :  { %1111 = vst [vmem:[%s1861_s4 + $0x78] sm:$0xff] %v1047_v8  ;;  %1143 = vst [vmem:[%s1861_s4 + $0x178] sm:$0xff] %v1079_v9 }
 0x115   :  { %1109 = vst [vmem:[%s1861_s4 + $0x68] sm:$0xff] %v1045_v10  ;;  %1141 = vst [vmem:[%s1861_s4 + $0x168] sm:$0xff] %v1077_v11  ;;  %v1280_v12 = vpop.f32.mrb[16].mxu0  ;;  %v1312_v13 = vpop.f32.mrb[16].mxu1 }
 0x116   :  { %v979_v14 = vmul.f32 %v1280_v12, %v1530_v40  ;;  %v1011_v15 = vmul.f32 %v1312_v13, %v1530_v40  ;;  %v568_v16 = vpop.f32.mrb[17].mxu0  ;;  %v696_v17 = vpop.f32.mrb[17].mxu1 }
 0x117   :  { %v977_v18 = vmul.f32 %v1530_v40, %v568_v16  ;;  %v1009_v19 = vmul.f32 %v1530_v40, %v696_v17  ;;  %v1281_v20 = vpop.f32.mrb[18].mxu0  ;;  %v1313_v21 = vpop.f32.mrb[18].mxu1 }
 0x118   :  { %v1050_v22 = vadd.f32 %v1535_v42, %v979_v14  ;;  %v1082_v23 = vadd.f32 %v1535_v42, %v1011_v15  ;;  %v980_v24 = vmul.f32 %v1281_v20, %v1530_v40  ;;  %v1012_v25 = vmul.f32 %v1313_v21, %v1530_v40  ;;  %v571_v26 = vpop.f32.mrb[19].mxu0  ;;  %v699_v27 = vpop.f32.mrb[19].mxu1 }
 0x119   :  { %v1048_v28 = vadd.f32 %v1535_v42, %v977_v18  ;;  %v1080_v29 = vadd.f32 %v1535_v42, %v1009_v19  ;;  %v978_v30 = vmul.f32 %v1530_v40, %v571_v26  ;;  %v1010_v31 = vmul.f32 %v1530_v40, %v699_v27 }
 0x11a   :  { %1114 = vst [vmem:[%s1861_s4 + $0x90] sm:$0xff] %v1050_v22  ;;  %1146 = vst [vmem:[%s1861_s4 + $0x190] sm:$0xff] %v1082_v23  ;;  %v1051_v32 = vadd.f32 %v1535_v42, %v980_v24  ;;  %v1083_v33 = vadd.f32 %v1535_v42, %v1012_v25 }
 0x11b   :  { %1112 = vst [vmem:[%s1861_s4 + $0x80] sm:$0xff] %v1048_v28  ;;  %1144 = vst [vmem:[%s1861_s4 + $0x180] sm:$0xff] %v1080_v29  ;;  %v1049_v34 = vadd.f32 %v1535_v42, %v978_v30  ;;  %v1081_v35 = vadd.f32 %v1535_v42, %v1010_v31 }
 0x11c   :  { %1115 = vst [vmem:[%s1861_s4 + $0x98] sm:$0xff] %v1051_v32  ;;  %1147 = vst [vmem:[%s1861_s4 + $0x198] sm:$0xff] %v1083_v33 }
 0x11d   :  { %1113 = vst [vmem:[%s1861_s4 + $0x88] sm:$0xff] %v1049_v34  ;;  %1145 = vst [vmem:[%s1861_s4 + $0x188] sm:$0xff] %v1081_v35  ;;  %v1284_v36 = vpop.f32.mrb[20].mxu0  ;;  %v1316_v37 = vpop.f32.mrb[20].mxu1 }
 0x11e   :  { %v983_v38 = vmul.f32 %v1284_v36, %v1530_v40  ;;  %v1015_v39 = vmul.f32 %v1316_v37, %v1530_v40  ;;  %v584_v41 = vpop.f32.mrb[21].mxu0  ;;  %v712_v43 = vpop.f32.mrb[21].mxu1 }
 0x11f   :  { %v981_v44 = vmul.f32 %v1530_v40, %v584_v41  ;;  %v1013_v45 = vmul.f32 %v1530_v40, %v712_v43  ;;  %v1285_v46 = vpop.f32.mrb[22].mxu0  ;;  %v1317_v47 = vpop.f32.mrb[22].mxu1 }
 0x120   :  { %v1054_v48 = vadd.f32 %v1535_v42, %v983_v38  ;;  %v1086_v49 = vadd.f32 %v1535_v42, %v1015_v39  ;;  %v984_v50 = vmul.f32 %v1285_v46, %v1530_v40  ;;  %v1016_v51 = vmul.f32 %v1317_v47, %v1530_v40  ;;  %v587_v52 = vpop.f32.mrb[23].mxu0  ;;  %v715_v53 = vpop.f32.mrb[23].mxu1 }
 0x121   :  { %v1052_v54 = vadd.f32 %v1535_v42, %v981_v44  ;;  %v1084_v55 = vadd.f32 %v1535_v42, %v1013_v45  ;;  %v982_v56 = vmul.f32 %v1530_v40, %v587_v52  ;;  %v1014_v57 = vmul.f32 %v1530_v40, %v715_v53 }
 0x122   :  { %1118 = vst [vmem:[%s1861_s4 + $0xb0] sm:$0xff] %v1054_v48  ;;  %1150 = vst [vmem:[%s1861_s4 + $0x1b0] sm:$0xff] %v1086_v49  ;;  %v1055_v58 = vadd.f32 %v1535_v42, %v984_v50  ;;  %v1087_v59 = vadd.f32 %v1535_v42, %v1016_v51 }
 0x123   :  { %1116 = vst [vmem:[%s1861_s4 + $0xa0] sm:$0xff] %v1052_v54  ;;  %1148 = vst [vmem:[%s1861_s4 + $0x1a0] sm:$0xff] %v1084_v55  ;;  %v1053_v60 = vadd.f32 %v1535_v42, %v982_v56  ;;  %v1085_v61 = vadd.f32 %v1535_v42, %v1014_v57 }
 0x124   :  { %1119 = vst [vmem:[%s1861_s4 + $0xb8] sm:$0xff] %v1055_v58  ;;  %1151 = vst [vmem:[%s1861_s4 + $0x1b8] sm:$0xff] %v1087_v59 }
 0x125   :  { %1117 = vst [vmem:[%s1861_s4 + $0xa8] sm:$0xff] %v1053_v60  ;;  %1149 = vst [vmem:[%s1861_s4 + $0x1a8] sm:$0xff] %v1085_v61  ;;  %v1288_v62 = vpop.f32.mrb[24].mxu0  ;;  %v1320_v63 = vpop.f32.mrb[24].mxu1 }
 0x126   :  { %v987_v0 = vmul.f32 %v1288_v62, %v1530_v40  ;;  %v1019_v1 = vmul.f32 %v1320_v63, %v1530_v40  ;;  %v600_v2 = vpop.f32.mrb[25].mxu0  ;;  %v728_v3 = vpop.f32.mrb[25].mxu1 }
 0x127   :  { %v985_v4 = vmul.f32 %v1530_v40, %v600_v2  ;;  %v1017_v5 = vmul.f32 %v1530_v40, %v728_v3  ;;  %v1289_v6 = vpop.f32.mrb[26].mxu0  ;;  %v1321_v7 = vpop.f32.mrb[26].mxu1 }
 0x128   :  { %v1058_v8 = vadd.f32 %v1535_v42, %v987_v0  ;;  %v1090_v9 = vadd.f32 %v1535_v42, %v1019_v1  ;;  %v988_v10 = vmul.f32 %v1289_v6, %v1530_v40  ;;  %v1020_v11 = vmul.f32 %v1321_v7, %v1530_v40  ;;  %v603_v12 = vpop.f32.mrb[27].mxu0  ;;  %v731_v13 = vpop.f32.mrb[27].mxu1 }
 0x129   :  { %v1056_v14 = vadd.f32 %v1535_v42, %v985_v4  ;;  %v1088_v15 = vadd.f32 %v1535_v42, %v1017_v5  ;;  %v986_v16 = vmul.f32 %v1530_v40, %v603_v12  ;;  %v1018_v17 = vmul.f32 %v1530_v40, %v731_v13 }
 0x12a   :  { %1122 = vst [vmem:[%s1861_s4 + $0xd0] sm:$0xff] %v1058_v8  ;;  %1154 = vst [vmem:[%s1861_s4 + $0x1d0] sm:$0xff] %v1090_v9  ;;  %v1059_v18 = vadd.f32 %v1535_v42, %v988_v10  ;;  %v1091_v19 = vadd.f32 %v1535_v42, %v1020_v11 }
 0x12b   :  { %1120 = vst [vmem:[%s1861_s4 + $0xc0] sm:$0xff] %v1056_v14  ;;  %1152 = vst [vmem:[%s1861_s4 + $0x1c0] sm:$0xff] %v1088_v15  ;;  %v1057_v20 = vadd.f32 %v1535_v42, %v986_v16  ;;  %v1089_v21 = vadd.f32 %v1535_v42, %v1018_v17 }
 0x12c   :  { %1123 = vst [vmem:[%s1861_s4 + $0xd8] sm:$0xff] %v1059_v18  ;;  %1155 = vst [vmem:[%s1861_s4 + $0x1d8] sm:$0xff] %v1091_v19 }
 0x12d   :  { %1121 = vst [vmem:[%s1861_s4 + $0xc8] sm:$0xff] %v1057_v20  ;;  %1153 = vst [vmem:[%s1861_s4 + $0x1c8] sm:$0xff] %v1089_v21  ;;  %v1292_v22 = vpop.f32.mrb[28].mxu0  ;;  %v1324_v23 = vpop.f32.mrb[28].mxu1 }
 0x12e   :  { %v991_v24 = vmul.f32 %v1292_v22, %v1530_v40  ;;  %v1023_v25 = vmul.f32 %v1324_v23, %v1530_v40  ;;  %v616_v26 = vpop.f32.mrb[29].mxu0  ;;  %v744_v27 = vpop.f32.mrb[29].mxu1 }
 0x12f   :  { %v989_v28 = vmul.f32 %v1530_v40, %v616_v26  ;;  %v1021_v29 = vmul.f32 %v1530_v40, %v744_v27  ;;  %v1293_v30 = vpop.f32.mrb[30].mxu0  ;;  %v1325_v31 = vpop.f32.mrb[30].mxu1 }
 0x130   :  { %v1062_v32 = vadd.f32 %v1535_v42, %v991_v24  ;;  %v1094_v33 = vadd.f32 %v1535_v42, %v1023_v25  ;;  %v992_v34 = vmul.f32 %v1293_v30, %v1530_v40  ;;  %v1024_v35 = vmul.f32 %v1325_v31, %v1530_v40  ;;  %v619_v36 = vpop.f32.mrb[31].mxu0  ;;  %v747_v37 = vpop.f32.mrb[31].mxu1 }
 0x131   :  { %v1060_v38 = vadd.f32 %v1535_v42, %v989_v28  ;;  %v1092_v39 = vadd.f32 %v1535_v42, %v1021_v29  ;;  %v990_v41 = vmul.f32 %v1530_v40, %v619_v36  ;;  %v1022_v43 = vmul.f32 %v1530_v40, %v747_v37 }
 0x132   :  { %1126 = vst [vmem:[%s1861_s4 + $0xf0] sm:$0xff] %v1062_v32  ;;  %1158 = vst [vmem:[%s1861_s4 + $0x1f0] sm:$0xff] %v1094_v33  ;;  %v1063_v44 = vadd.f32 %v1535_v42, %v992_v34  ;;  %v1095_v45 = vadd.f32 %v1535_v42, %v1024_v35 }
 0x133   :  { %1124 = vst [vmem:[%s1861_s4 + $0xe0] sm:$0xff] %v1060_v38  ;;  %1156 = vst [vmem:[%s1861_s4 + $0x1e0] sm:$0xff] %v1092_v39  ;;  %v1061_v40 = vadd.f32 %v1535_v42, %v990_v41  ;;  %v1093_v46 = vadd.f32 %v1535_v42, %v1022_v43 }
 0x134   :  { %1127 = vst [vmem:[%s1861_s4 + $0xf8] sm:$0xff] %v1063_v44  ;;  %1159 = vst [vmem:[%s1861_s4 + $0x1f8] sm:$0xff] %v1095_v45 }
 0x135   :  { %1125 = vst [vmem:[%s1861_s4 + $0xe8] sm:$0xff] %v1061_v40  ;;  %1157 = vst [vmem:[%s1861_s4 + $0x1e8] sm:$0xff] %v1093_v46 }

// kernel: bottleneck_forward.5
= control target key start
LH: loop header
LB: loop body
LE: loop exit
PB: predicated region body
PF: predicated region fallthrough
CT: control target
= control target key end

     0   :  { %s2258_s15 = smov 0   ;;  %s2260_s16 = smov 0   ;;  %s2895_s0 = inlined_call_operand.vmem [shape: bf16[512,1152], index: 0, kind: input, shape index: {}]   ;;  %s2896_s1 = inlined_call_operand.vmem [shape: bf16[1152,128], index: 1, kind: input, shape index: {}]   ;;  %s2897_s2 = inlined_call_operand.vmem [shape: f32[1,128], index: 2, kind: input, shape index: {}]   ;;  %s2898_s3 = inlined_call_operand.vmem [shape: f32[1,128], index: 3, kind: input, shape index: {}]   ;;  %s2899_s4 = inlined_call_operand.vmem [shape: f32[512,128], index: 4, kind: output, shape index: {}]  }
   0x1   :  { %s2262_s17 = smov 0   ;;  %s2264_s18 = smov 0  }
   0x2   :  { %s2266_s19 = smov 0  }
   0x3 LB: > { %s26_s20 = sadd.s32 1, %s2226_s18  ;;  %p49_p1 = scmp.ne.s32.totalorder %s2218_s16, %s2214_s15  ;;  %s2230_s19 = sphi %s2266_s19, %s14_s19   ;;  %s2226_s18 = sphi %s2264_s18, %s2903_s18   ;;  %s2222_s17 = sphi %s2262_s17, %s2902_s17   ;;  %s2218_s16 = sphi %s2260_s16, %s2901_s16   ;;  %s2214_s15 = sphi %s2258_s15, %s2900_s15  }
   0x4   : > { %p27_p0 = scmp.ge.s32.totalorder %s26_s20, 9  ;;  %p50_p2 = scmp.eq.s32.totalorder %s2230_s19, 0 }
   0x5   : > { %s42_s22 = sadd.s32 1, %s2218_s16  ;;  %p1920_p5 = scmp.ge.s32.totalorder %s2230_s19, 9 }
   0x6   : > { %s2905_s20 = smov (%p27_p0, %s26_s20), 0  ;;  %p51_p3 = por %p50_p2, %p49_p1 }
   0x7   : > { %s38_s21 = ssub.s32 %s2226_s18, %s2905_s20  ;;  %195 = sbr.rel (%p1920_p5) target bundleno = 60 (0x3c), region = 24 }
   0x8   : > { %p40_p4 = scmp.eq.s32.totalorder %s38_s21, 0 }
   0xa   : > { %s2293_s23 = scalar_select %p40_p4, %s2218_s16, %s42_s22  }
   0xe   : > { %198 = sbr.rel (!%p51_p3) target bundleno = 60 (0x3c), region = 28  ;;  %s200_s24 = sand.u32 (%p51_p3), 1, %s2218_s16  }
   0xf   : > { %s1922_s25 = sshll.u32 (%p51_p3), %s2226_s18, 2  ;;  %s1921_s26 = sshll.u32 (%p51_p3), %s200_s24, 8 }
  0x10   : > { %s2301_s29 = scalar_lea.vmem (%p51_p3), %s2895_s0, %s1922_s25  ;;  %s2305_s30 = scalar_lea.vmem (%p51_p3), [#allocation3], %s1921_s26 }
  0x11   : > { %v223_v0 = vld [vmem:[%s2301_s29] sm:$0xf] (%p51_p3)  ;;  %v225_v1 = vld [vmem:[%s2301_s29 + $0x24] sm:$0xf] (%p51_p3)  ;;  %v227_v2 = vld [vmem:[%s2301_s29 + $0x48] sm:$0xf] (%p51_p3) }
  0x12   : > { %224 = vst [vmem:[%s2305_s30] sm:$0xf] (%p51_p3), %v223_v0  ;;  %226 = vst [vmem:[%s2305_s30 + $0x4] sm:$0xf] (%p51_p3), %v225_v1  ;;  %v229_v3 = vld [vmem:[%s2301_s29 + $0x6c] sm:$0xf] (%p51_p3) }
  0x13   : > { %v231_v4 = vld [vmem:[%s2301_s29 + $0x90] sm:$0xf] (%p51_p3)  ;;  %228 = vst [vmem:[%s2305_s30 + $0x8] sm:$0xf] (%p51_p3), %v227_v2  ;;  %230 = vst [vmem:[%s2305_s30 + $0xc] sm:$0xf] (%p51_p3), %v229_v3 }
  0x14   : > { %232 = vst [vmem:[%s2305_s30 + $0x10] sm:$0xf] (%p51_p3), %v231_v4  ;;  %v233_v5 = vld [vmem:[%s2301_s29 + $0xb4] sm:$0xf] (%p51_p3)  ;;  %v235_v6 = vld [vmem:[%s2301_s29 + $0xd8] sm:$0xf] (%p51_p3) }
  0x15   : > { %v237_v7 = vld [vmem:[%s2301_s29 + $0xfc] sm:$0xf]  ;;  %234 = vst [vmem:[%s2305_s30 + $0x14] sm:$0xf] %v233_v5  ;;  %236 = vst [vmem:[%s2305_s30 + $0x18] sm:$0xf] %v235_v6 }
  0x16   : > { %238 = vst [vmem:[%s2305_s30 + $0x1c] sm:$0xf] %v237_v7  ;;  %v239_v8 = vld [vmem:[%s2301_s29 + $0x120] sm:$0xf]  ;;  %v241_v9 = vld [vmem:[%s2301_s29 + $0x144] sm:$0xf] }
  0x17   : > { %v243_v10 = vld [vmem:[%s2301_s29 + $0x168] sm:$0xf]  ;;  %240 = vst [vmem:[%s2305_s30 + $0x20] sm:$0xf] %v239_v8  ;;  %242 = vst [vmem:[%s2305_s30 + $0x24] sm:$0xf] %v241_v9 }
  0x18   : > { %244 = vst [vmem:[%s2305_s30 + $0x28] sm:$0xf] %v243_v10  ;;  %v245_v11 = vld [vmem:[%s2301_s29 + $0x18c] sm:$0xf]  ;;  %v247_v12 = vld [vmem:[%s2301_s29 + $0x1b0] sm:$0xf] }
  0x19   : > { %v249_v13 = vld [vmem:[%s2301_s29 + $0x1d4] sm:$0xf]  ;;  %246 = vst [vmem:[%s2305_s30 + $0x2c] sm:$0xf] %v245_v11  ;;  %248 = vst [vmem:[%s2305_s30 + $0x30] sm:$0xf] %v247_v12 }
  0x1a   : > { %250 = vst [vmem:[%s2305_s30 + $0x34] sm:$0xf] %v249_v13  ;;  %v251_v14 = vld [vmem:[%s2301_s29 + $0x1f8] sm:$0xf]  ;;  %v253_v15 = vld [vmem:[%s2301_s29 + $0x21c] sm:$0xf] }
  0x1b   : > { %v255_v16 = vld [vmem:[%s2301_s29 + $0x240] sm:$0xf]  ;;  %252 = vst [vmem:[%s2305_s30 + $0x38] sm:$0xf] %v251_v14  ;;  %254 = vst [vmem:[%s2305_s30 + $0x3c] sm:$0xf] %v253_v15 }
  0x1c   : > { %256 = vst [vmem:[%s2305_s30 + $0x40] sm:$0xf] %v255_v16  ;;  %v257_v17 = vld [vmem:[%s2301_s29 + $0x264] sm:$0xf]  ;;  %v259_v18 = vld [vmem:[%s2301_s29 + $0x288] sm:$0xf] }
  0x1d   : > { %v261_v19 = vld [vmem:[%s2301_s29 + $0x2ac] sm:$0xf]  ;;  %258 = vst [vmem:[%s2305_s30 + $0x44] sm:$0xf] %v257_v17  ;;  %260 = vst [vmem:[%s2305_s30 + $0x48] sm:$0xf] %v259_v18 }
  0x1e   : > { %262 = vst [vmem:[%s2305_s30 + $0x4c] sm:$0xf] %v261_v19  ;;  %v263_v20 = vld [vmem:[%s2301_s29 + $0x2d0] sm:$0xf]  ;;  %v265_v21 = vld [vmem:[%s2301_s29 + $0x2f4] sm:$0xf] }
  0x1f   : > { %v267_v22 = vld [vmem:[%s2301_s29 + $0x318] sm:$0xf]  ;;  %264 = vst [vmem:[%s2305_s30 + $0x50] sm:$0xf] %v263_v20  ;;  %266 = vst [vmem:[%s2305_s30 + $0x54] sm:$0xf] %v265_v21 }
  0x20   : > { %268 = vst [vmem:[%s2305_s30 + $0x58] sm:$0xf] %v267_v22  ;;  %v269_v23 = vld [vmem:[%s2301_s29 + $0x33c] sm:$0xf]  ;;  %v271_v24 = vld [vmem:[%s2301_s29 + $0x360] sm:$0xf] }
  0x21   : > { %v273_v25 = vld [vmem:[%s2301_s29 + $0x384] sm:$0xf]  ;;  %270 = vst [vmem:[%s2305_s30 + $0x5c] sm:$0xf] %v269_v23  ;;  %272 = vst [vmem:[%s2305_s30 + $0x60] sm:$0xf] %v271_v24 }
  0x22   : > { %274 = vst [vmem:[%s2305_s30 + $0x64] sm:$0xf] %v273_v25  ;;  %v275_v26 = vld [vmem:[%s2301_s29 + $0x3a8] sm:$0xf]  ;;  %v277_v27 = vld [vmem:[%s2301_s29 + $0x3cc] sm:$0xf] }
  0x23   : > { %v279_v28 = vld [vmem:[%s2301_s29 + $0x3f0] sm:$0xf]  ;;  %276 = vst [vmem:[%s2305_s30 + $0x68] sm:$0xf] %v275_v26  ;;  %278 = vst [vmem:[%s2305_s30 + $0x6c] sm:$0xf] %v277_v27 }
  0x24   : > { %280 = vst [vmem:[%s2305_s30 + $0x70] sm:$0xf] %v279_v28  ;;  %v281_v29 = vld [vmem:[%s2301_s29 + $0x414] sm:$0xf]  ;;  %v283_v30 = vld [vmem:[%s2301_s29 + $0x438] sm:$0xf] }
  0x25   : > { %v285_v31 = vld [vmem:[%s2301_s29 + $0x45c] sm:$0xf]  ;;  %282 = vst [vmem:[%s2305_s30 + $0x74] sm:$0xf] %v281_v29  ;;  %284 = vst [vmem:[%s2305_s30 + $0x78] sm:$0xf] %v283_v30 }
  0x26   : > { %286 = vst [vmem:[%s2305_s30 + $0x7c] sm:$0xf] %v285_v31  ;;  %v287_v32 = vld [vmem:[%s2301_s29 + $0x480] sm:$0xf]  ;;  %v289_v33 = vld [vmem:[%s2301_s29 + $0x4a4] sm:$0xf] }
  0x27   : > { %v291_v34 = vld [vmem:[%s2301_s29 + $0x4c8] sm:$0xf]  ;;  %288 = vst [vmem:[%s2305_s30 + $0x80] sm:$0xf] %v287_v32  ;;  %290 = vst [vmem:[%s2305_s30 + $0x84] sm:$0xf] %v289_v33 }
  0x28   : > { %292 = vst [vmem:[%s2305_s30 + $0x88] sm:$0xf] %v291_v34  ;;  %v293_v35 = vld [vmem:[%s2301_s29 + $0x4ec] sm:$0xf]  ;;  %v295_v36 = vld [vmem:[%s2301_s29 + $0x510] sm:$0xf] }
  0x29   : > { %v297_v37 = vld [vmem:[%s2301_s29 + $0x534] sm:$0xf]  ;;  %294 = vst [vmem:[%s2305_s30 + $0x8c] sm:$0xf] %v293_v35  ;;  %296 = vst [vmem:[%s2305_s30 + $0x90] sm:$0xf] %v295_v36 }
  0x2a   : > { %298 = vst [vmem:[%s2305_s30 + $0x94] sm:$0xf] %v297_v37  ;;  %v299_v38 = vld [vmem:[%s2301_s29 + $0x558] sm:$0xf]  ;;  %v301_v39 = vld [vmem:[%s2301_s29 + $0x57c] sm:$0xf] }
  0x2b   : > { %v303_v40 = vld [vmem:[%s2301_s29 + $0x5a0] sm:$0xf]  ;;  %300 = vst [vmem:[%s2305_s30 + $0x98] sm:$0xf] %v299_v38  ;;  %302 = vst [vmem:[%s2305_s30 + $0x9c] sm:$0xf] %v301_v39 }
  0x2c   : > { %304 = vst [vmem:[%s2305_s30 + $0xa0] sm:$0xf] %v303_v40  ;;  %v305_v41 = vld [vmem:[%s2301_s29 + $0x5c4] sm:$0xf]  ;;  %v307_v42 = vld [vmem:[%s2301_s29 + $0x5e8] sm:$0xf] }
  0x2d   : > { %v309_v43 = vld [vmem:[%s2301_s29 + $0x60c] sm:$0xf]  ;;  %306 = vst [vmem:[%s2305_s30 + $0xa4] sm:$0xf] %v305_v41  ;;  %308 = vst [vmem:[%s2305_s30 + $0xa8] sm:$0xf] %v307_v42 }
  0x2e   : > { %310 = vst [vmem:[%s2305_s30 + $0xac] sm:$0xf] %v309_v43  ;;  %v311_v44 = vld [vmem:[%s2301_s29 + $0x630] sm:$0xf]  ;;  %v313_v45 = vld [vmem:[%s2301_s29 + $0x654] sm:$0xf] }
  0x2f   : > { %v315_v46 = vld [vmem:[%s2301_s29 + $0x678] sm:$0xf]  ;;  %312 = vst [vmem:[%s2305_s30 + $0xb0] sm:$0xf] %v311_v44  ;;  %314 = vst [vmem:[%s2305_s30 + $0xb4] sm:$0xf] %v313_v45 }
  0x30   : > { %316 = vst [vmem:[%s2305_s30 + $0xb8] sm:$0xf] %v315_v46  ;;  %v317_v47 = vld [vmem:[%s2301_s29 + $0x69c] sm:$0xf]  ;;  %v319_v48 = vld [vmem:[%s2301_s29 + $0x6c0] sm:$0xf] }
  0x31   : > { %v321_v49 = vld [vmem:[%s2301_s29 + $0x6e4] sm:$0xf]  ;;  %318 = vst [vmem:[%s2305_s30 + $0xbc] sm:$0xf] %v317_v47  ;;  %320 = vst [vmem:[%s2305_s30 + $0xc0] sm:$0xf] %v319_v48 }
  0x32   : > { %322 = vst [vmem:[%s2305_s30 + $0xc4] sm:$0xf] %v321_v49  ;;  %v323_v50 = vld [vmem:[%s2301_s29 + $0x708] sm:$0xf]  ;;  %v325_v51 = vld [vmem:[%s2301_s29 + $0x72c] sm:$0xf] }
  0x33   : > { %v327_v52 = vld [vmem:[%s2301_s29 + $0x750] sm:$0xf]  ;;  %324 = vst [vmem:[%s2305_s30 + $0xc8] sm:$0xf] %v323_v50  ;;  %326 = vst [vmem:[%s2305_s30 + $0xcc] sm:$0xf] %v325_v51 }
  0x34   : > { %328 = vst [vmem:[%s2305_s30 + $0xd0] sm:$0xf] %v327_v52  ;;  %v329_v53 = vld [vmem:[%s2301_s29 + $0x774] sm:$0xf]  ;;  %v331_v54 = vld [vmem:[%s2301_s29 + $0x798] sm:$0xf] }
  0x35   : > { %v333_v55 = vld [vmem:[%s2301_s29 + $0x7bc] sm:$0xf]  ;;  %330 = vst [vmem:[%s2305_s30 + $0xd4] sm:$0xf] %v329_v53  ;;  %332 = vst [vmem:[%s2305_s30 + $0xd8] sm:$0xf] %v331_v54 }
  0x36   : > { %334 = vst [vmem:[%s2305_s30 + $0xdc] sm:$0xf] %v333_v55  ;;  %v335_v56 = vld [vmem:[%s2301_s29 + $0x7e0] sm:$0xf]  ;;  %v337_v57 = vld [vmem:[%s2301_s29 + $0x804] sm:$0xf] }
  0x37   : > { %v339_v58 = vld [vmem:[%s2301_s29 + $0x828] sm:$0xf]  ;;  %336 = vst [vmem:[%s2305_s30 + $0xe0] sm:$0xf] %v335_v56  ;;  %338 = vst [vmem:[%s2305_s30 + $0xe4] sm:$0xf] %v337_v57 }
  0x38   : > { %340 = vst [vmem:[%s2305_s30 + $0xe8] sm:$0xf] %v339_v58  ;;  %v341_v59 = vld [vmem:[%s2301_s29 + $0x84c] sm:$0xf]  ;;  %v343_v60 = vld [vmem:[%s2301_s29 + $0x870] sm:$0xf] }
  0x39   : > { %v345_v61 = vld [vmem:[%s2301_s29 + $0x894] sm:$0xf]  ;;  %342 = vst [vmem:[%s2305_s30 + $0xec] sm:$0xf] %v341_v59  ;;  %344 = vst [vmem:[%s2305_s30 + $0xf0] sm:$0xf] %v343_v60 }
  0x3a   : > { %346 = vst [vmem:[%s2305_s30 + $0xf4] sm:$0xf] %v345_v61  ;;  %v347_v62 = vld [vmem:[%s2301_s29 + $0x8b8] sm:$0xf]  ;;  %v349_v63 = vld [vmem:[%s2301_s29 + $0x8dc] sm:$0xf] }
  0x3b   : > { %348 = vst [vmem:[%s2305_s30 + $0xf8] sm:$0xf] %v347_v62  ;;  %350 = vst [vmem:[%s2305_s30 + $0xfc] sm:$0xf] %v349_v63 }
  0x3c PF: > { %p1923_p6 = scmp.ge.s32.totalorder %s2230_s19, 1  ;;  %p512_p7 = scmp.lt.s32.totalorder %s2230_s19, 10 }
  0x3e   : > { %p513_p8 = pnand %p1923_p6, %p512_p7 }
  0x3f   : > { %s519_s5 = sand.u32 (!%p513_p8), 1, %s2214_s15   ;;  %s1925_s6 = sshll.u32 (!%p513_p8), %s2222_s17, 4 }
  0x40   : > { %516 = sbr.rel (%p513_p8) target bundleno = 456 (0x1c8), region = 73  ;;  %s1924_s7 = sshll.u32 (!%p513_p8), %s519_s5, 8 }
  0x41   : > { %p563_p9 = scmp.lt.s32.totalorder (!%p513_p8), %s1925_s6, 143  ;;  %s2442_s12 = scalar_lea.vmem (!%p513_p8), [#allocation3], %s1924_s7 }
  0x42   : > { %p1927_p10 = scmp.ne.s32.totalorder (!%p513_p8), %s2222_s17, 0 }
  0x47   : > { %s2907_s6 = smov (!%p563_p9, %s1925_s6), 143  ;;  %590 = sbr.rel (%p1927_p10) target bundleno = 105 (0x69), region = 81 }
  0x48   : > { %s1926_s8 = sshll.u32 %s2907_s6, 2  ;;  %v2232_v0 = vmov (!%p1927_p10), 0.0  }
  0x49   : > { %s2440_s11 = scalar_lea.vmem %s2896_s1, %s1926_s8  ;;  %591 = vst [vmem:[#allocation2] sm:$0xff] (!%p1927_p10), %v2232_v0  ;;  %592 = vst [vmem:[#allocation2 + $0x8] sm:$0xff] (!%p1927_p10), %v2232_v0 }
  0x4a   : > { %593 = vst [vmem:[#allocation2 + $0x10] sm:$0xff] (!%p1927_p10), %v2232_v0  ;;  %594 = vst [vmem:[#allocation2 + $0x18] sm:$0xff] (!%p1927_p10), %v2232_v0 }
  0x4b   : > { %595 = vst [vmem:[#allocation2 + $0x20] sm:$0xff] (!%p1927_p10), %v2232_v0  ;;  %596 = vst [vmem:[#allocation2 + $0x28] sm:$0xff] (!%p1927_p10), %v2232_v0 }
  0x4c   : > { %597 = vst [vmem:[#allocation2 + $0x30] sm:$0xff] (!%p1927_p10), %v2232_v0  ;;  %598 = vst [vmem:[#allocation2 + $0x38] sm:$0xff] (!%p1927_p10), %v2232_v0 }
  0x4d   : > { %599 = vst [vmem:[#allocation2 + $0x40] sm:$0xff] (!%p1927_p10), %v2232_v0  ;;  %600 = vst [vmem:[#allocation2 + $0x48] sm:$0xff] (!%p1927_p10), %v2232_v0 }
  0x4e   : > { %601 = vst [vmem:[#allocation2 + $0x50] sm:$0xff] %v2232_v0  ;;  %602 = vst [vmem:[#allocation2 + $0x58] sm:$0xff] %v2232_v0 }
  0x4f   : > { %603 = vst [vmem:[#allocation2 + $0x60] sm:$0xff] %v2232_v0  ;;  %604 = vst [vmem:[#allocation2 + $0x68] sm:$0xff] %v2232_v0 }
  0x50   : > { %605 = vst [vmem:[#allocation2 + $0x70] sm:$0xff] %v2232_v0  ;;  %606 = vst [vmem:[#allocation2 + $0x78] sm:$0xff] %v2232_v0 }
  0x51   : > { %607 = vst [vmem:[#allocation2 + $0x80] sm:$0xff] %v2232_v0  ;;  %608 = vst [vmem:[#allocation2 + $0x88] sm:$0xff] %v2232_v0 }
  0x52   : > { %609 = vst [vmem:[#allocation2 + $0x90] sm:$0xff] %v2232_v0  ;;  %610 = vst [vmem:[#allocation2 + $0x98] sm:$0xff] %v2232_v0 }
  0x53   : > { %611 = vst [vmem:[#allocation2 + $0xa0] sm:$0xff] %v2232_v0  ;;  %612 = vst [vmem:[#allocation2 + $0xa8] sm:$0xff] %v2232_v0 }
  0x54   : > { %613 = vst [vmem:[#allocation2 + $0xb0] sm:$0xff] %v2232_v0  ;;  %614 = vst [vmem:[#allocation2 + $0xb8] sm:$0xff] %v2232_v0 }
  0x55   : > { %615 = vst [vmem:[#allocation2 + $0xc0] sm:$0xff] %v2232_v0  ;;  %616 = vst [vmem:[#allocation2 + $0xc8] sm:$0xff] %v2232_v0 }
  0x56   : > { %617 = vst [vmem:[#allocation2 + $0xd0] sm:$0xff] %v2232_v0  ;;  %618 = vst [vmem:[#allocation2 + $0xd8] sm:$0xff] %v2232_v0 }
  0x57   : > { %619 = vst [vmem:[#allocation2 + $0xe0] sm:$0xff] %v2232_v0  ;;  %620 = vst [vmem:[#allocation2 + $0xe8] sm:$0xff] %v2232_v0 }
  0x58   : > { %621 = vst [vmem:[#allocation2 + $0xf0] sm:$0xff] %v2232_v0  ;;  %622 = vst [vmem:[#allocation2 + $0xf8] sm:$0xff] %v2232_v0 }
  0x59   : > { %623 = vst [vmem:[#allocation2 + $0x100] sm:$0xff] %v2232_v0  ;;  %624 = vst [vmem:[#allocation2 + $0x108] sm:$0xff] %v2232_v0 }
  0x5a   : > { %625 = vst [vmem:[#allocation2 + $0x110] sm:$0xff] %v2232_v0  ;;  %626 = vst [vmem:[#allocation2 + $0x118] sm:$0xff] %v2232_v0 }
  0x5b   : > { %627 = vst [vmem:[#allocation2 + $0x120] sm:$0xff] %v2232_v0  ;;  %628 = vst [vmem:[#allocation2 + $0x128] sm:$0xff] %v2232_v0 }
  0x5c   : > { %629 = vst [vmem:[#allocation2 + $0x130] sm:$0xff] %v2232_v0  ;;  %630 = vst [vmem:[#allocation2 + $0x138] sm:$0xff] %v2232_v0 }
  0x5d   : > { %631 = vst [vmem:[#allocation2 + $0x140] sm:$0xff] %v2232_v0  ;;  %632 = vst [vmem:[#allocation2 + $0x148] sm:$0xff] %v2232_v0 }
  0x5e   : > { %633 = vst [vmem:[#allocation2 + $0x150] sm:$0xff] %v2232_v0  ;;  %634 = vst [vmem:[#allocation2 + $0x158] sm:$0xff] %v2232_v0 }
  0x5f   : > { %635 = vst [vmem:[#allocation2 + $0x160] sm:$0xff] %v2232_v0  ;;  %636 = vst [vmem:[#allocation2 + $0x168] sm:$0xff] %v2232_v0 }
  0x60   : > { %637 = vst [vmem:[#allocation2 + $0x170] sm:$0xff] %v2232_v0  ;;  %638 = vst [vmem:[#allocation2 + $0x178] sm:$0xff] %v2232_v0 }
  0x61   : > { %639 = vst [vmem:[#allocation2 + $0x180] sm:$0xff] %v2232_v0  ;;  %640 = vst [vmem:[#allocation2 + $0x188] sm:$0xff] %v2232_v0 }
  0x62   : > { %641 = vst [vmem:[#allocation2 + $0x190] sm:$0xff] %v2232_v0  ;;  %642 = vst [vmem:[#allocation2 + $0x198] sm:$0xff] %v2232_v0 }
  0x63   : > { %643 = vst [vmem:[#allocation2 + $0x1a0] sm:$0xff] %v2232_v0  ;;  %644 = vst [vmem:[#allocation2 + $0x1a8] sm:$0xff] %v2232_v0 }
  0x64   : > { %645 = vst [vmem:[#allocation2 + $0x1b0] sm:$0xff] %v2232_v0  ;;  %646 = vst [vmem:[#allocation2 + $0x1b8] sm:$0xff] %v2232_v0 }
  0x65   : > { %647 = vst [vmem:[#allocation2 + $0x1c0] sm:$0xff] %v2232_v0  ;;  %648 = vst [vmem:[#allocation2 + $0x1c8] sm:$0xff] %v2232_v0 }
  0x66   : > { %649 = vst [vmem:[#allocation2 + $0x1d0] sm:$0xff] %v2232_v0  ;;  %650 = vst [vmem:[#allocation2 + $0x1d8] sm:$0xff] %v2232_v0 }
  0x67   : > { %651 = vst [vmem:[#allocation2 + $0x1e0] sm:$0xff] %v2232_v0  ;;  %652 = vst [vmem:[#allocation2 + $0x1e8] sm:$0xff] %v2232_v0 }
  0x68   : > { %653 = vst [vmem:[#allocation2 + $0x1f0] sm:$0xff] %v2232_v0  ;;  %654 = vst [vmem:[#allocation2 + $0x1f8] sm:$0xff] %v2232_v0 }
  0x69 PF: > { %v2152_v1 = vld [vmem:[%s2440_s11] sm:$0xff]   ;;  %v2153_v2 = vld [vmem:[%s2440_s11 + $0x8] sm:$0xff]   ;;  %v2154_v3 = vld [vmem:[%s2440_s11 + $0x10] sm:$0xff]   ;;  %p1968_p11 = scmp.ne.s32.totalorder %s2222_s17, 8 }
  0x6a   : > { %2015 = vmatprep.subr.bf16.mxu0 %v2152_v1  ;;  %2095 = vmatprep.subr.bf16.mxu1 %v2152_v1  ;;  %v2155_v4 = vld [vmem:[%s2440_s11 + $0x18] sm:$0xff]   ;;  %v2160_v5 = vld [vmem:[%s2442_s12] sm:$0xff]   ;;  %v2157_v8 = vld [vmem:[%s2440_s11 + $0x28] sm:$0xff]  }
  0x6b   : > { %2016 = vmatpush3.bf16.msra.mxu0 %v2152_v1  ;;  %2103 = vmatpush3.bf16.msra.mxu1 %v2152_v1  ;;  %v2161_v6 = vld [vmem:[%s2442_s12 + $0x80] sm:$0xff]   ;;  %v2158_v9 = vld [vmem:[%s2440_s11 + $0x30] sm:$0xff]   ;;  %v2159_v10 = vld [vmem:[%s2440_s11 + $0x38] sm:$0xff]  }
  0x6c   : > { %2017 = vmatprep.subr.bf16.mxu0 %v2153_v2  ;;  %2096 = vmatprep.subr.bf16.mxu1 %v2153_v2  ;;  %v2156_v7 = vld [vmem:[%s2440_s11 + $0x20] sm:$0xff]   ;;  %v2162_v11 = vld [vmem:[%s2442_s12 + $0x8] sm:$0xff]   ;;  %v2164_v13 = vld [vmem:[%s2442_s12 + $0x10] sm:$0xff]  }
  0x6d   : > { %2031 = vmatprep.mubr.bf16.mxu0 %v2160_v5  ;;  %2063 = vmatprep.mubr.bf16.mxu1 %v2161_v6  ;;  %v2163_v12 = vld [vmem:[%s2442_s12 + $0x88] sm:$0xff]   ;;  %v2165_v14 = vld [vmem:[%s2442_s12 + $0x90] sm:$0xff]   ;;  %v2166_v15 = vld [vmem:[%s2442_s12 + $0x18] sm:$0xff]  }
  0x6e   : > { %v2167_v16 = vld [vmem:[%s2442_s12 + $0x98] sm:$0xff]   ;;  %v2168_v17 = vld [vmem:[%s2442_s12 + $0x20] sm:$0xff]   ;;  %v2170_v19 = vld [vmem:[%s2442_s12 + $0x28] sm:$0xff]  }
  0x6f   : > { %2018 = vmatpush3.bf16.msra.mxu0 %v2153_v2  ;;  %2104 = vmatpush3.bf16.msra.mxu1 %v2153_v2  ;;  %v2169_v18 = vld [vmem:[%s2442_s12 + $0xa0] sm:$0xff]   ;;  %v2171_v20 = vld [vmem:[%s2442_s12 + $0xa8] sm:$0xff]   ;;  %v2172_v21 = vld [vmem:[%s2442_s12 + $0x30] sm:$0xff]  }
  0x70   : > { %2019 = vmatprep.subr.bf16.mxu0 %v2154_v3  ;;  %2097 = vmatprep.subr.bf16.mxu1 %v2154_v3  ;;  %v2173_v22 = vld [vmem:[%s2442_s12 + $0xb0] sm:$0xff]   ;;  %v2174_v23 = vld [vmem:[%s2442_s12 + $0x38] sm:$0xff]   ;;  %v2176_v25 = vld [vmem:[%s2442_s12 + $0x40] sm:$0xff]  }
  0x71   : > { %v2175_v24 = vld [vmem:[%s2442_s12 + $0xb8] sm:$0xff]   ;;  %v2177_v26 = vld [vmem:[%s2442_s12 + $0xc0] sm:$0xff]   ;;  %v2178_v27 = vld [vmem:[%s2442_s12 + $0x48] sm:$0xff]  }
  0x72   : > { %v2179_v28 = vld [vmem:[%s2442_s12 + $0xc8] sm:$0xff]   ;;  %v2180_v29 = vld [vmem:[%s2442_s12 + $0x50] sm:$0xff]   ;;  %v2182_v31 = vld [vmem:[%s2442_s12 + $0x58] sm:$0xff]  }
  0x73   : > { %2020 = vmatpush3.bf16.msra.mxu0 %v2154_v3  ;;  %2105 = vmatpush3.bf16.msra.mxu1 %v2154_v3  ;;  %v2181_v30 = vld [vmem:[%s2442_s12 + $0xd0] sm:$0xff]   ;;  %v2183_v32 = vld [vmem:[%s2442_s12 + $0xd8] sm:$0xff]   ;;  %v2184_v33 = vld [vmem:[%s2442_s12 + $0x60] sm:$0xff]  }
  0x74   : > { %2021 = vmatprep.subr.bf16.mxu0 %v2155_v4  ;;  %2098 = vmatprep.subr.bf16.mxu1 %v2155_v4  ;;  %v2185_v34 = vld [vmem:[%s2442_s12 + $0xe0] sm:$0xff]   ;;  %v2186_v35 = vld [vmem:[%s2442_s12 + $0x68] sm:$0xff]   ;;  %v2188_v37 = vld [vmem:[%s2442_s12 + $0x70] sm:$0xff]  }
  0x75   : > { %v2187_v36 = vld [vmem:[%s2442_s12 + $0xe8] sm:$0xff]   ;;  %v2189_v38 = vld [vmem:[%s2442_s12 + $0xf0] sm:$0xff]   ;;  %v2190_v39 = vld [vmem:[%s2442_s12 + $0x78] sm:$0xff]  }
  0x76   : > { %v2191_v40 = vld [vmem:[%s2442_s12 + $0xf8] sm:$0xff]   ;;  %v657_v41 = vld [vmem:[#allocation2 + $0x10] sm:$0xff]  ;;  %v655_v43 = vld [vmem:[#allocation2] sm:$0xff] }
  0x77   : > { %2022 = vmatpush3.bf16.msra.mxu0 %v2155_v4  ;;  %2106 = vmatpush3.bf16.msra.mxu1 %v2155_v4  ;;  %v689_v42 = vld [vmem:[#allocation2 + $0x110] sm:$0xff]  ;;  %v687_v44 = vld [vmem:[#allocation2 + $0x100] sm:$0xff]  ;;  %v658_v47 = vld [vmem:[#allocation2 + $0x18] sm:$0xff] }
  0x78   : > { %2023 = vmatprep.subr.bf16.mxu0 %v2156_v7  ;;  %2099 = vmatprep.subr.bf16.mxu1 %v2156_v7  ;;  %v690_v48 = vld [vmem:[#allocation2 + $0x118] sm:$0xff]  ;;  %v656_v53 = vld [vmem:[#allocation2 + $0x8] sm:$0xff]  ;;  %v661_v1 = vld [vmem:[#allocation2 + $0x30] sm:$0xff] }
  0x79   : > { %v688_v54 = vld [vmem:[#allocation2 + $0x108] sm:$0xff]  ;;  %v693_v2 = vld [vmem:[#allocation2 + $0x130] sm:$0xff]  ;;  %v659_v3 = vld [vmem:[#allocation2 + $0x20] sm:$0xff] }
  0x7a   : > { %v691_v4 = vld [vmem:[#allocation2 + $0x120] sm:$0xff] }
  0x7b   : > { %2024 = vmatpush3.bf16.msra.mxu0 %v2156_v7  ;;  %2107 = vmatpush3.bf16.msra.mxu1 %v2156_v7  ;;  %v662_v7 = vld [vmem:[#allocation2 + $0x38] sm:$0xff] }
  0x7c   : > { %2025 = vmatprep.subr.bf16.mxu0 %v2157_v8  ;;  %2100 = vmatprep.subr.bf16.mxu1 %v2157_v8 }
  0x7f   : > { %2026 = vmatpush3.bf16.msra.mxu0 %v2157_v8  ;;  %2108 = vmatpush3.bf16.msra.mxu1 %v2157_v8  ;;  %v694_v8 = vld [vmem:[#allocation2 + $0x138] sm:$0xff] }
  0x80   : > { %2027 = vmatprep.subr.bf16.mxu0 %v2158_v9  ;;  %2101 = vmatprep.subr.bf16.mxu1 %v2158_v9 }
  0x83   : > { %2028 = vmatpush3.bf16.msra.mxu0 %v2158_v9  ;;  %2109 = vmatpush3.bf16.msra.mxu1 %v2158_v9 }
  0x84   : > { %2029 = vmatprep.subr.bf16.mxu0 %v2159_v10  ;;  %2102 = vmatprep.subr.bf16.mxu1 %v2159_v10 }
  0x87   : > { %2030 = vmatpush3.bf16.msra.mxu0 %v2159_v10  ;;  %2110 = vmatpush3.bf16.msra.mxu1 %v2159_v10 }
  0x8a   : > { %2032 = vmatmul.mubr.bf16.vlgmr.msra.gmra.mrb[0].mxu0 %v2162_v11  ;;  %2064 = vmatmul.mubr.bf16.vlgmr.msra.gmra.mrb[0].mxu1 %v2163_v12 }
  0x8b   : > { %2035 = vmatprep.mubr.bf16.mxu0 %v2164_v13  ;;  %2067 = vmatprep.mubr.bf16.mxu1 %v2165_v14  ;;  %v660_v13 = vld [vmem:[#allocation2 + $0x28] sm:$0xff] }
  0x8c   : > { %v692_v14 = vld [vmem:[#allocation2 + $0x128] sm:$0xff] }
  0x92   : > { %2036 = vmatmul.mubr.bf16.gmra.mrb[4].mxu0 %v2166_v15  ;;  %2068 = vmatmul.mubr.bf16.gmra.mrb[4].mxu1 %v2167_v16 }
  0x93   : > { %2039 = vmatprep.mubr.bf16.mxu0 %v2168_v17  ;;  %2071 = vmatprep.mubr.bf16.mxu1 %v2169_v18 }
  0x9a   : > { %2040 = vmatmul.mubr.bf16.gmra.mrb[8].mxu0 %v2170_v19  ;;  %2072 = vmatmul.mubr.bf16.gmra.mrb[8].mxu1 %v2171_v20 }
  0x9b   : > { %2043 = vmatprep.mubr.bf16.mxu0 %v2172_v21  ;;  %2075 = vmatprep.mubr.bf16.mxu1 %v2173_v22 }
  0xa2   : > { %2044 = vmatmul.mubr.bf16.gmra.mrb[12].mxu0 %v2174_v23  ;;  %2076 = vmatmul.mubr.bf16.gmra.mrb[12].mxu1 %v2175_v24 }
  0xa3   : > { %2047 = vmatprep.mubr.bf16.mxu0 %v2176_v25  ;;  %2079 = vmatprep.mubr.bf16.mxu1 %v2177_v26  ;;  %v665_v25 = vld [vmem:[#allocation2 + $0x50] sm:$0xff] }
  0xa4   : > { %v697_v26 = vld [vmem:[#allocation2 + $0x150] sm:$0xff] }
  0xaa   : > { %2048 = vmatmul.mubr.bf16.gmra.mrb[16].mxu0 %v2178_v27  ;;  %2080 = vmatmul.mubr.bf16.gmra.mrb[16].mxu1 %v2179_v28  ;;  %v663_v27 = vld [vmem:[#allocation2 + $0x40] sm:$0xff] }
  0xab   : > { %2051 = vmatprep.mubr.bf16.mxu0 %v2180_v29  ;;  %2083 = vmatprep.mubr.bf16.mxu1 %v2181_v30  ;;  %v695_v28 = vld [vmem:[#allocation2 + $0x140] sm:$0xff] }
  0xb2   : > { %2052 = vmatmul.mubr.bf16.gmra.mrb[20].mxu0 %v2182_v31  ;;  %2084 = vmatmul.mubr.bf16.gmra.mrb[20].mxu1 %v2183_v32  ;;  %v666_v31 = vld [vmem:[#allocation2 + $0x58] sm:$0xff] }
  0xb3   : > { %2055 = vmatprep.mubr.bf16.mxu0 %v2184_v33  ;;  %2087 = vmatprep.mubr.bf16.mxu1 %v2185_v34  ;;  %v698_v32 = vld [vmem:[#allocation2 + $0x158] sm:$0xff] }
  0xba   : > { %2056 = vmatmul.mubr.bf16.gmra.mrb[24].mxu0 %v2186_v35  ;;  %2088 = vmatmul.mubr.bf16.gmra.mrb[24].mxu1 %v2187_v36 }
  0xbb   : > { %2059 = vmatprep.mubr.bf16.mxu0 %v2188_v37  ;;  %2091 = vmatprep.mubr.bf16.mxu1 %v2189_v38  ;;  %v664_v37 = vld [vmem:[#allocation2 + $0x48] sm:$0xff] }
  0xbc   : > { %v696_v38 = vld [vmem:[#allocation2 + $0x148] sm:$0xff] }
  0xc2   : > { %2060 = vmatmul.mubr.bf16.gmra.mrb[28].mxu0 %v2190_v39  ;;  %2092 = vmatmul.mubr.bf16.gmra.mrb[28].mxu1 %v2191_v40 }
 0x15d   : > { %v2033_v45 = vpop.f32.mrb[0].mxu0  ;;  %v2065_v46 = vpop.f32.mrb[0].mxu1 }
 0x15e   : > { %v1330_v49 = vadd.f32 %v2033_v45, %v657_v41  ;;  %v1362_v50 = vadd.f32 %v2065_v46, %v689_v42  ;;  %v1073_v51 = vpop.f32.mrb[1].mxu0  ;;  %v1201_v52 = vpop.f32.mrb[1].mxu1 }
 0x15f   : > { %v1328_v55 = vadd.f32 %v1073_v51, %v655_v43  ;;  %v1360_v56 = vadd.f32 %v1201_v52, %v687_v44  ;;  %v2034_v57 = vpop.f32.mrb[2].mxu0  ;;  %v2066_v58 = vpop.f32.mrb[2].mxu1  ;;  %v667_v51 = vld [vmem:[#allocation2 + $0x60] sm:$0xff] }
 0x160   : > { %1394 = vst [vmem:[#allocation2 + $0x10] sm:$0xff] %v1330_v49  ;;  %1426 = vst [vmem:[#allocation2 + $0x110] sm:$0xff] %v1362_v50  ;;  %v1331_v59 = vadd.f32 %v2034_v57, %v658_v47  ;;  %v1363_v60 = vadd.f32 %v2066_v58, %v690_v48  ;;  %v1076_v61 = vpop.f32.mrb[3].mxu0  ;;  %v1204_v62 = vpop.f32.mrb[3].mxu1  ;;  %v669_v49 = vld [vmem:[#allocation2 + $0x70] sm:$0xff]  ;;  %v699_v52 = vld [vmem:[#allocation2 + $0x160] sm:$0xff] }
 0x161   : > { %1392 = vst [vmem:[#allocation2] sm:$0xff] %v1328_v55  ;;  %1424 = vst [vmem:[#allocation2 + $0x100] sm:$0xff] %v1360_v56  ;;  %v1329_v63 = vadd.f32 %v1076_v61, %v656_v53  ;;  %v1361_v0 = vadd.f32 %v1204_v62, %v688_v54  ;;  %v701_v50 = vld [vmem:[#allocation2 + $0x170] sm:$0xff]  ;;  %v670_v55 = vld [vmem:[#allocation2 + $0x78] sm:$0xff] }
 0x162   : > { %1395 = vst [vmem:[#allocation2 + $0x18] sm:$0xff] %v1331_v59  ;;  %1427 = vst [vmem:[#allocation2 + $0x118] sm:$0xff] %v1363_v60  ;;  %v702_v56 = vld [vmem:[#allocation2 + $0x178] sm:$0xff]  ;;  %v668_v61 = vld [vmem:[#allocation2 + $0x68] sm:$0xff] }
 0x163   : > { %1393 = vst [vmem:[#allocation2 + $0x8] sm:$0xff] %v1329_v63  ;;  %1425 = vst [vmem:[#allocation2 + $0x108] sm:$0xff] %v1361_v0  ;;  %v700_v62 = vld [vmem:[#allocation2 + $0x168] sm:$0xff] }
 0x165   : > { %v2037_v5 = vpop.f32.mrb[4].mxu0  ;;  %v2069_v6 = vpop.f32.mrb[4].mxu1 }
 0x166   : > { %v1334_v9 = vadd.f32 %v2037_v5, %v661_v1  ;;  %v1366_v10 = vadd.f32 %v2069_v6, %v693_v2  ;;  %v1089_v11 = vpop.f32.mrb[5].mxu0  ;;  %v1217_v12 = vpop.f32.mrb[5].mxu1 }
 0x167   : > { %v1332_v15 = vadd.f32 %v1089_v11, %v659_v3  ;;  %v1364_v16 = vadd.f32 %v1217_v12, %v691_v4  ;;  %v2038_v17 = vpop.f32.mrb[6].mxu0  ;;  %v2070_v18 = vpop.f32.mrb[6].mxu1  ;;  %v671_v11 = vld [vmem:[#allocation2 + $0x80] sm:$0xff] }
 0x168   : > { %1398 = vst [vmem:[#allocation2 + $0x30] sm:$0xff] %v1334_v9  ;;  %1430 = vst [vmem:[#allocation2 + $0x130] sm:$0xff] %v1366_v10  ;;  %v1335_v19 = vadd.f32 %v2038_v17, %v662_v7  ;;  %v1367_v20 = vadd.f32 %v2070_v18, %v694_v8  ;;  %v1092_v21 = vpop.f32.mrb[7].mxu0  ;;  %v1220_v22 = vpop.f32.mrb[7].mxu1  ;;  %v673_v9 = vld [vmem:[#allocation2 + $0x90] sm:$0xff]  ;;  %v703_v12 = vld [vmem:[#allocation2 + $0x180] sm:$0xff] }
 0x169   : > { %1396 = vst [vmem:[#allocation2 + $0x20] sm:$0xff] %v1332_v15  ;;  %1428 = vst [vmem:[#allocation2 + $0x120] sm:$0xff] %v1364_v16  ;;  %v1333_v23 = vadd.f32 %v1092_v21, %v660_v13  ;;  %v1365_v24 = vadd.f32 %v1220_v22, %v692_v14  ;;  %v705_v10 = vld [vmem:[#allocation2 + $0x190] sm:$0xff]  ;;  %v674_v15 = vld [vmem:[#allocation2 + $0x98] sm:$0xff] }
 0x16a   : > { %1399 = vst [vmem:[#allocation2 + $0x38] sm:$0xff] %v1335_v19  ;;  %1431 = vst [vmem:[#allocation2 + $0x138] sm:$0xff] %v1367_v20  ;;  %v706_v16 = vld [vmem:[#allocation2 + $0x198] sm:$0xff]  ;;  %v672_v21 = vld [vmem:[#allocation2 + $0x88] sm:$0xff] }
 0x16b   : > { %1397 = vst [vmem:[#allocation2 + $0x28] sm:$0xff] %v1333_v23  ;;  %1429 = vst [vmem:[#allocation2 + $0x128] sm:$0xff] %v1365_v24  ;;  %v704_v22 = vld [vmem:[#allocation2 + $0x188] sm:$0xff] }
 0x16d   : > { %v2041_v29 = vpop.f32.mrb[8].mxu0  ;;  %v2073_v30 = vpop.f32.mrb[8].mxu1 }
 0x16e   : > { %v1338_v33 = vadd.f32 %v2041_v29, %v665_v25  ;;  %v1370_v34 = vadd.f32 %v2073_v30, %v697_v26  ;;  %v1105_v35 = vpop.f32.mrb[9].mxu0  ;;  %v1233_v36 = vpop.f32.mrb[9].mxu1 }
 0x16f   : > { %v1336_v39 = vadd.f32 %v1105_v35, %v663_v27  ;;  %v1368_v40 = vadd.f32 %v1233_v36, %v695_v28  ;;  %v2042_v41 = vpop.f32.mrb[10].mxu0  ;;  %v2074_v42 = vpop.f32.mrb[10].mxu1  ;;  %v675_v35 = vld [vmem:[#allocation2 + $0xa0] sm:$0xff] }
 0x170   : > { %1402 = vst [vmem:[#allocation2 + $0x50] sm:$0xff] %v1338_v33  ;;  %1434 = vst [vmem:[#allocation2 + $0x150] sm:$0xff] %v1370_v34  ;;  %v1339_v43 = vadd.f32 %v2042_v41, %v666_v31  ;;  %v1371_v44 = vadd.f32 %v2074_v42, %v698_v32  ;;  %v1108_v45 = vpop.f32.mrb[11].mxu0  ;;  %v1236_v46 = vpop.f32.mrb[11].mxu1  ;;  %v677_v33 = vld [vmem:[#allocation2 + $0xb0] sm:$0xff]  ;;  %v707_v36 = vld [vmem:[#allocation2 + $0x1a0] sm:$0xff] }
 0x171   : > { %1400 = vst [vmem:[#allocation2 + $0x40] sm:$0xff] %v1336_v39  ;;  %1432 = vst [vmem:[#allocation2 + $0x140] sm:$0xff] %v1368_v40  ;;  %v1337_v47 = vadd.f32 %v1108_v45, %v664_v37  ;;  %v1369_v48 = vadd.f32 %v1236_v46, %v696_v38  ;;  %v709_v34 = vld [vmem:[#allocation2 + $0x1b0] sm:$0xff]  ;;  %v678_v39 = vld [vmem:[#allocation2 + $0xb8] sm:$0xff] }
 0x172   : > { %1403 = vst [vmem:[#allocation2 + $0x58] sm:$0xff] %v1339_v43  ;;  %1435 = vst [vmem:[#allocation2 + $0x158] sm:$0xff] %v1371_v44  ;;  %v710_v40 = vld [vmem:[#allocation2 + $0x1b8] sm:$0xff]  ;;  %v676_v45 = vld [vmem:[#allocation2 + $0xa8] sm:$0xff] }
 0x173   : > { %1401 = vst [vmem:[#allocation2 + $0x48] sm:$0xff] %v1337_v47  ;;  %1433 = vst [vmem:[#allocation2 + $0x148] sm:$0xff] %v1369_v48  ;;  %v708_v46 = vld [vmem:[#allocation2 + $0x1a8] sm:$0xff] }
 0x175   : > { %v2045_v53 = vpop.f32.mrb[12].mxu0  ;;  %v2077_v54 = vpop.f32.mrb[12].mxu1 }
 0x176   : > { %v1342_v57 = vadd.f32 %v2045_v53, %v669_v49  ;;  %v1374_v58 = vadd.f32 %v2077_v54, %v701_v50  ;;  %v1121_v59 = vpop.f32.mrb[13].mxu0  ;;  %v1249_v60 = vpop.f32.mrb[13].mxu1 }
 0x177   : > { %v1340_v63 = vadd.f32 %v1121_v59, %v667_v51  ;;  %v1372_v0 = vadd.f32 %v1249_v60, %v699_v52  ;;  %v2046_v1 = vpop.f32.mrb[14].mxu0  ;;  %v2078_v2 = vpop.f32.mrb[14].mxu1  ;;  %v679_v59 = vld [vmem:[#allocation2 + $0xc0] sm:$0xff] }
 0x178   : > { %1406 = vst [vmem:[#allocation2 + $0x70] sm:$0xff] %v1342_v57  ;;  %1438 = vst [vmem:[#allocation2 + $0x170] sm:$0xff] %v1374_v58  ;;  %v1343_v3 = vadd.f32 %v2046_v1, %v670_v55  ;;  %v1375_v4 = vadd.f32 %v2078_v2, %v702_v56  ;;  %v1124_v5 = vpop.f32.mrb[15].mxu0  ;;  %v1252_v6 = vpop.f32.mrb[15].mxu1  ;;  %v681_v57 = vld [vmem:[#allocation2 + $0xd0] sm:$0xff]  ;;  %v711_v60 = vld [vmem:[#allocation2 + $0x1c0] sm:$0xff] }
 0x179   : > { %1404 = vst [vmem:[#allocation2 + $0x60] sm:$0xff] %v1340_v63  ;;  %1436 = vst [vmem:[#allocation2 + $0x160] sm:$0xff] %v1372_v0  ;;  %v1341_v7 = vadd.f32 %v1124_v5, %v668_v61  ;;  %v1373_v8 = vadd.f32 %v1252_v6, %v700_v62  ;;  %v713_v58 = vld [vmem:[#allocation2 + $0x1d0] sm:$0xff]  ;;  %v682_v63 = vld [vmem:[#allocation2 + $0xd8] sm:$0xff] }
 0x17a   : > { %1407 = vst [vmem:[#allocation2 + $0x78] sm:$0xff] %v1343_v3  ;;  %1439 = vst [vmem:[#allocation2 + $0x178] sm:$0xff] %v1375_v4  ;;  %v714_v0 = vld [vmem:[#allocation2 + $0x1d8] sm:$0xff]  ;;  %v680_v5 = vld [vmem:[#allocation2 + $0xc8] sm:$0xff] }
 0x17b   : > { %1405 = vst [vmem:[#allocation2 + $0x68] sm:$0xff] %v1341_v7  ;;  %1437 = vst [vmem:[#allocation2 + $0x168] sm:$0xff] %v1373_v8  ;;  %v712_v6 = vld [vmem:[#allocation2 + $0x1c8] sm:$0xff] }
 0x17d   : > { %v2049_v13 = vpop.f32.mrb[16].mxu0  ;;  %v2081_v14 = vpop.f32.mrb[16].mxu1 }
 0x17e   : > { %v1346_v17 = vadd.f32 %v2049_v13, %v673_v9  ;;  %v1378_v18 = vadd.f32 %v2081_v14, %v705_v10  ;;  %v1137_v19 = vpop.f32.mrb[17].mxu0  ;;  %v1265_v20 = vpop.f32.mrb[17].mxu1 }
 0x17f   : > { %v1344_v23 = vadd.f32 %v1137_v19, %v671_v11  ;;  %v1376_v24 = vadd.f32 %v1265_v20, %v703_v12  ;;  %v2050_v25 = vpop.f32.mrb[18].mxu0  ;;  %v2082_v26 = vpop.f32.mrb[18].mxu1  ;;  %v683_v19 = vld [vmem:[#allocation2 + $0xe0] sm:$0xff] }
 0x180   : > { %1410 = vst [vmem:[#allocation2 + $0x90] sm:$0xff] %v1346_v17  ;;  %1442 = vst [vmem:[#allocation2 + $0x190] sm:$0xff] %v1378_v18  ;;  %v1347_v27 = vadd.f32 %v2050_v25, %v674_v15  ;;  %v1379_v28 = vadd.f32 %v2082_v26, %v706_v16  ;;  %v1140_v29 = vpop.f32.mrb[19].mxu0  ;;  %v1268_v30 = vpop.f32.mrb[19].mxu1  ;;  %v685_v17 = vld [vmem:[#allocation2 + $0xf0] sm:$0xff]  ;;  %v715_v20 = vld [vmem:[#allocation2 + $0x1e0] sm:$0xff] }
 0x181   : > { %1408 = vst [vmem:[#allocation2 + $0x80] sm:$0xff] %v1344_v23  ;;  %1440 = vst [vmem:[#allocation2 + $0x180] sm:$0xff] %v1376_v24  ;;  %v1345_v31 = vadd.f32 %v1140_v29, %v672_v21  ;;  %v1377_v32 = vadd.f32 %v1268_v30, %v704_v22  ;;  %v717_v18 = vld [vmem:[#allocation2 + $0x1f0] sm:$0xff]  ;;  %v686_v23 = vld [vmem:[#allocation2 + $0xf8] sm:$0xff] }
 0x182   : > { %1411 = vst [vmem:[#allocation2 + $0x98] sm:$0xff] %v1347_v27  ;;  %1443 = vst [vmem:[#allocation2 + $0x198] sm:$0xff] %v1379_v28  ;;  %v718_v24 = vld [vmem:[#allocation2 + $0x1f8] sm:$0xff]  ;;  %v684_v29 = vld [vmem:[#allocation2 + $0xe8] sm:$0xff] }
 0x183   : > { %1409 = vst [vmem:[#allocation2 + $0x88] sm:$0xff] %v1345_v31  ;;  %1441 = vst [vmem:[#allocation2 + $0x188] sm:$0xff] %v1377_v32  ;;  %v716_v30 = vld [vmem:[#allocation2 + $0x1e8] sm:$0xff] }
 0x185   : > { %v2053_v37 = vpop.f32.mrb[20].mxu0  ;;  %v2085_v38 = vpop.f32.mrb[20].mxu1 }
 0x186   : > { %v1350_v41 = vadd.f32 %v2053_v37, %v677_v33  ;;  %v1382_v42 = vadd.f32 %v2085_v38, %v709_v34  ;;  %v1153_v43 = vpop.f32.mrb[21].mxu0  ;;  %v1281_v44 = vpop.f32.mrb[21].mxu1 }
 0x187   : > { %v1348_v47 = vadd.f32 %v1153_v43, %v675_v35  ;;  %v1380_v48 = vadd.f32 %v1281_v44, %v707_v36  ;;  %v2054_v49 = vpop.f32.mrb[22].mxu0  ;;  %v2086_v50 = vpop.f32.mrb[22].mxu1  ;;  %v2558_v43 = vld [vmem:[%s2898_s3] ss:$0 sm:$0xff] (!%p1968_p11) }
 0x188   : > { %1414 = vst [vmem:[#allocation2 + $0xb0] sm:$0xff] %v1350_v41  ;;  %1446 = vst [vmem:[#allocation2 + $0x1b0] sm:$0xff] %v1382_v42  ;;  %v1351_v51 = vadd.f32 %v2054_v49, %v678_v39  ;;  %v1383_v52 = vadd.f32 %v2086_v50, %v710_v40  ;;  %v1156_v53 = vpop.f32.mrb[23].mxu0  ;;  %v1284_v54 = vpop.f32.mrb[23].mxu1  ;;  %v1460_v41 = vld [vmem:[#allocation2] sm:$0xff] (!%p1968_p11) }
 0x189   : > { %1412 = vst [vmem:[#allocation2 + $0xa0] sm:$0xff] %v1348_v47  ;;  %1444 = vst [vmem:[#allocation2 + $0x1a0] sm:$0xff] %v1380_v48  ;;  %v1349_v55 = vadd.f32 %v1156_v53, %v676_v45  ;;  %v1381_v56 = vadd.f32 %v1284_v54, %v708_v46  ;;  %v2553_v42 = vld [vmem:[%s2897_s2] ss:$0 sm:$0xff] (!%p1968_p11)  ;;  %v1461_v45 = vld [vmem:[#allocation2 + $0x8] sm:$0xff] (!%p1968_p11) }
 0x18a   : > { %1415 = vst [vmem:[#allocation2 + $0xb8] sm:$0xff] %v1351_v51  ;;  %1447 = vst [vmem:[#allocation2 + $0x1b8] sm:$0xff] %v1383_v52  ;;  %v1531_v44 = vmul.f32 (!%p1968_p11), %v2553_v42, %v1460_v41  ;;  %v1462_v46 = vld [vmem:[#allocation2 + $0x10] sm:$0xff] (!%p1968_p11)  ;;  %v1463_v47 = vld [vmem:[#allocation2 + $0x18] sm:$0xff] (!%p1968_p11)  ;;  %v1532_v48 = vmul.f32 (!%p1968_p11), %v2553_v42, %v1461_v45 }
 0x18b   : > { %1413 = vst [vmem:[#allocation2 + $0xa8] sm:$0xff] %v1349_v55  ;;  %1445 = vst [vmem:[#allocation2 + $0x1a8] sm:$0xff] %v1381_v56  ;;  %v1533_v49 = vmul.f32 (!%p1968_p11), %v2553_v42, %v1462_v46  ;;  %v1534_v50 = vmul.f32 (!%p1968_p11), %v2553_v42, %v1463_v47  ;;  %v1464_v51 = vld [vmem:[#allocation2 + $0x20] sm:$0xff] (!%p1968_p11)  ;;  %v1465_v52 = vld [vmem:[#allocation2 + $0x28] sm:$0xff] (!%p1968_p11) }
 0x18c   : > { %v1466_v53 = vld [vmem:[#allocation2 + $0x30] sm:$0xff] (!%p1968_p11)  ;;  %v1602_v54 = vadd.f32 (!%p1968_p11), %v2558_v43, %v1531_v44  ;;  %v1535_v55 = vmul.f32 (!%p1968_p11), %v2553_v42, %v1464_v51  ;;  %v1536_v56 = vmul.f32 (!%p1968_p11), %v2553_v42, %v1465_v52 }
 0x18d   : > { %v2057_v61 = vpop.f32.mrb[24].mxu0  ;;  %v2089_v62 = vpop.f32.mrb[24].mxu1 }
 0x18e   : > { %v1354_v1 = vadd.f32 %v2057_v61, %v681_v57  ;;  %v1386_v2 = vadd.f32 %v2089_v62, %v713_v58  ;;  %v1169_v3 = vpop.f32.mrb[25].mxu0  ;;  %v1297_v4 = vpop.f32.mrb[25].mxu1  ;;  %v1537_v57 = vmul.f32 (!%p1968_p11), %v2553_v42, %v1466_v53  ;;  %v1467_v58 = vld [vmem:[#allocation2 + $0x38] sm:$0xff] (!%p1968_p11)  ;;  %v1605_v61 = vadd.f32 (!%p1968_p11), %v2558_v43, %v1534_v50 }
 0x18f   : > { %v1352_v7 = vadd.f32 %v1169_v3, %v679_v59  ;;  %v1384_v8 = vadd.f32 %v1297_v4, %v711_v60  ;;  %v2058_v9 = vpop.f32.mrb[26].mxu0  ;;  %v2090_v10 = vpop.f32.mrb[26].mxu1  ;;  %v1603_v59 = vadd.f32 (!%p1968_p11), %v2558_v43, %v1532_v48  ;;  %v1604_v60 = vadd.f32 (!%p1968_p11), %v2558_v43, %v1533_v49  ;;  %v1469_v4 = vld [vmem:[#allocation2 + $0x48] sm:$0xff] (!%p1968_p11)  ;;  %v1482_v47 = vld [vmem:[#allocation2 + $0xb0] sm:$0xff] (!%p1968_p11) }
 0x190   : > { %1418 = vst [vmem:[#allocation2 + $0xd0] sm:$0xff] %v1354_v1  ;;  %1450 = vst [vmem:[#allocation2 + $0x1d0] sm:$0xff] %v1386_v2  ;;  %v1355_v11 = vadd.f32 %v2058_v9, %v682_v63  ;;  %v1387_v12 = vadd.f32 %v2090_v10, %v714_v0  ;;  %v1172_v13 = vpop.f32.mrb[27].mxu0  ;;  %v1300_v14 = vpop.f32.mrb[27].mxu1  ;;  %v1538_v62 = vmul.f32 (!%p1968_p11), %v2553_v42, %v1467_v58  ;;  %v1468_v63 = vld [vmem:[#allocation2 + $0x40] sm:$0xff] (!%p1968_p11)  ;;  %v1666_v0 = vmax.f32 (!%p1968_p11), %v1602_v54, 0.0 }
 0x191   : > { %1416 = vst [vmem:[#allocation2 + $0xc0] sm:$0xff] %v1352_v7  ;;  %1448 = vst [vmem:[#allocation2 + $0x1c0] sm:$0xff] %v1384_v8  ;;  %v1353_v15 = vadd.f32 %v1172_v13, %v680_v5  ;;  %v1385_v16 = vadd.f32 %v1300_v14, %v712_v6  ;;  %v1606_v1 = vadd.f32 (!%p1968_p11), %v2558_v43, %v1535_v55  ;;  %v1470_v5 = vld [vmem:[#allocation2 + $0x50] sm:$0xff] (!%p1968_p11)  ;;  %v1471_v6 = vld [vmem:[#allocation2 + $0x58] sm:$0xff] (!%p1968_p11)  ;;  %v1667_v7 = vmax.f32 (!%p1968_p11), %v1603_v59, 0.0 }
 0x192   : > { %1419 = vst [vmem:[#allocation2 + $0xd8] sm:$0xff] %v1355_v11  ;;  %1451 = vst [vmem:[#allocation2 + $0x1d8] sm:$0xff] %v1387_v12  ;;  %v1607_v2 = vadd.f32 (!%p1968_p11), %v2558_v43, %v1536_v56  ;;  %v1608_v3 = vadd.f32 (!%p1968_p11), %v2558_v43, %v1537_v57  ;;  %v1668_v8 = vmax.f32 (!%p1968_p11), %v1604_v60, 0.0  ;;  %v1669_v9 = vmax.f32 (!%p1968_p11), %v1605_v61, 0.0  ;;  %v1472_v11 = vld [vmem:[#allocation2 + $0x60] sm:$0xff] (!%p1968_p11)  ;;  %v1473_v12 = vld [vmem:[#allocation2 + $0x68] sm:$0xff] (!%p1968_p11) }
 0x193   : > { %1417 = vst [vmem:[#allocation2 + $0xc8] sm:$0xff] %v1353_v15  ;;  %1449 = vst [vmem:[#allocation2 + $0x1c8] sm:$0xff] %v1385_v16  ;;  %v1609_v10 = vadd.f32 (!%p1968_p11), %v2558_v43, %v1538_v62  ;;  %v1474_v13 = vld [vmem:[#allocation2 + $0x70] sm:$0xff] (!%p1968_p11)  ;;  %v1670_v14 = vmax.f32 (!%p1968_p11), %v1606_v1, 0.0  ;;  %v1480_v45 = vld [vmem:[#allocation2 + $0xa0] sm:$0xff] (!%p1968_p11)  ;;  %v1553_v60 = vmul.f32 (!%p1968_p11), %v2553_v42, %v1482_v47 }
 0x194   : > { %1730 = vst [vmem:[%s2899_s4] sm:$0xff] (!%p1968_p11), %v1666_v0  ;;  %v1671_v15 = vmax.f32 (!%p1968_p11), %v1607_v2, 0.0  ;;  %v1672_v16 = vmax.f32 (!%p1968_p11), %v1608_v3, 0.0  ;;  %1731 = vst [vmem:[%s2899_s4 + $0x8] sm:$0xff] (!%p1968_p11), %v1667_v7  ;;  %v1481_v46 = vld [vmem:[#allocation2 + $0xa8] sm:$0xff] (!%p1968_p11)  ;;  %v1483_v52 = vld [vmem:[#allocation2 + $0xb8] sm:$0xff] (!%p1968_p11)  ;;  %v1551_v58 = vmul.f32 (!%p1968_p11), %v2553_v42, %v1480_v45 }
 0x195   : > { %v2061_v21 = vpop.f32.mrb[28].mxu0  ;;  %v2093_v22 = vpop.f32.mrb[28].mxu1  ;;  %1459 = sbr.rel (%p1968_p11) target bundleno = 456 (0x1c8), region = 85  ;;  %1732 = vst [vmem:[%s2899_s4 + $0x10] sm:$0xff] (!%p1968_p11), %v1668_v8  ;;  %1733 = vst [vmem:[%s2899_s4 + $0x18] sm:$0xff] (!%p1968_p11), %v1669_v9  ;;  %v1552_v59 = vmul.f32 (!%p1968_p11), %v2553_v42, %v1481_v46  ;;  %v1554_v0 = vmul.f32 (!%p1968_p11), %v2553_v42, %v1483_v52  ;;  %v1496_v47 = vld [vmem:[#allocation2 + $0x120] sm:$0xff] (!%p1968_p11) }
 0x196   : > { %v1358_v25 = vadd.f32 %v2061_v21, %v685_v17  ;;  %v1390_v26 = vadd.f32 %v2093_v22, %v717_v18  ;;  %v1185_v27 = vpop.f32.mrb[29].mxu0  ;;  %v1313_v28 = vpop.f32.mrb[29].mxu1  ;;  %v1539_v17 = vmul.f32 (!%p1968_p11), %v2553_v42, %v1468_v63  ;;  %v1475_v18 = vld [vmem:[#allocation2 + $0x78] sm:$0xff] (!%p1968_p11)  ;;  %v1541_v21 = vmul.f32 (!%p1968_p11), %v2553_v42, %v1470_v5  ;;  %1734 = vst [vmem:[%s2899_s4 + $0x20] sm:$0xff] (!%p1968_p11), %v1670_v14 }
 0x197   : > { %v1356_v31 = vadd.f32 %v1185_v27, %v683_v19  ;;  %v1388_v32 = vadd.f32 %v1313_v28, %v715_v20  ;;  %v2062_v33 = vpop.f32.mrb[30].mxu0  ;;  %v2094_v34 = vpop.f32.mrb[30].mxu1  ;;  %v1673_v19 = vmax.f32 (!%p1968_p11), %v1609_v10, 0.0  ;;  %v1540_v20 = vmul.f32 (!%p1968_p11), %v2553_v42, %v1469_v4  ;;  %1735 = vst [vmem:[%s2899_s4 + $0x28] sm:$0xff] (!%p1968_p11), %v1671_v15  ;;  %1736 = vst [vmem:[%s2899_s4 + $0x30] sm:$0xff] (!%p1968_p11), %v1672_v16  ;;  %v1486_v7 = vld [vmem:[#allocation2 + $0xd0] sm:$0xff] (!%p1968_p11) }
 0x198   : > { %1422 = vst [vmem:[#allocation2 + $0xf0] sm:$0xff] %v1358_v25  ;;  %1454 = vst [vmem:[#allocation2 + $0x1f0] sm:$0xff] %v1390_v26  ;;  %v1359_v35 = vadd.f32 %v2062_v33, %v686_v23  ;;  %v1391_v36 = vadd.f32 %v2094_v34, %v718_v24  ;;  %v1188_v37 = vpop.f32.mrb[31].mxu0  ;;  %v1316_v38 = vpop.f32.mrb[31].mxu1  ;;  %v1542_v22 = vmul.f32 (!%p1968_p11), %v2553_v42, %v1471_v6  ;;  %v1484_v1 = vld [vmem:[#allocation2 + $0xc0] sm:$0xff] (!%p1968_p11) }
 0x199   : > { %1420 = vst [vmem:[#allocation2 + $0xe0] sm:$0xff] %v1356_v31  ;;  %1452 = vst [vmem:[#allocation2 + $0x1e0] sm:$0xff] %v1388_v32  ;;  %v1357_v39 = vadd.f32 %v1188_v37, %v684_v29  ;;  %v1389_v40 = vadd.f32 %v1316_v38, %v716_v30  ;;  %v1610_v23 = vadd.f32 (!%p1968_p11), %v2558_v43, %v1539_v17  ;;  %v1476_v31 = vld [vmem:[#allocation2 + $0x80] sm:$0xff] (!%p1968_p11)  ;;  %v1478_v37 = vld [vmem:[#allocation2 + $0x90] sm:$0xff] (!%p1968_p11) }
 0x19a   : > { %1423 = vst [vmem:[#allocation2 + $0xf8] sm:$0xff] %v1359_v35  ;;  %1455 = vst [vmem:[#allocation2 + $0x1f8] sm:$0xff] %v1391_v36  ;;  %v1543_v24 = vmul.f32 (!%p1968_p11), %v2553_v42, %v1472_v11  ;;  %v1544_v25 = vmul.f32 (!%p1968_p11), %v2553_v42, %v1473_v12  ;;  %v1545_v26 = vmul.f32 (!%p1968_p11), %v2553_v42, %v1474_v13  ;;  %v1477_v36 = vld [vmem:[#allocation2 + $0x88] sm:$0xff] (!%p1968_p11)  ;;  %v1479_v38 = vld [vmem:[#allocation2 + $0x98] sm:$0xff] (!%p1968_p11) }
 0x19b   : > { %1421 = vst [vmem:[#allocation2 + $0xe8] sm:$0xff] %v1357_v39  ;;  %1453 = vst [vmem:[#allocation2 + $0x1e8] sm:$0xff] %v1389_v40  ;;  %v1611_v27 = vadd.f32 (!%p1968_p11), %v2558_v43, %v1540_v20  ;;  %v1612_v28 = vadd.f32 (!%p1968_p11), %v2558_v43, %v1541_v21  ;;  %v1613_v29 = vadd.f32 (!%p1968_p11), %v2558_v43, %v1542_v22  ;;  %v1674_v32 = vmax.f32 (!%p1968_p11), %v1610_v23, 0.0  ;;  %v1485_v6 = vld [vmem:[#allocation2 + $0xc8] sm:$0xff] (!%p1968_p11)  ;;  %v1487_v8 = vld [vmem:[#allocation2 + $0xd8] sm:$0xff] (!%p1968_p11) }
 0x19c   : > { %1737 = vst [vmem:[%s2899_s4 + $0x38] sm:$0xff] %v1673_v19  ;;  %v1546_v30 = vmul.f32 %v2553_v42, %v1475_v18  ;;  %v1614_v33 = vadd.f32 %v2558_v43, %v1543_v24  ;;  %v1615_v34 = vadd.f32 %v2558_v43, %v1544_v25  ;;  %v1616_v35 = vadd.f32 %v2558_v43, %v1545_v26 }
 0x19d   : > { %v1675_v39 = vmax.f32 %v1611_v27, 0.0  ;;  %v1676_v40 = vmax.f32 %v1612_v28, 0.0  ;;  %v1677_v41 = vmax.f32 %v1613_v29, 0.0  ;;  %1738 = vst [vmem:[%s2899_s4 + $0x40] sm:$0xff] %v1674_v32  ;;  %v1547_v51 = vmul.f32 %v2553_v42, %v1476_v31 }
 0x19e   : > { %v1617_v44 = vadd.f32 %v2558_v43, %v1546_v30  ;;  %v1678_v48 = vmax.f32 %v1614_v33, 0.0  ;;  %v1679_v49 = vmax.f32 %v1615_v34, 0.0  ;;  %v1680_v50 = vmax.f32 %v1616_v35, 0.0  ;;  %v1492_v33 = vld [vmem:[#allocation2 + $0x100] sm:$0xff] }
 0x19f   : > { %1739 = vst [vmem:[%s2899_s4 + $0x48] sm:$0xff] %v1675_v39  ;;  %1740 = vst [vmem:[%s2899_s4 + $0x50] sm:$0xff] %v1676_v40  ;;  %v1548_v54 = vmul.f32 %v2553_v42, %v1477_v36  ;;  %v1549_v55 = vmul.f32 %v2553_v42, %v1478_v37  ;;  %v1550_v56 = vmul.f32 %v2553_v42, %v1479_v38  ;;  %v1490_v15 = vld [vmem:[#allocation2 + $0xf0] sm:$0xff]  ;;  %v1493_v38 = vld [vmem:[#allocation2 + $0x108] sm:$0xff] }
 0x1a0   : > { %1741 = vst [vmem:[%s2899_s4 + $0x58] sm:$0xff] %v1677_v41  ;;  %v1681_v53 = vmax.f32 %v1617_v44, 0.0  ;;  %1742 = vst [vmem:[%s2899_s4 + $0x60] sm:$0xff] %v1678_v48  ;;  %v1618_v57 = vadd.f32 %v2558_v43, %v1547_v51  ;;  %v1622_v3 = vadd.f32 %v2558_v43, %v1551_v58  ;;  %v1623_v4 = vadd.f32 %v2558_v43, %v1552_v59  ;;  %v1488_v13 = vld [vmem:[#allocation2 + $0xe0] sm:$0xff]  ;;  %v1494_v39 = vld [vmem:[#allocation2 + $0x110] sm:$0xff] }
 0x1a1   : > { %1743 = vst [vmem:[%s2899_s4 + $0x68] sm:$0xff] %v1679_v49  ;;  %1744 = vst [vmem:[%s2899_s4 + $0x70] sm:$0xff] %v1680_v50  ;;  %v1619_v61 = vadd.f32 %v2558_v43, %v1548_v54  ;;  %v1620_v62 = vadd.f32 %v2558_v43, %v1549_v55  ;;  %v1621_v63 = vadd.f32 %v2558_v43, %v1550_v56  ;;  %v1491_v20 = vld [vmem:[#allocation2 + $0xf8] sm:$0xff]  ;;  %v1497_v48 = vld [vmem:[#allocation2 + $0x128] sm:$0xff] }
 0x1a2   : > { %1745 = vst [vmem:[%s2899_s4 + $0x78] sm:$0xff] %v1681_v53  ;;  %v1682_v2 = vmax.f32 %v1618_v57, 0.0  ;;  %v1624_v5 = vadd.f32 %v2558_v43, %v1553_v60  ;;  %v1625_v12 = vadd.f32 %v2558_v43, %v1554_v0  ;;  %v1489_v14 = vld [vmem:[#allocation2 + $0xe8] sm:$0xff]  ;;  %v1686_v16 = vmax.f32 %v1622_v3, 0.0  ;;  %v1495_v40 = vld [vmem:[#allocation2 + $0x118] sm:$0xff]  ;;  %v1498_v49 = vld [vmem:[#allocation2 + $0x130] sm:$0xff] }
 0x1a3   : > { %v1683_v9 = vmax.f32 %v1619_v61, 0.0  ;;  %v1684_v10 = vmax.f32 %v1620_v62, 0.0  ;;  %v1685_v11 = vmax.f32 %v1621_v63, 0.0  ;;  %v1687_v17 = vmax.f32 %v1623_v4, 0.0  ;;  %v1499_v54 = vld [vmem:[#allocation2 + $0x138] sm:$0xff]  ;;  %v1500_v3 = vld [vmem:[#allocation2 + $0x140] sm:$0xff] }
 0x1a4   : > { %1746 = vst [vmem:[%s2899_s4 + $0x80] sm:$0xff] %v1682_v2  ;;  %v1688_v18 = vmax.f32 %v1624_v5, 0.0  ;;  %v1555_v19 = vmul.f32 %v2553_v42, %v1484_v1  ;;  %v1689_v21 = vmax.f32 %v1625_v12, 0.0  ;;  %v1556_v22 = vmul.f32 %v2553_v42, %v1485_v6  ;;  %1750 = vst [vmem:[%s2899_s4 + $0xa0] sm:$0xff] %v1686_v16  ;;  %v1505_v16 = vld [vmem:[#allocation2 + $0x168] sm:$0xff] }
 0x1a5   : > { %1747 = vst [vmem:[%s2899_s4 + $0x88] sm:$0xff] %v1683_v9  ;;  %1748 = vst [vmem:[%s2899_s4 + $0x90] sm:$0xff] %v1684_v10  ;;  %v1557_v23 = vmul.f32 %v2553_v42, %v1486_v7  ;;  %v1558_v24 = vmul.f32 %v2553_v42, %v1487_v8  ;;  %v1559_v26 = vmul.f32 %v2553_v42, %v1488_v13  ;;  %v1501_v8 = vld [vmem:[#allocation2 + $0x148] sm:$0xff]  ;;  %v1502_v9 = vld [vmem:[#allocation2 + $0x150] sm:$0xff] }
 0x1a6   : > { %1749 = vst [vmem:[%s2899_s4 + $0x98] sm:$0xff] %v1685_v11  ;;  %1751 = vst [vmem:[%s2899_s4 + $0xa8] sm:$0xff] %v1687_v17  ;;  %v1626_v25 = vadd.f32 %v2558_v43, %v1555_v19  ;;  %v1560_v27 = vmul.f32 %v2553_v42, %v1489_v14  ;;  %v1561_v28 = vmul.f32 %v2553_v42, %v1490_v15  ;;  %v1503_v10 = vld [vmem:[#allocation2 + $0x158] sm:$0xff]  ;;  %v1504_v15 = vld [vmem:[#allocation2 + $0x160] sm:$0xff] }
 0x1a7   : > { %1752 = vst [vmem:[%s2899_s4 + $0xb0] sm:$0xff] %v1688_v18  ;;  %1753 = vst [vmem:[%s2899_s4 + $0xb8] sm:$0xff] %v1689_v21  ;;  %v1627_v29 = vadd.f32 %v2558_v43, %v1556_v22  ;;  %v1628_v30 = vadd.f32 %v2558_v43, %v1557_v23  ;;  %v1629_v31 = vadd.f32 %v2558_v43, %v1558_v24  ;;  %v1506_v17 = vld [vmem:[#allocation2 + $0x170] sm:$0xff]  ;;  %v1507_v22 = vld [vmem:[#allocation2 + $0x178] sm:$0xff] }
 0x1a8   : > { %v1562_v32 = vmul.f32 %v2553_v42, %v1491_v20  ;;  %v1690_v34 = vmax.f32 %v1626_v25, 0.0  ;;  %v1630_v35 = vadd.f32 %v2558_v43, %v1559_v26  ;;  %v1631_v36 = vadd.f32 %v2558_v43, %v1560_v27 }
 0x1a9   : > { %v1632_v37 = vadd.f32 %v2558_v43, %v1561_v28  ;;  %v1691_v41 = vmax.f32 %v1627_v29, 0.0  ;;  %v1692_v44 = vmax.f32 %v1628_v30, 0.0  ;;  %v1693_v45 = vmax.f32 %v1629_v31, 0.0 }
 0x1aa   : > { %v1633_v46 = vadd.f32 %v2558_v43, %v1562_v32  ;;  %1754 = vst [vmem:[%s2899_s4 + $0xc0] sm:$0xff] %v1690_v34  ;;  %v1694_v50 = vmax.f32 %v1630_v35, 0.0  ;;  %v1695_v51 = vmax.f32 %v1631_v36, 0.0  ;;  %v1563_v53 = vmul.f32 %v2553_v42, %v1492_v33  ;;  %v1508_v35 = vld [vmem:[#allocation2 + $0x180] sm:$0xff] }
 0x1ab   : > { %v1696_v52 = vmax.f32 %v1632_v37, 0.0  ;;  %1755 = vst [vmem:[%s2899_s4 + $0xc8] sm:$0xff] %v1691_v41  ;;  %1756 = vst [vmem:[%s2899_s4 + $0xd0] sm:$0xff] %v1692_v44  ;;  %v1564_v56 = vmul.f32 %v2553_v42, %v1493_v38  ;;  %v1565_v57 = vmul.f32 %v2553_v42, %v1494_v39  ;;  %v1566_v58 = vmul.f32 %v2553_v42, %v1495_v40  ;;  %v1509_v40 = vld [vmem:[#allocation2 + $0x188] sm:$0xff]  ;;  %v1510_v41 = vld [vmem:[#allocation2 + $0x190] sm:$0xff] }
 0x1ac   : > { %1757 = vst [vmem:[%s2899_s4 + $0xd8] sm:$0xff] %v1693_v45  ;;  %v1697_v55 = vmax.f32 %v1633_v46, 0.0  ;;  %1758 = vst [vmem:[%s2899_s4 + $0xe0] sm:$0xff] %v1694_v50  ;;  %v1634_v59 = vadd.f32 %v2558_v43, %v1563_v53  ;;  %v1567_v60 = vmul.f32 %v2553_v42, %v1496_v47  ;;  %v1568_v61 = vmul.f32 %v2553_v42, %v1497_v48  ;;  %v1511_v44 = vld [vmem:[#allocation2 + $0x198] sm:$0xff]  ;;  %v1513_v50 = vld [vmem:[#allocation2 + $0x1a8] sm:$0xff] }
 0x1ad   : > { %1759 = vst [vmem:[%s2899_s4 + $0xe8] sm:$0xff] %v1695_v51  ;;  %1760 = vst [vmem:[%s2899_s4 + $0xf0] sm:$0xff] %v1696_v52  ;;  %v1569_v62 = vmul.f32 %v2553_v42, %v1498_v49  ;;  %v1635_v63 = vadd.f32 %v2558_v43, %v1564_v56  ;;  %v1636_v0 = vadd.f32 %v2558_v43, %v1565_v57  ;;  %v1512_v49 = vld [vmem:[#allocation2 + $0x1a0] sm:$0xff]  ;;  %v1514_v51 = vld [vmem:[#allocation2 + $0x1b0] sm:$0xff] }
 0x1ae   : > { %1761 = vst [vmem:[%s2899_s4 + $0xf8] sm:$0xff] %v1697_v55  ;;  %v1637_v1 = vadd.f32 %v2558_v43, %v1566_v58  ;;  %v1570_v2 = vmul.f32 %v2553_v42, %v1499_v54  ;;  %v1698_v4 = vmax.f32 %v1634_v59, 0.0  ;;  %v1638_v5 = vadd.f32 %v2558_v43, %v1567_v60  ;;  %v1515_v56 = vld [vmem:[#allocation2 + $0x1b8] sm:$0xff] }
 0x1af   : > { %v1639_v6 = vadd.f32 %v2558_v43, %v1568_v61  ;;  %v1640_v7 = vadd.f32 %v2558_v43, %v1569_v62  ;;  %v1699_v11 = vmax.f32 %v1635_v63, 0.0  ;;  %v1700_v12 = vmax.f32 %v1636_v0, 0.0 }
 0x1b0   : > { %v1701_v13 = vmax.f32 %v1637_v1, 0.0  ;;  %v1641_v14 = vadd.f32 %v2558_v43, %v1570_v2  ;;  %1762 = vst [vmem:[%s2899_s4 + $0x100] sm:$0xff] %v1698_v4  ;;  %v1702_v18 = vmax.f32 %v1638_v5, 0.0  ;;  %v1571_v21 = vmul.f32 %v2553_v42, %v1500_v3  ;;  %v1516_v5 = vld [vmem:[#allocation2 + $0x1c0] sm:$0xff] }
 0x1b1   : > { %v1703_v19 = vmax.f32 %v1639_v6, 0.0  ;;  %v1704_v20 = vmax.f32 %v1640_v7, 0.0  ;;  %1763 = vst [vmem:[%s2899_s4 + $0x108] sm:$0xff] %v1699_v11  ;;  %1764 = vst [vmem:[%s2899_s4 + $0x110] sm:$0xff] %v1700_v12  ;;  %v1572_v24 = vmul.f32 %v2553_v42, %v1501_v8  ;;  %v1573_v25 = vmul.f32 %v2553_v42, %v1502_v9  ;;  %v1518_v11 = vld [vmem:[#allocation2 + $0x1d0] sm:$0xff]  ;;  %v1519_v12 = vld [vmem:[#allocation2 + $0x1d8] sm:$0xff] }
 0x1b2   : > { %1765 = vst [vmem:[%s2899_s4 + $0x118] sm:$0xff] %v1701_v13  ;;  %v1705_v23 = vmax.f32 %v1641_v14, 0.0  ;;  %v1574_v26 = vmul.f32 %v2553_v42, %v1503_v10  ;;  %1766 = vst [vmem:[%s2899_s4 + $0x120] sm:$0xff] %v1702_v18  ;;  %v1642_v27 = vadd.f32 %v2558_v43, %v1571_v21  ;;  %v1575_v28 = vmul.f32 %v2553_v42, %v1504_v15  ;;  %v1517_v10 = vld [vmem:[#allocation2 + $0x1c8] sm:$0xff] }
 0x1b3   : > { %1767 = vst [vmem:[%s2899_s4 + $0x128] sm:$0xff] %v1703_v19  ;;  %1768 = vst [vmem:[%s2899_s4 + $0x130] sm:$0xff] %v1704_v20  ;;  %v1576_v29 = vmul.f32 %v2553_v42, %v1505_v16  ;;  %v1577_v30 = vmul.f32 %v2553_v42, %v1506_v17  ;;  %v1643_v31 = vadd.f32 %v2558_v43, %v1572_v24  ;;  %v1520_v17 = vld [vmem:[#allocation2 + $0x1e0] sm:$0xff]  ;;  %v1521_v18 = vld [vmem:[#allocation2 + $0x1e8] sm:$0xff] }
 0x1b4   : > { %1769 = vst [vmem:[%s2899_s4 + $0x138] sm:$0xff] %v1705_v23  ;;  %v1644_v32 = vadd.f32 %v2558_v43, %v1573_v25  ;;  %v1645_v33 = vadd.f32 %v2558_v43, %v1574_v26  ;;  %v1578_v34 = vmul.f32 %v2553_v42, %v1507_v22  ;;  %v1706_v36 = vmax.f32 %v1642_v27, 0.0  ;;  %v1522_v19 = vld [vmem:[#allocation2 + $0x1f0] sm:$0xff]  ;;  %v1523_v24 = vld [vmem:[#allocation2 + $0x1f8] sm:$0xff] }
 0x1b5   : > { %v1646_v37 = vadd.f32 %v2558_v43, %v1575_v28  ;;  %v1647_v38 = vadd.f32 %v2558_v43, %v1576_v29  ;;  %v1648_v39 = vadd.f32 %v2558_v43, %v1577_v30  ;;  %v1707_v45 = vmax.f32 %v1643_v31, 0.0 }
 0x1b6   : > { %v1708_v46 = vmax.f32 %v1644_v32, 0.0  ;;  %v1709_v47 = vmax.f32 %v1645_v33, 0.0  ;;  %v1649_v48 = vadd.f32 %v2558_v43, %v1578_v34  ;;  %1770 = vst [vmem:[%s2899_s4 + $0x140] sm:$0xff] %v1706_v36  ;;  %v1579_v55 = vmul.f32 %v2553_v42, %v1508_v35 }
 0x1b7   : > { %v1710_v52 = vmax.f32 %v1646_v37, 0.0  ;;  %v1711_v53 = vmax.f32 %v1647_v38, 0.0  ;;  %v1712_v54 = vmax.f32 %v1648_v39, 0.0  ;;  %1771 = vst [vmem:[%s2899_s4 + $0x148] sm:$0xff] %v1707_v45  ;;  %v1580_v58 = vmul.f32 %v2553_v42, %v1509_v40 }
 0x1b8   : > { %1772 = vst [vmem:[%s2899_s4 + $0x150] sm:$0xff] %v1708_v46  ;;  %1773 = vst [vmem:[%s2899_s4 + $0x158] sm:$0xff] %v1709_v47  ;;  %v1713_v57 = vmax.f32 %v1649_v48, 0.0  ;;  %v1581_v59 = vmul.f32 %v2553_v42, %v1510_v41  ;;  %v1582_v60 = vmul.f32 %v2553_v42, %v1511_v44  ;;  %v1650_v61 = vadd.f32 %v2558_v43, %v1579_v55 }
 0x1b9   : > { %1774 = vst [vmem:[%s2899_s4 + $0x160] sm:$0xff] %v1710_v52  ;;  %1775 = vst [vmem:[%s2899_s4 + $0x168] sm:$0xff] %v1711_v53  ;;  %v1583_v62 = vmul.f32 %v2553_v42, %v1512_v49  ;;  %v1584_v63 = vmul.f32 %v2553_v42, %v1513_v50  ;;  %v1585_v0 = vmul.f32 %v2553_v42, %v1514_v51 }
 0x1ba   : > { %1776 = vst [vmem:[%s2899_s4 + $0x170] sm:$0xff] %v1712_v54  ;;  %1777 = vst [vmem:[%s2899_s4 + $0x178] sm:$0xff] %v1713_v57  ;;  %v1651_v1 = vadd.f32 %v2558_v43, %v1580_v58  ;;  %v1652_v2 = vadd.f32 %v2558_v43, %v1581_v59  ;;  %v1653_v3 = vadd.f32 %v2558_v43, %v1582_v60  ;;  %v1714_v6 = vmax.f32 %v1650_v61, 0.0 }
 0x1bb   : > { %v1586_v4 = vmul.f32 %v2553_v42, %v1515_v56  ;;  %v1654_v7 = vadd.f32 %v2558_v43, %v1583_v62  ;;  %v1655_v8 = vadd.f32 %v2558_v43, %v1584_v63  ;;  %v1656_v9 = vadd.f32 %v2558_v43, %v1585_v0 }
 0x1bc   : > { %v1715_v13 = vmax.f32 %v1651_v1, 0.0  ;;  %v1716_v14 = vmax.f32 %v1652_v2, 0.0  ;;  %v1717_v15 = vmax.f32 %v1653_v3, 0.0  ;;  %1778 = vst [vmem:[%s2899_s4 + $0x180] sm:$0xff] %v1714_v6  ;;  %v1587_v23 = vmul.f32 %v2553_v42, %v1516_v5 }
 0x1bd   : > { %v1657_v16 = vadd.f32 %v2558_v43, %v1586_v4  ;;  %v1718_v20 = vmax.f32 %v1654_v7, 0.0  ;;  %v1719_v21 = vmax.f32 %v1655_v8, 0.0  ;;  %v1720_v22 = vmax.f32 %v1656_v9, 0.0 }
 0x1be   : > { %1779 = vst [vmem:[%s2899_s4 + $0x188] sm:$0xff] %v1715_v13  ;;  %1780 = vst [vmem:[%s2899_s4 + $0x190] sm:$0xff] %v1716_v14  ;;  %v1588_v26 = vmul.f32 %v2553_v42, %v1517_v10  ;;  %v1589_v27 = vmul.f32 %v2553_v42, %v1518_v11  ;;  %v1590_v28 = vmul.f32 %v2553_v42, %v1519_v12 }
 0x1bf   : > { %1781 = vst [vmem:[%s2899_s4 + $0x198] sm:$0xff] %v1717_v15  ;;  %v1721_v25 = vmax.f32 %v1657_v16, 0.0  ;;  %1782 = vst [vmem:[%s2899_s4 + $0x1a0] sm:$0xff] %v1718_v20  ;;  %v1658_v29 = vadd.f32 %v2558_v43, %v1587_v23  ;;  %v1591_v30 = vmul.f32 %v2553_v42, %v1520_v17  ;;  %v1592_v31 = vmul.f32 %v2553_v42, %v1521_v18 }
 0x1c0   : > { %1783 = vst [vmem:[%s2899_s4 + $0x1a8] sm:$0xff] %v1719_v21  ;;  %1784 = vst [vmem:[%s2899_s4 + $0x1b0] sm:$0xff] %v1720_v22  ;;  %v1593_v32 = vmul.f32 %v2553_v42, %v1522_v19  ;;  %v1659_v33 = vadd.f32 %v2558_v43, %v1588_v26  ;;  %v1660_v34 = vadd.f32 %v2558_v43, %v1589_v27 }
 0x1c1   : > { %1785 = vst [vmem:[%s2899_s4 + $0x1b8] sm:$0xff] %v1721_v25  ;;  %v1661_v35 = vadd.f32 %v2558_v43, %v1590_v28  ;;  %v1594_v36 = vmul.f32 %v2553_v42, %v1523_v24  ;;  %v1722_v37 = vmax.f32 %v1658_v29, 0.0  ;;  %v1662_v38 = vadd.f32 %v2558_v43, %v1591_v30 }
 0x1c2   : > { %v1663_v39 = vadd.f32 %v2558_v43, %v1592_v31  ;;  %v1664_v40 = vadd.f32 %v2558_v43, %v1593_v32  ;;  %v1723_v41 = vmax.f32 %v1659_v33, 0.0  ;;  %v1724_v44 = vmax.f32 %v1660_v34, 0.0 }
 0x1c3   : > { %v1725_v45 = vmax.f32 %v1661_v35, 0.0  ;;  %v1665_v46 = vadd.f32 %v2558_v43, %v1594_v36  ;;  %1786 = vst [vmem:[%s2899_s4 + $0x1c0] sm:$0xff] %v1722_v37  ;;  %v1726_v47 = vmax.f32 %v1662_v38, 0.0 }
 0x1c4   : > { %v1727_v48 = vmax.f32 %v1663_v39, 0.0  ;;  %v1728_v49 = vmax.f32 %v1664_v40, 0.0  ;;  %1787 = vst [vmem:[%s2899_s4 + $0x1c8] sm:$0xff] %v1723_v41  ;;  %1788 = vst [vmem:[%s2899_s4 + $0x1d0] sm:$0xff] %v1724_v44 }
 0x1c5   : > { %1789 = vst [vmem:[%s2899_s4 + $0x1d8] sm:$0xff] %v1725_v45  ;;  %v1729_v42 = vmax.f32 %v1665_v46, 0.0  ;;  %1790 = vst [vmem:[%s2899_s4 + $0x1e0] sm:$0xff] %v1726_v47 }
 0x1c6   : > { %1791 = vst [vmem:[%s2899_s4 + $0x1e8] sm:$0xff] %v1727_v48  ;;  %1792 = vst [vmem:[%s2899_s4 + $0x1f0] sm:$0xff] %v1728_v49 }
 0x1c7   : > { %1793 = vst [vmem:[%s2899_s4 + $0x1f8] sm:$0xff] %v1729_v42 }
 0x1c8 PF: > { %s14_s19 = sadd.s32 1, %s2230_s19   ;;  %s2900_s15 = smov %s2218_s16 }
 0x1c9   : > { %p11_p12 = scmp.ge.s32.totalorder %s14_s19, 11   ;;  %s2901_s16 = smov %s2293_s23 }
 0x1ca   : > { %s2902_s17 = smov %s2226_s18  ;;  %s2903_s18 = smov %s2905_s20 }
 0x1cb   :  { %13 = sbr.rel (!%p11_p12) target bundleno = 3 (0x3), region = 129 }

// kernel: bottleneck_forward.7
= control target key start
LH: loop header
LB: loop body
LE: loop exit
PB: predicated region body
PF: predicated region fallthrough
CT: control target
= control target key end

     0   :  { %s2249_s1 = inlined_call_operand.vmem [shape: bf16[128,128], index: 1, kind: input, shape index: {}]   ;;  %s2250_s0 = inlined_call_operand.vmem [shape: bf16[512,128], index: 0, kind: input, shape index: {}]   ;;  %s2251_s2 = inlined_call_operand.vmem [shape: f32[1,128], index: 2, kind: input, shape index: {}]   ;;  %s2252_s3 = inlined_call_operand.vmem [shape: f32[1,128], index: 3, kind: input, shape index: {}]   ;;  %s2253_s4 = inlined_call_operand.vmem [shape: f32[512,128], index: 4, kind: input, shape index: {}]   ;;  %s2254_s5 = inlined_call_operand.vmem [shape: f32[512,128], index: 5, kind: output, shape index: {}]  }
   0x1   :  { %v1537_v0 = vld [vmem:[%s2249_s1] sm:$0xff]   ;;  %v1538_v1 = vld [vmem:[%s2249_s1 + $0x8] sm:$0xff]   ;;  %v1539_v2 = vld [vmem:[%s2249_s1 + $0x10] sm:$0xff]  }
   0x2   :  { %1441 = vmatprep.subr.bf16.mxu0 %v1537_v0  ;;  %1521 = vmatprep.subr.bf16.mxu1 %v1537_v0  ;;  %v1540_v3 = vld [vmem:[%s2249_s1 + $0x18] sm:$0xff]   ;;  %v1545_v4 = vld [vmem:[%s2250_s0] sm:$0xff]   ;;  %v1542_v7 = vld [vmem:[%s2249_s1 + $0x28] sm:$0xff]  }
   0x3   :  { %1442 = vmatpush3.bf16.msra.mxu0 %v1537_v0  ;;  %1529 = vmatpush3.bf16.msra.mxu1 %v1537_v0  ;;  %v1546_v5 = vld [vmem:[%s2250_s0 + $0x80] sm:$0xff]   ;;  %v1543_v8 = vld [vmem:[%s2249_s1 + $0x30] sm:$0xff]   ;;  %v1544_v9 = vld [vmem:[%s2249_s1 + $0x38] sm:$0xff]  }
   0x4   :  { %1443 = vmatprep.subr.bf16.mxu0 %v1538_v1  ;;  %1522 = vmatprep.subr.bf16.mxu1 %v1538_v1  ;;  %v1541_v6 = vld [vmem:[%s2249_s1 + $0x20] sm:$0xff]   ;;  %v1547_v10 = vld [vmem:[%s2250_s0 + $0x8] sm:$0xff]   ;;  %v1549_v12 = vld [vmem:[%s2250_s0 + $0x10] sm:$0xff]  }
   0x5   :  { %1457 = vmatprep.mubr.bf16.mxu0 %v1545_v4  ;;  %1489 = vmatprep.mubr.bf16.mxu1 %v1546_v5  ;;  %v1548_v11 = vld [vmem:[%s2250_s0 + $0x88] sm:$0xff]   ;;  %v1550_v13 = vld [vmem:[%s2250_s0 + $0x90] sm:$0xff]   ;;  %v1551_v14 = vld [vmem:[%s2250_s0 + $0x18] sm:$0xff]  }
   0x6   :  { %v1552_v15 = vld [vmem:[%s2250_s0 + $0x98] sm:$0xff]   ;;  %v1553_v16 = vld [vmem:[%s2250_s0 + $0x20] sm:$0xff]   ;;  %v1555_v18 = vld [vmem:[%s2250_s0 + $0x28] sm:$0xff]  }
   0x7   :  { %1444 = vmatpush3.bf16.msra.mxu0 %v1538_v1  ;;  %1530 = vmatpush3.bf16.msra.mxu1 %v1538_v1  ;;  %v1554_v17 = vld [vmem:[%s2250_s0 + $0xa0] sm:$0xff]   ;;  %v1556_v19 = vld [vmem:[%s2250_s0 + $0xa8] sm:$0xff]   ;;  %v1557_v20 = vld [vmem:[%s2250_s0 + $0x30] sm:$0xff]  }
   0x8   :  { %1445 = vmatprep.subr.bf16.mxu0 %v1539_v2  ;;  %1523 = vmatprep.subr.bf16.mxu1 %v1539_v2  ;;  %v1558_v21 = vld [vmem:[%s2250_s0 + $0xb0] sm:$0xff]   ;;  %v1559_v22 = vld [vmem:[%s2250_s0 + $0x38] sm:$0xff]   ;;  %v1561_v24 = vld [vmem:[%s2250_s0 + $0x40] sm:$0xff]  }
   0x9   :  { %v1560_v23 = vld [vmem:[%s2250_s0 + $0xb8] sm:$0xff]   ;;  %v1562_v25 = vld [vmem:[%s2250_s0 + $0xc0] sm:$0xff]   ;;  %v1563_v26 = vld [vmem:[%s2250_s0 + $0x48] sm:$0xff]  }
   0xa   :  { %v1564_v27 = vld [vmem:[%s2250_s0 + $0xc8] sm:$0xff]   ;;  %v1565_v28 = vld [vmem:[%s2250_s0 + $0x50] sm:$0xff]   ;;  %v1567_v30 = vld [vmem:[%s2250_s0 + $0x58] sm:$0xff]  }
   0xb   :  { %1446 = vmatpush3.bf16.msra.mxu0 %v1539_v2  ;;  %1531 = vmatpush3.bf16.msra.mxu1 %v1539_v2  ;;  %v1566_v29 = vld [vmem:[%s2250_s0 + $0xd0] sm:$0xff]   ;;  %v1568_v31 = vld [vmem:[%s2250_s0 + $0xd8] sm:$0xff]   ;;  %v1569_v32 = vld [vmem:[%s2250_s0 + $0x60] sm:$0xff]  }
   0xc   :  { %1447 = vmatprep.subr.bf16.mxu0 %v1540_v3  ;;  %1524 = vmatprep.subr.bf16.mxu1 %v1540_v3  ;;  %v1570_v33 = vld [vmem:[%s2250_s0 + $0xe0] sm:$0xff]   ;;  %v1571_v34 = vld [vmem:[%s2250_s0 + $0x68] sm:$0xff]   ;;  %v1573_v36 = vld [vmem:[%s2250_s0 + $0x70] sm:$0xff]  }
   0xd   :  { %v1572_v35 = vld [vmem:[%s2250_s0 + $0xe8] sm:$0xff]   ;;  %v1574_v37 = vld [vmem:[%s2250_s0 + $0xf0] sm:$0xff]   ;;  %v1575_v38 = vld [vmem:[%s2250_s0 + $0x78] sm:$0xff]  }
   0xe   :  { %v1576_v39 = vld [vmem:[%s2250_s0 + $0xf8] sm:$0xff]   ;;  %v1730_v40 = vld [vmem:[%s2251_s2] ss:$0 sm:$0xff]  ;;  %v1101_v48 = vld [vmem:[%s2253_s4 + $0x10] sm:$0xff] }
   0xf   :  { %1448 = vmatpush3.bf16.msra.mxu0 %v1540_v3  ;;  %1532 = vmatpush3.bf16.msra.mxu1 %v1540_v3  ;;  %v1735_v42 = vld [vmem:[%s2252_s3] ss:$0 sm:$0xff]  ;;  %v1133_v49 = vld [vmem:[%s2253_s4 + $0x110] sm:$0xff]  ;;  %v1102_v0 = vld [vmem:[%s2253_s4 + $0x18] sm:$0xff] }
  0x10   :  { %1449 = vmatprep.subr.bf16.mxu0 %v1541_v6  ;;  %1525 = vmatprep.subr.bf16.mxu1 %v1541_v6  ;;  %v1099_v56 = vld [vmem:[%s2253_s4] sm:$0xff]  ;;  %v1134_v1 = vld [vmem:[%s2253_s4 + $0x118] sm:$0xff] }
  0x11   :  { %v1131_v57 = vld [vmem:[%s2253_s4 + $0x100] sm:$0xff] }
  0x13   :  { %1450 = vmatpush3.bf16.msra.mxu0 %v1541_v6  ;;  %1533 = vmatpush3.bf16.msra.mxu1 %v1541_v6 }
  0x14   :  { %1451 = vmatprep.subr.bf16.mxu0 %v1542_v7  ;;  %1526 = vmatprep.subr.bf16.mxu1 %v1542_v7 }
  0x17   :  { %1452 = vmatpush3.bf16.msra.mxu0 %v1542_v7  ;;  %1534 = vmatpush3.bf16.msra.mxu1 %v1542_v7 }
  0x18   :  { %1453 = vmatprep.subr.bf16.mxu0 %v1543_v8  ;;  %1527 = vmatprep.subr.bf16.mxu1 %v1543_v8 }
  0x1b   :  { %1454 = vmatpush3.bf16.msra.mxu0 %v1543_v8  ;;  %1535 = vmatpush3.bf16.msra.mxu1 %v1543_v8  ;;  %v1100_v8 = vld [vmem:[%s2253_s4 + $0x8] sm:$0xff] }
  0x1c   :  { %1455 = vmatprep.subr.bf16.mxu0 %v1544_v9  ;;  %1528 = vmatprep.subr.bf16.mxu1 %v1544_v9 }
  0x1f   :  { %1456 = vmatpush3.bf16.msra.mxu0 %v1544_v9  ;;  %1536 = vmatpush3.bf16.msra.mxu1 %v1544_v9  ;;  %v1132_v9 = vld [vmem:[%s2253_s4 + $0x108] sm:$0xff] }
  0x22   :  { %1458 = vmatmul.mubr.bf16.vlgmr.msra.gmra.mrb[0].mxu0 %v1547_v10  ;;  %1490 = vmatmul.mubr.bf16.vlgmr.msra.gmra.mrb[0].mxu1 %v1548_v11 }
  0x23   :  { %1461 = vmatprep.mubr.bf16.mxu0 %v1549_v12  ;;  %1493 = vmatprep.mubr.bf16.mxu1 %v1550_v13 }
  0x2a   :  { %1462 = vmatmul.mubr.bf16.gmra.mrb[4].mxu0 %v1551_v14  ;;  %1494 = vmatmul.mubr.bf16.gmra.mrb[4].mxu1 %v1552_v15 }
  0x2b   :  { %1465 = vmatprep.mubr.bf16.mxu0 %v1553_v16  ;;  %1497 = vmatprep.mubr.bf16.mxu1 %v1554_v17 }
  0x32   :  { %1466 = vmatmul.mubr.bf16.gmra.mrb[8].mxu0 %v1555_v18  ;;  %1498 = vmatmul.mubr.bf16.gmra.mrb[8].mxu1 %v1556_v19 }
  0x33   :  { %1469 = vmatprep.mubr.bf16.mxu0 %v1557_v20  ;;  %1501 = vmatprep.mubr.bf16.mxu1 %v1558_v21 }
  0x3a   :  { %1470 = vmatmul.mubr.bf16.gmra.mrb[12].mxu0 %v1559_v22  ;;  %1502 = vmatmul.mubr.bf16.gmra.mrb[12].mxu1 %v1560_v23 }
  0x3b   :  { %1473 = vmatprep.mubr.bf16.mxu0 %v1561_v24  ;;  %1505 = vmatprep.mubr.bf16.mxu1 %v1562_v25 }
  0x42   :  { %1474 = vmatmul.mubr.bf16.gmra.mrb[16].mxu0 %v1563_v26  ;;  %1506 = vmatmul.mubr.bf16.gmra.mrb[16].mxu1 %v1564_v27 }
  0x43   :  { %1477 = vmatprep.mubr.bf16.mxu0 %v1565_v28  ;;  %1509 = vmatprep.mubr.bf16.mxu1 %v1566_v29 }
  0x4a   :  { %1478 = vmatmul.mubr.bf16.gmra.mrb[20].mxu0 %v1567_v30  ;;  %1510 = vmatmul.mubr.bf16.gmra.mrb[20].mxu1 %v1568_v31 }
  0x4b   :  { %1481 = vmatprep.mubr.bf16.mxu0 %v1569_v32  ;;  %1513 = vmatprep.mubr.bf16.mxu1 %v1570_v33  ;;  %v1105_v32 = vld [vmem:[%s2253_s4 + $0x30] sm:$0xff] }
  0x4c   :  { %v1137_v33 = vld [vmem:[%s2253_s4 + $0x130] sm:$0xff] }
  0x52   :  { %1482 = vmatmul.mubr.bf16.gmra.mrb[24].mxu0 %v1571_v34  ;;  %1514 = vmatmul.mubr.bf16.gmra.mrb[24].mxu1 %v1572_v35 }
  0x53   :  { %1485 = vmatprep.mubr.bf16.mxu0 %v1573_v36  ;;  %1517 = vmatprep.mubr.bf16.mxu1 %v1574_v37 }
  0x5a   :  { %1486 = vmatmul.mubr.bf16.gmra.mrb[28].mxu0 %v1575_v38  ;;  %1518 = vmatmul.mubr.bf16.gmra.mrb[28].mxu1 %v1576_v39 }
  0xf5   :  { %v1459_v41 = vpop.f32.mrb[0].mxu0  ;;  %v1491_v43 = vpop.f32.mrb[0].mxu1 }
  0xf6   :  { %v966_v44 = vmul.f32 %v1459_v41, %v1730_v40  ;;  %v998_v45 = vmul.f32 %v1491_v43, %v1730_v40  ;;  %v507_v46 = vpop.f32.mrb[1].mxu0  ;;  %v635_v47 = vpop.f32.mrb[1].mxu1  ;;  %v1103_v41 = vld [vmem:[%s2253_s4 + $0x20] sm:$0xff] }
  0xf7   :  { %v964_v50 = vmul.f32 %v1730_v40, %v507_v46  ;;  %v996_v51 = vmul.f32 %v1730_v40, %v635_v47  ;;  %v1460_v52 = vpop.f32.mrb[2].mxu0  ;;  %v1492_v53 = vpop.f32.mrb[2].mxu1  ;;  %v1135_v43 = vld [vmem:[%s2253_s4 + $0x120] sm:$0xff] }
  0xf8   :  { %v1037_v54 = vadd.f32 %v1735_v42, %v966_v44  ;;  %v1069_v55 = vadd.f32 %v1735_v42, %v998_v45  ;;  %v967_v58 = vmul.f32 %v1460_v52, %v1730_v40  ;;  %v999_v59 = vmul.f32 %v1492_v53, %v1730_v40  ;;  %v510_v60 = vpop.f32.mrb[3].mxu0  ;;  %v638_v61 = vpop.f32.mrb[3].mxu1 }
  0xf9   :  { %v1035_v62 = vadd.f32 %v1735_v42, %v964_v50  ;;  %v1067_v63 = vadd.f32 %v1735_v42, %v996_v51  ;;  %v965_v2 = vmul.f32 %v1730_v40, %v510_v60  ;;  %v997_v3 = vmul.f32 %v1730_v40, %v638_v61  ;;  %v1106_v50 = vld [vmem:[%s2253_s4 + $0x38] sm:$0xff] }
  0xfa   :  { %v1165_v4 = vadd.f32 %v1101_v48, %v1037_v54  ;;  %v1197_v5 = vadd.f32 %v1133_v49, %v1069_v55  ;;  %v1038_v6 = vadd.f32 %v1735_v42, %v967_v58  ;;  %v1070_v7 = vadd.f32 %v1735_v42, %v999_v59  ;;  %v1138_v51 = vld [vmem:[%s2253_s4 + $0x138] sm:$0xff]  ;;  %v1104_v58 = vld [vmem:[%s2253_s4 + $0x28] sm:$0xff] }
  0xfb   :  { %v1163_v10 = vadd.f32 %v1099_v56, %v1035_v62  ;;  %v1195_v11 = vadd.f32 %v1131_v57, %v1067_v63  ;;  %v1036_v12 = vadd.f32 %v1735_v42, %v965_v2  ;;  %v1068_v13 = vadd.f32 %v1735_v42, %v997_v3  ;;  %v1136_v59 = vld [vmem:[%s2253_s4 + $0x128] sm:$0xff] }
  0xfc   :  { %v1229_v14 = vmax.f32 %v1165_v4, 0.0  ;;  %v1261_v15 = vmax.f32 %v1197_v5, 0.0  ;;  %v1166_v16 = vadd.f32 %v1102_v0, %v1038_v6  ;;  %v1198_v17 = vadd.f32 %v1134_v1, %v1070_v7 }
  0xfd   :  { %v1227_v18 = vmax.f32 %v1163_v10, 0.0  ;;  %v1259_v19 = vmax.f32 %v1195_v11, 0.0  ;;  %v1164_v20 = vadd.f32 %v1100_v8, %v1036_v12  ;;  %v1196_v21 = vadd.f32 %v1132_v9, %v1068_v13  ;;  %v1463_v22 = vpop.f32.mrb[4].mxu0  ;;  %v1495_v23 = vpop.f32.mrb[4].mxu1 }
  0xfe   :  { %1293 = vst [vmem:[%s2254_s5 + $0x10] sm:$0xff] %v1229_v14  ;;  %1325 = vst [vmem:[%s2254_s5 + $0x110] sm:$0xff] %v1261_v15  ;;  %v1230_v24 = vmax.f32 %v1166_v16, 0.0  ;;  %v1262_v25 = vmax.f32 %v1198_v17, 0.0  ;;  %v970_v26 = vmul.f32 %v1463_v22, %v1730_v40  ;;  %v1002_v27 = vmul.f32 %v1495_v23, %v1730_v40  ;;  %v523_v28 = vpop.f32.mrb[5].mxu0  ;;  %v651_v29 = vpop.f32.mrb[5].mxu1 }
  0xff   :  { %1291 = vst [vmem:[%s2254_s5] sm:$0xff] %v1227_v18  ;;  %1323 = vst [vmem:[%s2254_s5 + $0x100] sm:$0xff] %v1259_v19  ;;  %v1228_v30 = vmax.f32 %v1164_v20, 0.0  ;;  %v1260_v31 = vmax.f32 %v1196_v21, 0.0  ;;  %v968_v34 = vmul.f32 %v1730_v40, %v523_v28  ;;  %v1000_v35 = vmul.f32 %v1730_v40, %v651_v29  ;;  %v1464_v36 = vpop.f32.mrb[6].mxu0  ;;  %v1496_v37 = vpop.f32.mrb[6].mxu1  ;;  %v1109_v18 = vld [vmem:[%s2253_s4 + $0x50] sm:$0xff] }
 0x100   :  { %1294 = vst [vmem:[%s2254_s5 + $0x18] sm:$0xff] %v1230_v24  ;;  %1326 = vst [vmem:[%s2254_s5 + $0x118] sm:$0xff] %v1262_v25  ;;  %v1041_v38 = vadd.f32 %v1735_v42, %v970_v26  ;;  %v1073_v39 = vadd.f32 %v1735_v42, %v1002_v27  ;;  %v971_v44 = vmul.f32 %v1464_v36, %v1730_v40  ;;  %v526_v46 = vpop.f32.mrb[7].mxu0  ;;  %v654_v47 = vpop.f32.mrb[7].mxu1  ;;  %v1141_v19 = vld [vmem:[%s2253_s4 + $0x150] sm:$0xff]  ;;  %v1107_v26 = vld [vmem:[%s2253_s4 + $0x40] sm:$0xff] }
 0x101   :  { %v1003_v45 = vmul.f32 %v1496_v37, %v1730_v40  ;;  %1292 = vst [vmem:[%s2254_s5 + $0x8] sm:$0xff] %v1228_v30  ;;  %1324 = vst [vmem:[%s2254_s5 + $0x108] sm:$0xff] %v1260_v31  ;;  %v1039_v48 = vadd.f32 %v1735_v42, %v968_v34  ;;  %v1071_v49 = vadd.f32 %v1735_v42, %v1000_v35  ;;  %v1139_v27 = vld [vmem:[%s2253_s4 + $0x140] sm:$0xff]  ;;  %v1110_v34 = vld [vmem:[%s2253_s4 + $0x58] sm:$0xff] }
 0x102   :  { %v969_v52 = vmul.f32 %v1730_v40, %v526_v46  ;;  %v1001_v53 = vmul.f32 %v1730_v40, %v654_v47  ;;  %v1169_v54 = vadd.f32 %v1105_v32, %v1041_v38  ;;  %v1201_v55 = vadd.f32 %v1137_v33, %v1073_v39  ;;  %v1142_v35 = vld [vmem:[%s2253_s4 + $0x158] sm:$0xff] }
 0x103   :  { %v1042_v56 = vadd.f32 %v1735_v42, %v971_v44  ;;  %v1074_v57 = vadd.f32 %v1735_v42, %v1003_v45  ;;  %v1167_v60 = vadd.f32 %v1103_v41, %v1039_v48  ;;  %v1199_v61 = vadd.f32 %v1135_v43, %v1071_v49  ;;  %v1108_v44 = vld [vmem:[%s2253_s4 + $0x48] sm:$0xff] }
 0x104   :  { %v1040_v62 = vadd.f32 %v1735_v42, %v969_v52  ;;  %v1072_v63 = vadd.f32 %v1735_v42, %v1001_v53  ;;  %v1233_v0 = vmax.f32 %v1169_v54, 0.0  ;;  %v1265_v1 = vmax.f32 %v1201_v55, 0.0  ;;  %v1140_v45 = vld [vmem:[%s2253_s4 + $0x148] sm:$0xff] }
 0x105   :  { %v1170_v2 = vadd.f32 %v1106_v50, %v1042_v56  ;;  %v1202_v3 = vadd.f32 %v1138_v51, %v1074_v57  ;;  %v1231_v4 = vmax.f32 %v1167_v60, 0.0  ;;  %v1263_v5 = vmax.f32 %v1199_v61, 0.0  ;;  %v1467_v8 = vpop.f32.mrb[8].mxu0  ;;  %v1499_v9 = vpop.f32.mrb[8].mxu1 }
 0x106   :  { %v1168_v6 = vadd.f32 %v1104_v58, %v1040_v62  ;;  %v1200_v7 = vadd.f32 %v1136_v59, %v1072_v63  ;;  %1297 = vst [vmem:[%s2254_s5 + $0x30] sm:$0xff] %v1233_v0  ;;  %1329 = vst [vmem:[%s2254_s5 + $0x130] sm:$0xff] %v1265_v1  ;;  %v974_v12 = vmul.f32 %v1467_v8, %v1730_v40  ;;  %v539_v14 = vpop.f32.mrb[9].mxu0  ;;  %v667_v15 = vpop.f32.mrb[9].mxu1 }
 0x107   :  { %v1234_v10 = vmax.f32 %v1170_v2, 0.0  ;;  %v1266_v11 = vmax.f32 %v1202_v3, 0.0  ;;  %v1006_v13 = vmul.f32 %v1499_v9, %v1730_v40  ;;  %1295 = vst [vmem:[%s2254_s5 + $0x20] sm:$0xff] %v1231_v4  ;;  %1327 = vst [vmem:[%s2254_s5 + $0x120] sm:$0xff] %v1263_v5  ;;  %v972_v20 = vmul.f32 %v1730_v40, %v539_v14  ;;  %v1468_v22 = vpop.f32.mrb[10].mxu0  ;;  %v1500_v23 = vpop.f32.mrb[10].mxu1 }
 0x108   :  { %v1232_v16 = vmax.f32 %v1168_v6, 0.0  ;;  %v1264_v17 = vmax.f32 %v1200_v7, 0.0  ;;  %v1004_v21 = vmul.f32 %v1730_v40, %v667_v15  ;;  %v1045_v24 = vadd.f32 %v1735_v42, %v974_v12  ;;  %v542_v30 = vpop.f32.mrb[11].mxu0  ;;  %v670_v31 = vpop.f32.mrb[11].mxu1  ;;  %v1113_v4 = vld [vmem:[%s2253_s4 + $0x70] sm:$0xff]  ;;  %v1111_v12 = vld [vmem:[%s2253_s4 + $0x60] sm:$0xff] }
 0x109   :  { %1298 = vst [vmem:[%s2254_s5 + $0x38] sm:$0xff] %v1234_v10  ;;  %1330 = vst [vmem:[%s2254_s5 + $0x138] sm:$0xff] %v1266_v11  ;;  %v1077_v25 = vadd.f32 %v1735_v42, %v1006_v13  ;;  %v975_v28 = vmul.f32 %v1468_v22, %v1730_v40  ;;  %v1007_v29 = vmul.f32 %v1500_v23, %v1730_v40  ;;  %v1145_v5 = vld [vmem:[%s2253_s4 + $0x170] sm:$0xff]  ;;  %v1143_v13 = vld [vmem:[%s2253_s4 + $0x160] sm:$0xff] }
 0x10a   :  { %1296 = vst [vmem:[%s2254_s5 + $0x28] sm:$0xff] %v1232_v16  ;;  %1328 = vst [vmem:[%s2254_s5 + $0x128] sm:$0xff] %v1264_v17  ;;  %v1043_v32 = vadd.f32 %v1735_v42, %v972_v20  ;;  %v1075_v33 = vadd.f32 %v1735_v42, %v1004_v21  ;;  %v973_v36 = vmul.f32 %v1730_v40, %v542_v30  ;;  %v1114_v20 = vld [vmem:[%s2253_s4 + $0x78] sm:$0xff] }
 0x10b   :  { %v1005_v37 = vmul.f32 %v1730_v40, %v670_v31  ;;  %v1173_v38 = vadd.f32 %v1109_v18, %v1045_v24  ;;  %v1205_v39 = vadd.f32 %v1141_v19, %v1077_v25  ;;  %v1046_v41 = vadd.f32 %v1735_v42, %v975_v28  ;;  %v1146_v21 = vld [vmem:[%s2253_s4 + $0x178] sm:$0xff]  ;;  %v1112_v28 = vld [vmem:[%s2253_s4 + $0x68] sm:$0xff] }
 0x10c   :  { %v1078_v43 = vadd.f32 %v1735_v42, %v1007_v29  ;;  %v1171_v46 = vadd.f32 %v1107_v26, %v1043_v32  ;;  %v1203_v47 = vadd.f32 %v1139_v27, %v1075_v33  ;;  %v1044_v48 = vadd.f32 %v1735_v42, %v973_v36  ;;  %v1144_v29 = vld [vmem:[%s2253_s4 + $0x168] sm:$0xff] }
 0x10d   :  { %v1076_v49 = vadd.f32 %v1735_v42, %v1005_v37  ;;  %v1237_v50 = vmax.f32 %v1173_v38, 0.0  ;;  %v1269_v51 = vmax.f32 %v1205_v39, 0.0  ;;  %v1174_v52 = vadd.f32 %v1110_v34, %v1046_v41  ;;  %v1471_v58 = vpop.f32.mrb[12].mxu0  ;;  %v1503_v59 = vpop.f32.mrb[12].mxu1 }
 0x10e   :  { %v1206_v53 = vadd.f32 %v1142_v35, %v1078_v43  ;;  %v1235_v54 = vmax.f32 %v1171_v46, 0.0  ;;  %v1267_v55 = vmax.f32 %v1203_v47, 0.0  ;;  %v1172_v56 = vadd.f32 %v1108_v44, %v1044_v48  ;;  %v555_v0 = vpop.f32.mrb[13].mxu0  ;;  %v683_v1 = vpop.f32.mrb[13].mxu1 }
 0x10f   :  { %v1204_v57 = vadd.f32 %v1140_v45, %v1076_v49  ;;  %1301 = vst [vmem:[%s2254_s5 + $0x50] sm:$0xff] %v1237_v50  ;;  %1333 = vst [vmem:[%s2254_s5 + $0x150] sm:$0xff] %v1269_v51  ;;  %v1238_v60 = vmax.f32 %v1174_v52, 0.0  ;;  %v978_v62 = vmul.f32 %v1471_v58, %v1730_v40  ;;  %v1010_v63 = vmul.f32 %v1503_v59, %v1730_v40  ;;  %v1472_v8 = vpop.f32.mrb[14].mxu0  ;;  %v1504_v9 = vpop.f32.mrb[14].mxu1 }
 0x110   :  { %v1270_v61 = vmax.f32 %v1206_v53, 0.0  ;;  %1299 = vst [vmem:[%s2254_s5 + $0x40] sm:$0xff] %v1235_v54  ;;  %1331 = vst [vmem:[%s2254_s5 + $0x140] sm:$0xff] %v1267_v55  ;;  %v1236_v2 = vmax.f32 %v1172_v56, 0.0  ;;  %v976_v6 = vmul.f32 %v1730_v40, %v555_v0  ;;  %v1008_v7 = vmul.f32 %v1730_v40, %v683_v1  ;;  %v558_v16 = vpop.f32.mrb[15].mxu0  ;;  %v686_v17 = vpop.f32.mrb[15].mxu1 }
 0x111   :  { %v1268_v3 = vmax.f32 %v1204_v57, 0.0  ;;  %1302 = vst [vmem:[%s2254_s5 + $0x58] sm:$0xff] %v1238_v60  ;;  %v1049_v10 = vadd.f32 %v1735_v42, %v978_v62  ;;  %v1081_v11 = vadd.f32 %v1735_v42, %v1010_v63  ;;  %v979_v14 = vmul.f32 %v1472_v8, %v1730_v40  ;;  %v1117_v54 = vld [vmem:[%s2253_s4 + $0x90] sm:$0xff]  ;;  %v1115_v62 = vld [vmem:[%s2253_s4 + $0x80] sm:$0xff] }
 0x112   :  { %1334 = vst [vmem:[%s2254_s5 + $0x158] sm:$0xff] %v1270_v61  ;;  %v1011_v15 = vmul.f32 %v1504_v9, %v1730_v40  ;;  %1300 = vst [vmem:[%s2254_s5 + $0x48] sm:$0xff] %v1236_v2  ;;  %v1047_v18 = vadd.f32 %v1735_v42, %v976_v6  ;;  %v1079_v19 = vadd.f32 %v1735_v42, %v1008_v7  ;;  %v1149_v55 = vld [vmem:[%s2253_s4 + $0x190] sm:$0xff]  ;;  %v1147_v63 = vld [vmem:[%s2253_s4 + $0x180] sm:$0xff] }
 0x113   :  { %1332 = vst [vmem:[%s2254_s5 + $0x148] sm:$0xff] %v1268_v3  ;;  %v977_v22 = vmul.f32 %v1730_v40, %v558_v16  ;;  %v1009_v23 = vmul.f32 %v1730_v40, %v686_v17  ;;  %v1177_v24 = vadd.f32 %v1113_v4, %v1049_v10  ;;  %v1209_v25 = vadd.f32 %v1145_v5, %v1081_v11  ;;  %v1118_v6 = vld [vmem:[%s2253_s4 + $0x98] sm:$0xff] }
 0x114   :  { %v1050_v26 = vadd.f32 %v1735_v42, %v979_v14  ;;  %v1082_v27 = vadd.f32 %v1735_v42, %v1011_v15  ;;  %v1175_v30 = vadd.f32 %v1111_v12, %v1047_v18  ;;  %v1207_v31 = vadd.f32 %v1143_v13, %v1079_v19  ;;  %v1150_v7 = vld [vmem:[%s2253_s4 + $0x198] sm:$0xff]  ;;  %v1116_v14 = vld [vmem:[%s2253_s4 + $0x88] sm:$0xff] }
 0x115   :  { %v1048_v32 = vadd.f32 %v1735_v42, %v977_v22  ;;  %v1080_v33 = vadd.f32 %v1735_v42, %v1009_v23  ;;  %v1241_v34 = vmax.f32 %v1177_v24, 0.0  ;;  %v1273_v35 = vmax.f32 %v1209_v25, 0.0  ;;  %v1475_v44 = vpop.f32.mrb[16].mxu0  ;;  %v1507_v45 = vpop.f32.mrb[16].mxu1  ;;  %v1148_v15 = vld [vmem:[%s2253_s4 + $0x188] sm:$0xff] }
 0x116   :  { %v1178_v36 = vadd.f32 %v1114_v20, %v1050_v26  ;;  %v1210_v37 = vadd.f32 %v1146_v21, %v1082_v27  ;;  %v1239_v38 = vmax.f32 %v1175_v30, 0.0  ;;  %v1271_v39 = vmax.f32 %v1207_v31, 0.0  ;;  %v571_v50 = vpop.f32.mrb[17].mxu0  ;;  %v699_v51 = vpop.f32.mrb[17].mxu1 }
 0x117   :  { %v1176_v41 = vadd.f32 %v1112_v28, %v1048_v32  ;;  %v1208_v43 = vadd.f32 %v1144_v29, %v1080_v33  ;;  %1305 = vst [vmem:[%s2254_s5 + $0x70] sm:$0xff] %v1241_v34  ;;  %1337 = vst [vmem:[%s2254_s5 + $0x170] sm:$0xff] %v1273_v35  ;;  %v982_v48 = vmul.f32 %v1475_v44, %v1730_v40  ;;  %v1476_v58 = vpop.f32.mrb[18].mxu0  ;;  %v1508_v59 = vpop.f32.mrb[18].mxu1 }
 0x118   :  { %v1242_v46 = vmax.f32 %v1178_v36, 0.0  ;;  %v1274_v47 = vmax.f32 %v1210_v37, 0.0  ;;  %v1014_v49 = vmul.f32 %v1507_v45, %v1730_v40  ;;  %1303 = vst [vmem:[%s2254_s5 + $0x60] sm:$0xff] %v1239_v38  ;;  %1335 = vst [vmem:[%s2254_s5 + $0x160] sm:$0xff] %v1271_v39  ;;  %v980_v56 = vmul.f32 %v1730_v40, %v571_v50  ;;  %v574_v2 = vpop.f32.mrb[19].mxu0  ;;  %v702_v3 = vpop.f32.mrb[19].mxu1 }
 0x119   :  { %v1240_v52 = vmax.f32 %v1176_v41, 0.0  ;;  %v1272_v53 = vmax.f32 %v1208_v43, 0.0  ;;  %v1012_v57 = vmul.f32 %v1730_v40, %v699_v51  ;;  %v1053_v60 = vadd.f32 %v1735_v42, %v982_v48  ;;  %v1121_v38 = vld [vmem:[%s2253_s4 + $0xb0] sm:$0xff]  ;;  %v1119_v48 = vld [vmem:[%s2253_s4 + $0xa0] sm:$0xff] }
 0x11a   :  { %1306 = vst [vmem:[%s2254_s5 + $0x78] sm:$0xff] %v1242_v46  ;;  %1338 = vst [vmem:[%s2254_s5 + $0x178] sm:$0xff] %v1274_v47  ;;  %v1085_v61 = vadd.f32 %v1735_v42, %v1014_v49  ;;  %v983_v0 = vmul.f32 %v1476_v58, %v1730_v40  ;;  %v1015_v1 = vmul.f32 %v1508_v59, %v1730_v40  ;;  %v1153_v39 = vld [vmem:[%s2253_s4 + $0x1b0] sm:$0xff]  ;;  %v1151_v49 = vld [vmem:[%s2253_s4 + $0x1a0] sm:$0xff] }
 0x11b   :  { %1304 = vst [vmem:[%s2254_s5 + $0x68] sm:$0xff] %v1240_v52  ;;  %1336 = vst [vmem:[%s2254_s5 + $0x168] sm:$0xff] %v1272_v53  ;;  %v1051_v4 = vadd.f32 %v1735_v42, %v980_v56  ;;  %v1083_v5 = vadd.f32 %v1735_v42, %v1012_v57  ;;  %v981_v8 = vmul.f32 %v1730_v40, %v574_v2  ;;  %v1122_v56 = vld [vmem:[%s2253_s4 + $0xb8] sm:$0xff] }
 0x11c   :  { %v1013_v9 = vmul.f32 %v1730_v40, %v702_v3  ;;  %v1181_v10 = vadd.f32 %v1117_v54, %v1053_v60  ;;  %v1213_v11 = vadd.f32 %v1149_v55, %v1085_v61  ;;  %v1054_v12 = vadd.f32 %v1735_v42, %v983_v0  ;;  %v1154_v57 = vld [vmem:[%s2253_s4 + $0x1b8] sm:$0xff]  ;;  %v1120_v0 = vld [vmem:[%s2253_s4 + $0xa8] sm:$0xff] }
 0x11d   :  { %v1086_v13 = vadd.f32 %v1735_v42, %v1015_v1  ;;  %v1179_v16 = vadd.f32 %v1115_v62, %v1051_v4  ;;  %v1211_v17 = vadd.f32 %v1147_v63, %v1083_v5  ;;  %v1052_v18 = vadd.f32 %v1735_v42, %v981_v8  ;;  %v1479_v28 = vpop.f32.mrb[20].mxu0  ;;  %v1511_v29 = vpop.f32.mrb[20].mxu1  ;;  %v1152_v1 = vld [vmem:[%s2253_s4 + $0x1a8] sm:$0xff] }
 0x11e   :  { %v1084_v19 = vadd.f32 %v1735_v42, %v1013_v9  ;;  %v1245_v20 = vmax.f32 %v1181_v10, 0.0  ;;  %v1277_v21 = vmax.f32 %v1213_v11, 0.0  ;;  %v1182_v22 = vadd.f32 %v1118_v6, %v1054_v12  ;;  %v587_v34 = vpop.f32.mrb[21].mxu0  ;;  %v715_v35 = vpop.f32.mrb[21].mxu1 }
 0x11f   :  { %v1214_v23 = vadd.f32 %v1150_v7, %v1086_v13  ;;  %v1243_v24 = vmax.f32 %v1179_v16, 0.0  ;;  %v1275_v25 = vmax.f32 %v1211_v17, 0.0  ;;  %v1180_v26 = vadd.f32 %v1116_v14, %v1052_v18  ;;  %v1480_v44 = vpop.f32.mrb[22].mxu0  ;;  %v1512_v45 = vpop.f32.mrb[22].mxu1 }
 0x120   :  { %v1212_v27 = vadd.f32 %v1148_v15, %v1084_v19  ;;  %1309 = vst [vmem:[%s2254_s5 + $0x90] sm:$0xff] %v1245_v20  ;;  %1341 = vst [vmem:[%s2254_s5 + $0x190] sm:$0xff] %v1277_v21  ;;  %v1246_v30 = vmax.f32 %v1182_v22, 0.0  ;;  %v986_v32 = vmul.f32 %v1479_v28, %v1730_v40  ;;  %v1018_v33 = vmul.f32 %v1511_v29, %v1730_v40  ;;  %v590_v52 = vpop.f32.mrb[23].mxu0  ;;  %v718_v53 = vpop.f32.mrb[23].mxu1 }
 0x121   :  { %v1278_v31 = vmax.f32 %v1214_v23, 0.0  ;;  %1307 = vst [vmem:[%s2254_s5 + $0x80] sm:$0xff] %v1243_v24  ;;  %1339 = vst [vmem:[%s2254_s5 + $0x180] sm:$0xff] %v1275_v25  ;;  %v1244_v36 = vmax.f32 %v1180_v26, 0.0  ;;  %v984_v41 = vmul.f32 %v1730_v40, %v587_v34  ;;  %v1016_v43 = vmul.f32 %v1730_v40, %v715_v35  ;;  %v1125_v24 = vld [vmem:[%s2253_s4 + $0xd0] sm:$0xff] }
 0x122   :  { %v1276_v37 = vmax.f32 %v1212_v27, 0.0  ;;  %1310 = vst [vmem:[%s2254_s5 + $0x98] sm:$0xff] %v1246_v30  ;;  %v1057_v46 = vadd.f32 %v1735_v42, %v986_v32  ;;  %v1089_v47 = vadd.f32 %v1735_v42, %v1018_v33  ;;  %v987_v50 = vmul.f32 %v1480_v44, %v1730_v40  ;;  %v1157_v25 = vld [vmem:[%s2253_s4 + $0x1d0] sm:$0xff]  ;;  %v1123_v32 = vld [vmem:[%s2253_s4 + $0xc0] sm:$0xff] }
 0x123   :  { %1342 = vst [vmem:[%s2254_s5 + $0x198] sm:$0xff] %v1278_v31  ;;  %v1019_v51 = vmul.f32 %v1512_v45, %v1730_v40  ;;  %1308 = vst [vmem:[%s2254_s5 + $0x88] sm:$0xff] %v1244_v36  ;;  %v1055_v54 = vadd.f32 %v1735_v42, %v984_v41  ;;  %v1087_v55 = vadd.f32 %v1735_v42, %v1016_v43  ;;  %v1155_v33 = vld [vmem:[%s2253_s4 + $0x1c0] sm:$0xff]  ;;  %v1126_v41 = vld [vmem:[%s2253_s4 + $0xd8] sm:$0xff] }
 0x124   :  { %1340 = vst [vmem:[%s2254_s5 + $0x188] sm:$0xff] %v1276_v37  ;;  %v985_v58 = vmul.f32 %v1730_v40, %v590_v52  ;;  %v1017_v59 = vmul.f32 %v1730_v40, %v718_v53  ;;  %v1185_v60 = vadd.f32 %v1121_v38, %v1057_v46  ;;  %v1217_v61 = vadd.f32 %v1153_v39, %v1089_v47  ;;  %v1158_v43 = vld [vmem:[%s2253_s4 + $0x1d8] sm:$0xff] }
 0x125   :  { %v1058_v62 = vadd.f32 %v1735_v42, %v987_v50  ;;  %v1090_v63 = vadd.f32 %v1735_v42, %v1019_v51  ;;  %v1183_v2 = vadd.f32 %v1119_v48, %v1055_v54  ;;  %v1215_v3 = vadd.f32 %v1151_v49, %v1087_v55  ;;  %v1483_v14 = vpop.f32.mrb[24].mxu0  ;;  %v1515_v15 = vpop.f32.mrb[24].mxu1  ;;  %v1124_v50 = vld [vmem:[%s2253_s4 + $0xc8] sm:$0xff] }
 0x126   :  { %v1056_v4 = vadd.f32 %v1735_v42, %v985_v58  ;;  %v1088_v5 = vadd.f32 %v1735_v42, %v1017_v59  ;;  %v1249_v6 = vmax.f32 %v1185_v60, 0.0  ;;  %v1281_v7 = vmax.f32 %v1217_v61, 0.0  ;;  %v603_v20 = vpop.f32.mrb[25].mxu0  ;;  %v731_v21 = vpop.f32.mrb[25].mxu1  ;;  %v1156_v51 = vld [vmem:[%s2253_s4 + $0x1c8] sm:$0xff] }
 0x127   :  { %v1186_v8 = vadd.f32 %v1122_v56, %v1058_v62  ;;  %v1218_v9 = vadd.f32 %v1154_v57, %v1090_v63  ;;  %v1247_v10 = vmax.f32 %v1183_v2, 0.0  ;;  %v1279_v11 = vmax.f32 %v1215_v3, 0.0  ;;  %v1484_v28 = vpop.f32.mrb[26].mxu0  ;;  %v1516_v29 = vpop.f32.mrb[26].mxu1 }
 0x128   :  { %v1184_v12 = vadd.f32 %v1120_v0, %v1056_v4  ;;  %v1216_v13 = vadd.f32 %v1152_v1, %v1088_v5  ;;  %1313 = vst [vmem:[%s2254_s5 + $0xb0] sm:$0xff] %v1249_v6  ;;  %1345 = vst [vmem:[%s2254_s5 + $0x1b0] sm:$0xff] %v1281_v7  ;;  %v990_v18 = vmul.f32 %v1483_v14, %v1730_v40  ;;  %v606_v36 = vpop.f32.mrb[27].mxu0  ;;  %v734_v37 = vpop.f32.mrb[27].mxu1 }
 0x129   :  { %v1250_v16 = vmax.f32 %v1186_v8, 0.0  ;;  %v1282_v17 = vmax.f32 %v1218_v9, 0.0  ;;  %v1022_v19 = vmul.f32 %v1515_v15, %v1730_v40  ;;  %1311 = vst [vmem:[%s2254_s5 + $0xa0] sm:$0xff] %v1247_v10  ;;  %1343 = vst [vmem:[%s2254_s5 + $0x1a0] sm:$0xff] %v1279_v11  ;;  %v988_v26 = vmul.f32 %v1730_v40, %v603_v20  ;;  %v1129_v10 = vld [vmem:[%s2253_s4 + $0xf0] sm:$0xff] }
 0x12a   :  { %v1248_v22 = vmax.f32 %v1184_v12, 0.0  ;;  %v1280_v23 = vmax.f32 %v1216_v13, 0.0  ;;  %v1020_v27 = vmul.f32 %v1730_v40, %v731_v21  ;;  %v1061_v30 = vadd.f32 %v1735_v42, %v990_v18  ;;  %v1161_v11 = vld [vmem:[%s2253_s4 + $0x1f0] sm:$0xff]  ;;  %v1127_v18 = vld [vmem:[%s2253_s4 + $0xe0] sm:$0xff] }
 0x12b   :  { %1314 = vst [vmem:[%s2254_s5 + $0xb8] sm:$0xff] %v1250_v16  ;;  %1346 = vst [vmem:[%s2254_s5 + $0x1b8] sm:$0xff] %v1282_v17  ;;  %v1093_v31 = vadd.f32 %v1735_v42, %v1022_v19  ;;  %v991_v34 = vmul.f32 %v1484_v28, %v1730_v40  ;;  %v1023_v35 = vmul.f32 %v1516_v29, %v1730_v40  ;;  %v1159_v19 = vld [vmem:[%s2253_s4 + $0x1e0] sm:$0xff] }
 0x12c   :  { %1312 = vst [vmem:[%s2254_s5 + $0xa8] sm:$0xff] %v1248_v22  ;;  %1344 = vst [vmem:[%s2254_s5 + $0x1a8] sm:$0xff] %v1280_v23  ;;  %v1059_v38 = vadd.f32 %v1735_v42, %v988_v26  ;;  %v1091_v39 = vadd.f32 %v1735_v42, %v1020_v27  ;;  %v989_v44 = vmul.f32 %v1730_v40, %v606_v36  ;;  %v1130_v26 = vld [vmem:[%s2253_s4 + $0xf8] sm:$0xff] }
 0x12d   :  { %v1021_v45 = vmul.f32 %v1730_v40, %v734_v37  ;;  %v1189_v46 = vadd.f32 %v1125_v24, %v1061_v30  ;;  %v1221_v47 = vadd.f32 %v1157_v25, %v1093_v31  ;;  %v1062_v48 = vadd.f32 %v1735_v42, %v991_v34  ;;  %v1487_v0 = vpop.f32.mrb[28].mxu0  ;;  %v1519_v1 = vpop.f32.mrb[28].mxu1  ;;  %v1162_v27 = vld [vmem:[%s2253_s4 + $0x1f8] sm:$0xff]  ;;  %v1128_v34 = vld [vmem:[%s2253_s4 + $0xe8] sm:$0xff] }
 0x12e   :  { %v1094_v49 = vadd.f32 %v1735_v42, %v1023_v35  ;;  %v1187_v52 = vadd.f32 %v1123_v32, %v1059_v38  ;;  %v1219_v53 = vadd.f32 %v1155_v33, %v1091_v39  ;;  %v1060_v54 = vadd.f32 %v1735_v42, %v989_v44  ;;  %v619_v6 = vpop.f32.mrb[29].mxu0  ;;  %v747_v7 = vpop.f32.mrb[29].mxu1  ;;  %v1160_v35 = vld [vmem:[%s2253_s4 + $0x1e8] sm:$0xff] }
 0x12f   :  { %v1092_v55 = vadd.f32 %v1735_v42, %v1021_v45  ;;  %v1253_v56 = vmax.f32 %v1189_v46, 0.0  ;;  %v1285_v57 = vmax.f32 %v1221_v47, 0.0  ;;  %v1190_v58 = vadd.f32 %v1126_v41, %v1062_v48  ;;  %v1488_v14 = vpop.f32.mrb[30].mxu0  ;;  %v1520_v15 = vpop.f32.mrb[30].mxu1 }
 0x130   :  { %v1222_v59 = vadd.f32 %v1158_v43, %v1094_v49  ;;  %v1251_v60 = vmax.f32 %v1187_v52, 0.0  ;;  %v1283_v61 = vmax.f32 %v1219_v53, 0.0  ;;  %v1188_v62 = vadd.f32 %v1124_v50, %v1060_v54  ;;  %v622_v22 = vpop.f32.mrb[31].mxu0  ;;  %v750_v23 = vpop.f32.mrb[31].mxu1 }
 0x131   :  { %v1220_v63 = vadd.f32 %v1156_v51, %v1092_v55  ;;  %1317 = vst [vmem:[%s2254_s5 + $0xd0] sm:$0xff] %v1253_v56  ;;  %1349 = vst [vmem:[%s2254_s5 + $0x1d0] sm:$0xff] %v1285_v57  ;;  %v1254_v2 = vmax.f32 %v1190_v58, 0.0  ;;  %v994_v4 = vmul.f32 %v1487_v0, %v1730_v40  ;;  %v1026_v5 = vmul.f32 %v1519_v1, %v1730_v40 }
 0x132   :  { %v1286_v3 = vmax.f32 %v1222_v59, 0.0  ;;  %1315 = vst [vmem:[%s2254_s5 + $0xc0] sm:$0xff] %v1251_v60  ;;  %1347 = vst [vmem:[%s2254_s5 + $0x1c0] sm:$0xff] %v1283_v61  ;;  %v1252_v8 = vmax.f32 %v1188_v62, 0.0  ;;  %v992_v12 = vmul.f32 %v1730_v40, %v619_v6  ;;  %v1024_v13 = vmul.f32 %v1730_v40, %v747_v7 }
 0x133   :  { %v1284_v9 = vmax.f32 %v1220_v63, 0.0  ;;  %1318 = vst [vmem:[%s2254_s5 + $0xd8] sm:$0xff] %v1254_v2  ;;  %v1065_v16 = vadd.f32 %v1735_v42, %v994_v4  ;;  %v1097_v17 = vadd.f32 %v1735_v42, %v1026_v5  ;;  %v995_v20 = vmul.f32 %v1488_v14, %v1730_v40 }
 0x134   :  { %1350 = vst [vmem:[%s2254_s5 + $0x1d8] sm:$0xff] %v1286_v3  ;;  %v1027_v21 = vmul.f32 %v1520_v15, %v1730_v40  ;;  %1316 = vst [vmem:[%s2254_s5 + $0xc8] sm:$0xff] %v1252_v8  ;;  %v1063_v24 = vadd.f32 %v1735_v42, %v992_v12  ;;  %v1095_v25 = vadd.f32 %v1735_v42, %v1024_v13 }
 0x135   :  { %1348 = vst [vmem:[%s2254_s5 + $0x1c8] sm:$0xff] %v1284_v9  ;;  %v993_v28 = vmul.f32 %v1730_v40, %v622_v22  ;;  %v1025_v29 = vmul.f32 %v1730_v40, %v750_v23  ;;  %v1193_v30 = vadd.f32 %v1129_v10, %v1065_v16  ;;  %v1225_v31 = vadd.f32 %v1161_v11, %v1097_v17 }
 0x136   :  { %v1066_v32 = vadd.f32 %v1735_v42, %v995_v20  ;;  %v1098_v33 = vadd.f32 %v1735_v42, %v1027_v21  ;;  %v1191_v36 = vadd.f32 %v1127_v18, %v1063_v24  ;;  %v1223_v37 = vadd.f32 %v1159_v19, %v1095_v25 }
 0x137   :  { %v1064_v38 = vadd.f32 %v1735_v42, %v993_v28  ;;  %v1096_v40 = vadd.f32 %v1735_v42, %v1025_v29  ;;  %v1257_v39 = vmax.f32 %v1193_v30, 0.0  ;;  %v1289_v41 = vmax.f32 %v1225_v31, 0.0 }
 0x138   :  { %v1194_v43 = vadd.f32 %v1130_v26, %v1066_v32  ;;  %v1226_v44 = vadd.f32 %v1162_v27, %v1098_v33  ;;  %v1255_v45 = vmax.f32 %v1191_v36, 0.0  ;;  %v1287_v46 = vmax.f32 %v1223_v37, 0.0 }
 0x139   :  { %v1192_v47 = vadd.f32 %v1128_v34, %v1064_v38  ;;  %v1224_v48 = vadd.f32 %v1160_v35, %v1096_v40  ;;  %1321 = vst [vmem:[%s2254_s5 + $0xf0] sm:$0xff] %v1257_v39  ;;  %1353 = vst [vmem:[%s2254_s5 + $0x1f0] sm:$0xff] %v1289_v41 }
 0x13a   :  { %v1258_v49 = vmax.f32 %v1194_v43, 0.0  ;;  %v1290_v50 = vmax.f32 %v1226_v44, 0.0  ;;  %1319 = vst [vmem:[%s2254_s5 + $0xe0] sm:$0xff] %v1255_v45  ;;  %1351 = vst [vmem:[%s2254_s5 + $0x1e0] sm:$0xff] %v1287_v46 }
 0x13b   :  { %v1256_v42 = vmax.f32 %v1192_v47, 0.0  ;;  %v1288_v51 = vmax.f32 %v1224_v48, 0.0 }
 0x13c   :  { %1322 = vst [vmem:[%s2254_s5 + $0xf8] sm:$0xff] %v1258_v49  ;;  %1354 = vst [vmem:[%s2254_s5 + $0x1f8] sm:$0xff] %v1290_v50 }
 0x13d   :  { %1320 = vst [vmem:[%s2254_s5 + $0xe8] sm:$0xff] %v1256_v42  ;;  %1352 = vst [vmem:[%s2254_s5 + $0x1e8] sm:$0xff] %v1288_v51 }

</bundles_post_ra>
